<compile_context>
chip_gen: v6e
topology: v6e:2x2x1
jax: 0.10.0
libtpu: 0.0.40
codegen_flags: <defaults>
</compile_context>

<pallas_src>
import math

import jax
import jax.numpy as jnp
from jax.experimental import pallas as pl
from jax.experimental.pallas import tpu as pltpu

# ---------------- small RoBERTa-like configuration (lane-dense) ----------------
B, S = 2, 8                      # batch, sequence
H, NH, I, L = 128, 4, 256, 2     # hidden (one full 128-lane tile), heads, ffn, layers
HD = H // NH                     # 32
N_TOK = B * S                    # 16 activation rows
VOCAB, TYPE_VOCAB, PAD_IDX = 50, 2, 1
MAX_POS = S + PAD_IDX + 1        # RoBERTa offsets positions by padding_idx
NUM_CLASSES = 5
NC_PAD = 128                     # classifier output padded to a full lane tile
LN_EPS = 1e-5

# MXU operand dtype. On v6e/v7x at real roberta-base scale store weights in bf16 and set
# this to jnp.bfloat16 (bf16-native MXU, halves weight DMA). Kept float32 here so the
# toy-scale numerics match the f32 PyTorch reference. Accumulation is always float32.
MXU_DTYPE = jnp.float32


def _mm(a, b):
    return jnp.dot(a.astype(MXU_DTYPE), b.astype(MXU_DTYPE),
                   preferred_element_type=jnp.float32)


def _layernorm(x, g, b):
    mu = jnp.mean(x, axis=-1, keepdims=True)
    xc = x - mu
    var = jnp.mean(xc * xc, axis=-1, keepdims=True)
    return xc * jax.lax.rsqrt(var + LN_EPS) * g + b


def _gelu(x):
    # tanh-approx GELU  # TODO(synk): HF RoBERTa uses exact erf-based GELU
    c = jnp.float32(math.sqrt(2.0 / math.pi))
    return 0.5 * x * (1.0 + jnp.tanh(c * (x + 0.044715 * x * x * x)))


# ---------------------------- whole-model fused kernel ----------------------------
def _roberta_kernel(*refs):
    """Entire forward pass. All intermediates stay in VMEM / vregs."""
    it = iter(refs)
    x_ref = next(it)                                  # [N_TOK, H] embeddings
    qseg_ref = next(it)                               # [N_TOK, 1] int32 query-side batch id
    kseg_ref = next(it)                               # [1, N_TOK] int32 key batch id (-1 = pad)
    embg_ref, embb_ref = next(it), next(it)           # [1, H]
    layers = []
    for _ in range(L):
        layers.append(tuple(next(it) for _ in range(12)))
    prew_ref, preb_ref = next(it), next(it)            # [H, H], [1, H]
    clsw_ref, clsb_ref = next(it), next(it)            # [H, NC_PAD], [1, NC_PAD]
    o_ref = next(it)                                   # [B, NC_PAD]
    buf_ref = next(it)                                 # VMEM scratch [N_TOK, H]

    # ---- embedding LayerNorm prologue ----
    x = _layernorm(x_ref[...].astype(jnp.float32), embg_ref[...], embb_ref[...])

    # ---- attention bias built in-kernel (block-diagonal over batch + key-pad mask) ----
    # Padded keys carry segment -1 so they never match any query's batch id -> prob ~ 0.
    bias = jnp.where(qseg_ref[...] == kseg_ref[...], 0.0, -1e9).astype(jnp.float32)  # [N, N]
    scale = jnp.float32(1.0 / math.sqrt(HD))

    # ---- L encoder layers (statically unrolled) ----
    for (wqkv, bqkv, wao, bao, ln1g, ln1b, wi, bi, wfo, bfo, ln2g, ln2b) in layers:
        qkv = _mm(x, wqkv[...]) + bqkv[...]                          # [N, 3H] fused QKV matmul
        for h in range(NH):                                          # NH = 4 static unroll
            c = h * HD
            q_h = qkv[:, c:c + HD]                                   # [N, HD]
            k_h = qkv[:, H + c:H + c + HD]
            v_h = qkv[:, 2 * H + c:2 * H + c + HD]
            s = jax.lax.dot_general(
                q_h.astype(MXU_DTYPE), k_h.astype(MXU_DTYPE),
                (((1,), (1,)), ((), ())),
                preferred_element_type=jnp.float32) * scale + bias   # [N, N]
            s = s - jnp.max(s, axis=-1, keepdims=True)
            p = jnp.exp(s)
            # divide -> EUP reciprocal (separate VLIW slot)
            p = p * pl.reciprocal(jnp.sum(p, axis=-1, keepdims=True), approx=True)
            buf_ref[:, c:c + HD] = _mm(p, v_h)                       # assemble ctx in scratch
        # ONE full-K output projection (K = H = 128), not per-head folded K=HD matmuls
        attn = _mm(buf_ref[...], wao[...]) + bao[...]
        x1 = _layernorm(attn + x, ln1g[...], ln1b[...])
        ffh = _gelu(_mm(x1, wi[...]) + bi[...])
        x = _layernorm(_mm(ffh, wfo[...]) + bfo[...] + x1, ln2g[...], ln2b[...])

    # ---- classifier epilogue: CLS rows via strided sublane read (rows 0, S, 2S, ...) ----
    buf_ref[...] = x
    pooled = buf_ref[pl.ds(0, B, stride=S), :]                        # [B, H]
    ph = jnp.maximum(_mm(pooled, prew_ref[...]) + preb_ref[...], 0.0)
    # nn.Dropout(0.3) is identity at inference
    o_ref[...] = (_mm(ph, clsw_ref[...]) + clsb_ref[...]).astype(o_ref.dtype)  # [B, NC_PAD]


# --------------------------- model wrapper (glue in JAX) ---------------------------
def roberta_class_forward(params, input_ids, attention_mask, token_type_ids):
    # RoBERTa position ids: cumsum over non-pad tokens, offset by padding_idx
    not_pad = (input_ids != PAD_IDX).astype(jnp.int32)
    position_ids = jnp.cumsum(not_pad, axis=1) * not_pad + PAD_IDX

    # embedding gathers stay in XLA; the embedding LayerNorm is fused into the kernel
    emb = (params["word_emb"][input_ids]
           + params["pos_emb"][position_ids]
           + params["type_emb"][token_type_ids])                      # [B, S, H]
    x = emb.reshape(N_TOK, H)

    # tiny segment vectors (O(N)); the dense [N, N] mask is built in-kernel.
    # At real scale these would go through scalar prefetch / SMEM per (q-tile, k-tile).
    batch_ids = jnp.repeat(jnp.arange(B, dtype=jnp.int32), S)         # [N_TOK]
    kseg = jnp.where(attention_mask.reshape(-1).astype(jnp.int32) == 1,
                     batch_ids, -1).reshape(1, N_TOK).astype(jnp.int32)
    qseg = batch_ids.reshape(N_TOK, 1)

    ins = [x, qseg, kseg, params["emb_ln_g"], params["emb_ln_b"]]
    for lp in params["layers"]:
        ins += [lp["wqkv"], lp["bqkv"], lp["wao"], lp["bao"],
                lp["ln1_g"], lp["ln1_b"], lp["wi"], lp["bi"],
                lp["wfo"], lp["bfo"], lp["ln2_g"], lp["ln2_b"]]
    ins += [params["pre_w"], params["pre_b"], params["cls_w"], params["cls_b"]]

    # Single fused call, grid=(1,): whole working set (~1 MB of weights + a 16x128 activation)
    # lives in VMEM. At real scale: row-tile B*S with "parallel" semantics (v7x 2 TCs),
    # keep weights resident via constant index_maps, tile FFN dims, set vmem_limit_bytes.
    logits_pad = pl.pallas_call(
        _roberta_kernel,
        out_shape=jax.ShapeDtypeStruct((B, NC_PAD), jnp.float32),
        grid=(1,),
        in_specs=[pl.BlockSpec(a.shape, lambda i: (0, 0)) for a in ins],
        out_specs=pl.BlockSpec((B, NC_PAD), lambda i: (0, 0)),
        scratch_shapes=[pltpu.VMEM((N_TOK, H), jnp.float32)],
        compiler_params=pltpu.CompilerParams(dimension_semantics=("arbitrary",)),
    )(*ins)

    return logits_pad[:, :NUM_CLASSES]                                # [B, 5]


# --------------------------- parameter init (pre-fused layouts) ---------------------------
def init_params(key):
    def nrm(k, shape):
        return 0.02 * jax.random.normal(k, shape, jnp.float32)

    keys = iter(jax.random.split(key, 64))

    cls_w = jnp.zeros((H, NC_PAD), jnp.float32)
    cls_w = cls_w.at[:, :NUM_CLASSES].set(nrm(next(keys), (H, NUM_CLASSES)))

    p = {
        "word_emb": nrm(next(keys), (VOCAB, H)),
        "pos_emb": nrm(next(keys), (MAX_POS, H)),
        "type_emb": nrm(next(keys), (TYPE_VOCAB, H)),
        "emb_ln_g": jnp.ones((1, H), jnp.float32),
        "emb_ln_b": jnp.zeros((1, H), jnp.float32),
        "pre_w": nrm(next(keys), (H, H)),
        "pre_b": jnp.zeros((1, H), jnp.float32),
        "cls_w": cls_w,                               # zero-padded to lane-dense [H, 128]
        "cls_b": jnp.zeros((1, NC_PAD), jnp.float32),
        "layers": [],
    }
    for _ in range(L):
        p["layers"].append({
            "wqkv": nrm(next(keys), (H, 3 * H)),      # Wq|Wk|Wv fused ONCE at init
            "bqkv": jnp.zeros((1, 3 * H), jnp.float32),
            "wao": nrm(next(keys), (H, H)),
            "bao": jnp.zeros((1, H), jnp.float32),
            "ln1_g": jnp.ones((1, H), jnp.float32),
            "ln1_b": jnp.zeros((1, H), jnp.float32),
            "wi": nrm(next(keys), (H, I)),
            "bi": jnp.zeros((1, I), jnp.float32),
            "wfo": nrm(next(keys), (I, H)),
            "bfo": jnp.zeros((1, H), jnp.float32),
            "ln2_g": jnp.ones((1, H), jnp.float32),
            "ln2_b": jnp.zeros((1, H), jnp.float32),
        })
    return p


if __name__ == "__main__":
    root = jax.random.PRNGKey(0)
    pkey, ikey = jax.random.split(root)
    params = init_params(pkey)

    # deterministic example inputs (example 1 has 2 padded positions to exercise the mask)
    input_ids = jax.random.randint(ikey, (B, S), 2, VOCAB).astype(jnp.int32)
    input_ids = input_ids.at[:, 0].set(0)                  # <s> token at position 0
    input_ids = input_ids.at[1, S - 2:].set(PAD_IDX)
    attention_mask = jnp.ones((B, S), jnp.int32).at[1, S - 2:].set(0)
    token_type_ids = jnp.zeros((B, S), jnp.int32)

    logits = jax.jit(roberta_class_forward)(params, input_ids, attention_mask, token_type_ids)
    logits = jax.block_until_ready(logits)

    assert logits.shape == (B, NUM_CLASSES)
    assert bool(jnp.all(jnp.isfinite(logits)))
    print("KERNEL_OK")
</pallas_src>

<mosaic_0001>
module attributes {stable_mosaic.version = 11 : i64} {
  func.func @_roberta_kernel(%arg0: i32, %arg1: memref<16x128xf32, #tpu.memory_space<vmem>>, %arg2: memref<16x1xi32, #tpu.memory_space<vmem>>, %arg3: memref<1x16xi32, #tpu.memory_space<vmem>>, %arg4: memref<1x128xf32, #tpu.memory_space<vmem>>, %arg5: memref<1x128xf32, #tpu.memory_space<vmem>>, %arg6: memref<128x384xf32, #tpu.memory_space<vmem>>, %arg7: memref<1x384xf32, #tpu.memory_space<vmem>>, %arg8: memref<128x128xf32, #tpu.memory_space<vmem>>, %arg9: memref<1x128xf32, #tpu.memory_space<vmem>>, %arg10: memref<1x128xf32, #tpu.memory_space<vmem>>, %arg11: memref<1x128xf32, #tpu.memory_space<vmem>>, %arg12: memref<128x256xf32, #tpu.memory_space<vmem>>, %arg13: memref<1x256xf32, #tpu.memory_space<vmem>>, %arg14: memref<256x128xf32, #tpu.memory_space<vmem>>, %arg15: memref<1x128xf32, #tpu.memory_space<vmem>>, %arg16: memref<1x128xf32, #tpu.memory_space<vmem>>, %arg17: memref<1x128xf32, #tpu.memory_space<vmem>>, %arg18: memref<128x384xf32, #tpu.memory_space<vmem>>, %arg19: memref<1x384xf32, #tpu.memory_space<vmem>>, %arg20: memref<128x128xf32, #tpu.memory_space<vmem>>, %arg21: memref<1x128xf32, #tpu.memory_space<vmem>>, %arg22: memref<1x128xf32, #tpu.memory_space<vmem>>, %arg23: memref<1x128xf32, #tpu.memory_space<vmem>>, %arg24: memref<128x256xf32, #tpu.memory_space<vmem>>, %arg25: memref<1x256xf32, #tpu.memory_space<vmem>>, %arg26: memref<256x128xf32, #tpu.memory_space<vmem>>, %arg27: memref<1x128xf32, #tpu.memory_space<vmem>>, %arg28: memref<1x128xf32, #tpu.memory_space<vmem>>, %arg29: memref<1x128xf32, #tpu.memory_space<vmem>>, %arg30: memref<128x128xf32, #tpu.memory_space<vmem>>, %arg31: memref<1x128xf32, #tpu.memory_space<vmem>>, %arg32: memref<128x128xf32, #tpu.memory_space<vmem>>, %arg33: memref<1x128xf32, #tpu.memory_space<vmem>>, %arg34: memref<2x128xf32, #tpu.memory_space<vmem>>, %arg35: memref<16x128xf32, #tpu.memory_space<vmem>>) attributes {dimension_semantics = [#tpu.dimension_semantics<arbitrary>], iteration_bounds = array<i64: 1>, scalar_prefetch = 0 : i64, scratch_operands = 1 : i64, tpu.core_type = #tpu.core_type<tc>, window_params = [{pipeline_mode = #tpu.pipeline_mode<synchronous>, transform_indices = @transform_0, window_bounds = array<i64: 16, 128>}, {pipeline_mode = #tpu.pipeline_mode<synchronous>, transform_indices = @transform_1, window_bounds = array<i64: 16, 1>}, {pipeline_mode = #tpu.pipeline_mode<synchronous>, transform_indices = @transform_2, window_bounds = array<i64: 1, 16>}, {pipeline_mode = #tpu.pipeline_mode<synchronous>, transform_indices = @transform_3, window_bounds = array<i64: 1, 128>}, {pipeline_mode = #tpu.pipeline_mode<synchronous>, transform_indices = @transform_4, window_bounds = array<i64: 1, 128>}, {pipeline_mode = #tpu.pipeline_mode<synchronous>, transform_indices = @transform_5, window_bounds = array<i64: 128, 384>}, {pipeline_mode = #tpu.pipeline_mode<synchronous>, transform_indices = @transform_6, window_bounds = array<i64: 1, 384>}, {pipeline_mode = #tpu.pipeline_mode<synchronous>, transform_indices = @transform_7, window_bounds = array<i64: 128, 128>}, {pipeline_mode = #tpu.pipeline_mode<synchronous>, transform_indices = @transform_8, window_bounds = array<i64: 1, 128>}, {pipeline_mode = #tpu.pipeline_mode<synchronous>, transform_indices = @transform_9, window_bounds = array<i64: 1, 128>}, {pipeline_mode = #tpu.pipeline_mode<synchronous>, transform_indices = @transform_10, window_bounds = array<i64: 1, 128>}, {pipeline_mode = #tpu.pipeline_mode<synchronous>, transform_indices = @transform_11, window_bounds = array<i64: 128, 256>}, {pipeline_mode = #tpu.pipeline_mode<synchronous>, transform_indices = @transform_12, window_bounds = array<i64: 1, 256>}, {pipeline_mode = #tpu.pipeline_mode<synchronous>, transform_indices = @transform_13, window_bounds = array<i64: 256, 128>}, {pipeline_mode = #tpu.pipeline_mode<synchronous>, transform_indices = @transform_14, window_bounds = array<i64: 1, 128>}, {pipeline_mode = #tpu.pipeline_mode<synchronous>, transform_indices = @transform_15, window_bounds = array<i64: 1, 128>}, {pipeline_mode = #tpu.pipeline_mode<synchronous>, transform_indices = @transform_16, window_bounds = array<i64: 1, 128>}, {pipeline_mode = #tpu.pipeline_mode<synchronous>, transform_indices = @transform_17, window_bounds = array<i64: 128, 384>}, {pipeline_mode = #tpu.pipeline_mode<synchronous>, transform_indices = @transform_18, window_bounds = array<i64: 1, 384>}, {pipeline_mode = #tpu.pipeline_mode<synchronous>, transform_indices = @transform_19, window_bounds = array<i64: 128, 128>}, {pipeline_mode = #tpu.pipeline_mode<synchronous>, transform_indices = @transform_20, window_bounds = array<i64: 1, 128>}, {pipeline_mode = #tpu.pipeline_mode<synchronous>, transform_indices = @transform_21, window_bounds = array<i64: 1, 128>}, {pipeline_mode = #tpu.pipeline_mode<synchronous>, transform_indices = @transform_22, window_bounds = array<i64: 1, 128>}, {pipeline_mode = #tpu.pipeline_mode<synchronous>, transform_indices = @transform_23, window_bounds = array<i64: 128, 256>}, {pipeline_mode = #tpu.pipeline_mode<synchronous>, transform_indices = @transform_24, window_bounds = array<i64: 1, 256>}, {pipeline_mode = #tpu.pipeline_mode<synchronous>, transform_indices = @transform_25, window_bounds = array<i64: 256, 128>}, {pipeline_mode = #tpu.pipeline_mode<synchronous>, transform_indices = @transform_26, window_bounds = array<i64: 1, 128>}, {pipeline_mode = #tpu.pipeline_mode<synchronous>, transform_indices = @transform_27, window_bounds = array<i64: 1, 128>}, {pipeline_mode = #tpu.pipeline_mode<synchronous>, transform_indices = @transform_28, window_bounds = array<i64: 1, 128>}, {pipeline_mode = #tpu.pipeline_mode<synchronous>, transform_indices = @transform_29, window_bounds = array<i64: 128, 128>}, {pipeline_mode = #tpu.pipeline_mode<synchronous>, transform_indices = @transform_30, window_bounds = array<i64: 1, 128>}, {pipeline_mode = #tpu.pipeline_mode<synchronous>, transform_indices = @transform_31, window_bounds = array<i64: 128, 128>}, {pipeline_mode = #tpu.pipeline_mode<synchronous>, transform_indices = @transform_32, window_bounds = array<i64: 1, 128>}, {pipeline_mode = #tpu.pipeline_mode<synchronous>, transform_indices = @transform_33, window_bounds = array<i64: 2, 128>}]} {
    %c0 = arith.constant 0 : index
    %c0_0 = arith.constant 0 : index
    %0 = vector.load %arg1[%c0, %c0_0] : memref<16x128xf32, #tpu.memory_space<vmem>>, vector<16x128xf32>
    %c0_1 = arith.constant 0 : index
    %c0_2 = arith.constant 0 : index
    %1 = vector.load %arg4[%c0_1, %c0_2] : memref<1x128xf32, #tpu.memory_space<vmem>>, vector<1x128xf32>
    %c0_3 = arith.constant 0 : index
    %c0_4 = arith.constant 0 : index
    %2 = vector.load %arg5[%c0_3, %c0_4] : memref<1x128xf32, #tpu.memory_space<vmem>>, vector<1x128xf32>
    %cst = arith.constant dense<0.000000e+00> : vector<16xf32>
    %3 = vector.multi_reduction <add>, %0, %cst [1] : vector<16x128xf32> to vector<16xf32>
    %4 = vector.shape_cast %3 : vector<16xf32> to vector<16x1xf32>
    %cst_5 = arith.constant 1.280000e+02 : f32
    %5 = vector.broadcast %cst_5 : f32 to vector<16x1xf32>
    %6 = arith.divf %4, %5 : vector<16x1xf32>
    %7 = vector.broadcast %6 : vector<16x1xf32> to vector<16x128xf32>
    %8 = arith.subf %0, %7 : vector<16x128xf32>
    %9 = arith.mulf %8, %8 : vector<16x128xf32>
    %cst_6 = arith.constant dense<0.000000e+00> : vector<16xf32>
    %10 = vector.multi_reduction <add>, %9, %cst_6 [1] : vector<16x128xf32> to vector<16xf32>
    %11 = vector.shape_cast %10 : vector<16xf32> to vector<16x1xf32>
    %cst_7 = arith.constant 1.280000e+02 : f32
    %12 = vector.broadcast %cst_7 : f32 to vector<16x1xf32>
    %13 = arith.divf %11, %12 : vector<16x1xf32>
    %cst_8 = arith.constant 9.99999974E-6 : f32
    %14 = vector.broadcast %cst_8 : f32 to vector<16x1xf32>
    %15 = arith.addf %13, %14 : vector<16x1xf32>
    %16 = math.rsqrt %15 : vector<16x1xf32>
    %17 = vector.broadcast %16 : vector<16x1xf32> to vector<16x128xf32>
    %18 = arith.mulf %8, %17 : vector<16x128xf32>
    %19 = vector.broadcast %1 : vector<1x128xf32> to vector<16x128xf32>
    %20 = arith.mulf %18, %19 : vector<16x128xf32>
    %21 = vector.broadcast %2 : vector<1x128xf32> to vector<16x128xf32>
    %22 = arith.addf %20, %21 : vector<16x128xf32>
    %c0_9 = arith.constant 0 : index
    %c0_10 = arith.constant 0 : index
    %23 = vector.load %arg2[%c0_9, %c0_10] : memref<16x1xi32, #tpu.memory_space<vmem>>, vector<16x1xi32>
    %c0_11 = arith.constant 0 : index
    %c0_12 = arith.constant 0 : index
    %24 = vector.load %arg3[%c0_11, %c0_12] : memref<1x16xi32, #tpu.memory_space<vmem>>, vector<1x16xi32>
    %25 = vector.broadcast %23 : vector<16x1xi32> to vector<16x16xi32>
    %26 = vector.broadcast %24 : vector<1x16xi32> to vector<16x16xi32>
    %27 = arith.cmpi eq, %25, %26 : vector<16x16xi32>
    %cst_13 = arith.constant 0.000000e+00 : f32
    %cst_14 = arith.constant -1.000000e+09 : f32
    %28 = vector.broadcast %cst_13 : f32 to vector<16x16xf32>
    %29 = vector.broadcast %cst_14 : f32 to vector<16x16xf32>
    %30 = arith.select %27, %28, %29 : vector<16x16xi1>, vector<16x16xf32>
    %c0_15 = arith.constant 0 : index
    %c0_16 = arith.constant 0 : index
    %31 = vector.load %arg6[%c0_15, %c0_16] : memref<128x384xf32, #tpu.memory_space<vmem>>, vector<128x384xf32>
    %cst_17 = arith.constant dense<0.000000e+00> : vector<16x384xf32>
    %32 = tpu.matmul %22, %31, %cst_17 {dimension_numbers = #tpu.dot_dimension_numbers<[1], [0], [0], [1], [0, 0, 1, 1], [], []>} : vector<16x128xf32>, vector<128x384xf32>, vector<16x384xf32> -> vector<16x384xf32>
    %c0_18 = arith.constant 0 : index
    %c0_19 = arith.constant 0 : index
    %33 = vector.load %arg7[%c0_18, %c0_19] : memref<1x384xf32, #tpu.memory_space<vmem>>, vector<1x384xf32>
    %34 = vector.broadcast %33 : vector<1x384xf32> to vector<16x384xf32>
    %35 = arith.addf %32, %34 : vector<16x384xf32>
    %36 = vector.extract_strided_slice %35 {offsets = [0, 0], sizes = [16, 32], strides = [1, 1]} : vector<16x384xf32> to vector<16x32xf32>
    %37 = vector.extract_strided_slice %35 {offsets = [0, 128], sizes = [16, 32], strides = [1, 1]} : vector<16x384xf32> to vector<16x32xf32>
    %38 = vector.extract_strided_slice %35 {offsets = [0, 256], sizes = [16, 32], strides = [1, 1]} : vector<16x384xf32> to vector<16x32xf32>
    %cst_20 = arith.constant dense<0.000000e+00> : vector<16x16xf32>
    %39 = tpu.matmul %36, %37, %cst_20 {dimension_numbers = #tpu.dot_dimension_numbers<[1], [1], [0], [0], [0, 0, 1, 0], [], []>} : vector<16x32xf32>, vector<16x32xf32>, vector<16x16xf32> -> vector<16x16xf32>
    %cst_21 = arith.constant 0.176776692 : f32
    %40 = vector.broadcast %cst_21 : f32 to vector<16x16xf32>
    %41 = arith.mulf %39, %40 : vector<16x16xf32>
    %42 = arith.addf %41, %30 : vector<16x16xf32>
    %cst_22 = arith.constant dense<0xFF800000> : vector<16xf32>
    %43 = vector.multi_reduction <maximumf>, %42, %cst_22 [1] : vector<16x16xf32> to vector<16xf32>
    %44 = vector.shape_cast %43 : vector<16xf32> to vector<16x1xf32>
    %45 = vector.broadcast %44 : vector<16x1xf32> to vector<16x16xf32>
    %46 = arith.subf %42, %45 : vector<16x16xf32>
    %47 = math.exp %46 : vector<16x16xf32>
    %cst_23 = arith.constant dense<0.000000e+00> : vector<16xf32>
    %48 = vector.multi_reduction <add>, %47, %cst_23 [1] : vector<16x16xf32> to vector<16xf32>
    %49 = vector.shape_cast %48 : vector<16xf32> to vector<16x1xf32>
    %50 = tpu.reciprocal %49 {approx = true} : vector<16x1xf32> -> vector<16x1xf32>
    %51 = vector.broadcast %50 : vector<16x1xf32> to vector<16x16xf32>
    %52 = arith.mulf %47, %51 : vector<16x16xf32>
    %cst_24 = arith.constant dense<0.000000e+00> : vector<16x32xf32>
    %53 = tpu.matmul %52, %38, %cst_24 {dimension_numbers = #tpu.dot_dimension_numbers<[1], [0], [0], [1], [0, 0, 1, 1], [], []>} : vector<16x16xf32>, vector<16x32xf32>, vector<16x32xf32> -> vector<16x32xf32>
    %c0_25 = arith.constant 0 : index
    %c0_26 = arith.constant 0 : index
    %54 = vector.load %arg35[%c0_25, %c0_26] : memref<16x128xf32, #tpu.memory_space<vmem>>, vector<16x32xf32>
    tpu.vector_store %arg35[%c0_25, %c0_26], %53 {strides = array<i32>} : memref<16x128xf32, #tpu.memory_space<vmem>>, vector<16x32xf32>,
    %55 = vector.extract_strided_slice %35 {offsets = [0, 32], sizes = [16, 32], strides = [1, 1]} : vector<16x384xf32> to vector<16x32xf32>
    %56 = vector.extract_strided_slice %35 {offsets = [0, 160], sizes = [16, 32], strides = [1, 1]} : vector<16x384xf32> to vector<16x32xf32>
    %57 = vector.extract_strided_slice %35 {offsets = [0, 288], sizes = [16, 32], strides = [1, 1]} : vector<16x384xf32> to vector<16x32xf32>
    %cst_27 = arith.constant dense<0.000000e+00> : vector<16x16xf32>
    %58 = tpu.matmul %55, %56, %cst_27 {dimension_numbers = #tpu.dot_dimension_numbers<[1], [1], [0], [0], [0, 0, 1, 0], [], []>} : vector<16x32xf32>, vector<16x32xf32>, vector<16x16xf32> -> vector<16x16xf32>
    %cst_28 = arith.constant 0.176776692 : f32
    %59 = vector.broadcast %cst_28 : f32 to vector<16x16xf32>
    %60 = arith.mulf %58, %59 : vector<16x16xf32>
    %61 = arith.addf %60, %30 : vector<16x16xf32>
    %cst_29 = arith.constant dense<0xFF800000> : vector<16xf32>
    %62 = vector.multi_reduction <maximumf>, %61, %cst_29 [1] : vector<16x16xf32> to vector<16xf32>
    %63 = vector.shape_cast %62 : vector<16xf32> to vector<16x1xf32>
    %64 = vector.broadcast %63 : vector<16x1xf32> to vector<16x16xf32>
    %65 = arith.subf %61, %64 : vector<16x16xf32>
    %66 = math.exp %65 : vector<16x16xf32>
    %cst_30 = arith.constant dense<0.000000e+00> : vector<16xf32>
    %67 = vector.multi_reduction <add>, %66, %cst_30 [1] : vector<16x16xf32> to vector<16xf32>
    %68 = vector.shape_cast %67 : vector<16xf32> to vector<16x1xf32>
    %69 = tpu.reciprocal %68 {approx = true} : vector<16x1xf32> -> vector<16x1xf32>
    %70 = vector.broadcast %69 : vector<16x1xf32> to vector<16x16xf32>
    %71 = arith.mulf %66, %70 : vector<16x16xf32>
    %cst_31 = arith.constant dense<0.000000e+00> : vector<16x32xf32>
    %72 = tpu.matmul %71, %57, %cst_31 {dimension_numbers = #tpu.dot_dimension_numbers<[1], [0], [0], [1], [0, 0, 1, 1], [], []>} : vector<16x16xf32>, vector<16x32xf32>, vector<16x32xf32> -> vector<16x32xf32>
    %c0_32 = arith.constant 0 : index
    %c32 = arith.constant 32 : index
    %73 = vector.load %arg35[%c0_32, %c32] : memref<16x128xf32, #tpu.memory_space<vmem>>, vector<16x32xf32>
    tpu.vector_store %arg35[%c0_32, %c32], %72 {strides = array<i32>} : memref<16x128xf32, #tpu.memory_space<vmem>>, vector<16x32xf32>,
    %74 = vector.extract_strided_slice %35 {offsets = [0, 64], sizes = [16, 32], strides = [1, 1]} : vector<16x384xf32> to vector<16x32xf32>
    %75 = vector.extract_strided_slice %35 {offsets = [0, 192], sizes = [16, 32], strides = [1, 1]} : vector<16x384xf32> to vector<16x32xf32>
    %76 = vector.extract_strided_slice %35 {offsets = [0, 320], sizes = [16, 32], strides = [1, 1]} : vector<16x384xf32> to vector<16x32xf32>
    %cst_33 = arith.constant dense<0.000000e+00> : vector<16x16xf32>
    %77 = tpu.matmul %74, %75, %cst_33 {dimension_numbers = #tpu.dot_dimension_numbers<[1], [1], [0], [0], [0, 0, 1, 0], [], []>} : vector<16x32xf32>, vector<16x32xf32>, vector<16x16xf32> -> vector<16x16xf32>
    %cst_34 = arith.constant 0.176776692 : f32
    %78 = vector.broadcast %cst_34 : f32 to vector<16x16xf32>
    %79 = arith.mulf %77, %78 : vector<16x16xf32>
    %80 = arith.addf %79, %30 : vector<16x16xf32>
    %cst_35 = arith.constant dense<0xFF800000> : vector<16xf32>
    %81 = vector.multi_reduction <maximumf>, %80, %cst_35 [1] : vector<16x16xf32> to vector<16xf32>
    %82 = vector.shape_cast %81 : vector<16xf32> to vector<16x1xf32>
    %83 = vector.broadcast %82 : vector<16x1xf32> to vector<16x16xf32>
    %84 = arith.subf %80, %83 : vector<16x16xf32>
    %85 = math.exp %84 : vector<16x16xf32>
    %cst_36 = arith.constant dense<0.000000e+00> : vector<16xf32>
    %86 = vector.multi_reduction <add>, %85, %cst_36 [1] : vector<16x16xf32> to vector<16xf32>
    %87 = vector.shape_cast %86 : vector<16xf32> to vector<16x1xf32>
    %88 = tpu.reciprocal %87 {approx = true} : vector<16x1xf32> -> vector<16x1xf32>
    %89 = vector.broadcast %88 : vector<16x1xf32> to vector<16x16xf32>
    %90 = arith.mulf %85, %89 : vector<16x16xf32>
    %cst_37 = arith.constant dense<0.000000e+00> : vector<16x32xf32>
    %91 = tpu.matmul %90, %76, %cst_37 {dimension_numbers = #tpu.dot_dimension_numbers<[1], [0], [0], [1], [0, 0, 1, 1], [], []>} : vector<16x16xf32>, vector<16x32xf32>, vector<16x32xf32> -> vector<16x32xf32>
    %c0_38 = arith.constant 0 : index
    %c64 = arith.constant 64 : index
    %92 = vector.load %arg35[%c0_38, %c64] : memref<16x128xf32, #tpu.memory_space<vmem>>, vector<16x32xf32>
    tpu.vector_store %arg35[%c0_38, %c64], %91 {strides = array<i32>} : memref<16x128xf32, #tpu.memory_space<vmem>>, vector<16x32xf32>,
    %93 = vector.extract_strided_slice %35 {offsets = [0, 96], sizes = [16, 32], strides = [1, 1]} : vector<16x384xf32> to vector<16x32xf32>
    %94 = vector.extract_strided_slice %35 {offsets = [0, 224], sizes = [16, 32], strides = [1, 1]} : vector<16x384xf32> to vector<16x32xf32>
    %95 = vector.extract_strided_slice %35 {offsets = [0, 352], sizes = [16, 32], strides = [1, 1]} : vector<16x384xf32> to vector<16x32xf32>
    %cst_39 = arith.constant dense<0.000000e+00> : vector<16x16xf32>
    %96 = tpu.matmul %93, %94, %cst_39 {dimension_numbers = #tpu.dot_dimension_numbers<[1], [1], [0], [0], [0, 0, 1, 0], [], []>} : vector<16x32xf32>, vector<16x32xf32>, vector<16x16xf32> -> vector<16x16xf32>
    %cst_40 = arith.constant 0.176776692 : f32
    %97 = vector.broadcast %cst_40 : f32 to vector<16x16xf32>
    %98 = arith.mulf %96, %97 : vector<16x16xf32>
    %99 = arith.addf %98, %30 : vector<16x16xf32>
    %cst_41 = arith.constant dense<0xFF800000> : vector<16xf32>
    %100 = vector.multi_reduction <maximumf>, %99, %cst_41 [1] : vector<16x16xf32> to vector<16xf32>
    %101 = vector.shape_cast %100 : vector<16xf32> to vector<16x1xf32>
    %102 = vector.broadcast %101 : vector<16x1xf32> to vector<16x16xf32>
    %103 = arith.subf %99, %102 : vector<16x16xf32>
    %104 = math.exp %103 : vector<16x16xf32>
    %cst_42 = arith.constant dense<0.000000e+00> : vector<16xf32>
    %105 = vector.multi_reduction <add>, %104, %cst_42 [1] : vector<16x16xf32> to vector<16xf32>
    %106 = vector.shape_cast %105 : vector<16xf32> to vector<16x1xf32>
    %107 = tpu.reciprocal %106 {approx = true} : vector<16x1xf32> -> vector<16x1xf32>
    %108 = vector.broadcast %107 : vector<16x1xf32> to vector<16x16xf32>
    %109 = arith.mulf %104, %108 : vector<16x16xf32>
    %cst_43 = arith.constant dense<0.000000e+00> : vector<16x32xf32>
    %110 = tpu.matmul %109, %95, %cst_43 {dimension_numbers = #tpu.dot_dimension_numbers<[1], [0], [0], [1], [0, 0, 1, 1], [], []>} : vector<16x16xf32>, vector<16x32xf32>, vector<16x32xf32> -> vector<16x32xf32>
    %c0_44 = arith.constant 0 : index
    %c96 = arith.constant 96 : index
    %111 = vector.load %arg35[%c0_44, %c96] : memref<16x128xf32, #tpu.memory_space<vmem>>, vector<16x32xf32>
    tpu.vector_store %arg35[%c0_44, %c96], %110 {strides = array<i32>} : memref<16x128xf32, #tpu.memory_space<vmem>>, vector<16x32xf32>,
    %c0_45 = arith.constant 0 : index
    %c0_46 = arith.constant 0 : index
    %112 = vector.load %arg35[%c0_45, %c0_46] : memref<16x128xf32, #tpu.memory_space<vmem>>, vector<16x128xf32>
    %c0_47 = arith.constant 0 : index
    %c0_48 = arith.constant 0 : index
    %113 = vector.load %arg8[%c0_47, %c0_48] : memref<128x128xf32, #tpu.memory_space<vmem>>, vector<128x128xf32>
    %cst_49 = arith.constant dense<0.000000e+00> : vector<16x128xf32>
    %114 = tpu.matmul %112, %113, %cst_49 {dimension_numbers = #tpu.dot_dimension_numbers<[1], [0], [0], [1], [0, 0, 1, 1], [], []>} : vector<16x128xf32>, vector<128x128xf32>, vector<16x128xf32> -> vector<16x128xf32>
    %c0_50 = arith.constant 0 : index
    %c0_51 = arith.constant 0 : index
    %115 = vector.load %arg9[%c0_50, %c0_51] : memref<1x128xf32, #tpu.memory_space<vmem>>, vector<1x128xf32>
    %116 = vector.broadcast %115 : vector<1x128xf32> to vector<16x128xf32>
    %117 = arith.addf %114, %116 : vector<16x128xf32>
    %118 = arith.addf %117, %22 : vector<16x128xf32>
    %c0_52 = arith.constant 0 : index
    %c0_53 = arith.constant 0 : index
    %119 = vector.load %arg10[%c0_52, %c0_53] : memref<1x128xf32, #tpu.memory_space<vmem>>, vector<1x128xf32>
    %c0_54 = arith.constant 0 : index
    %c0_55 = arith.constant 0 : index
    %120 = vector.load %arg11[%c0_54, %c0_55] : memref<1x128xf32, #tpu.memory_space<vmem>>, vector<1x128xf32>
    %cst_56 = arith.constant dense<0.000000e+00> : vector<16xf32>
    %121 = vector.multi_reduction <add>, %118, %cst_56 [1] : vector<16x128xf32> to vector<16xf32>
    %122 = vector.shape_cast %121 : vector<16xf32> to vector<16x1xf32>
    %cst_57 = arith.constant 1.280000e+02 : f32
    %123 = vector.broadcast %cst_57 : f32 to vector<16x1xf32>
    %124 = arith.divf %122, %123 : vector<16x1xf32>
    %125 = vector.broadcast %124 : vector<16x1xf32> to vector<16x128xf32>
    %126 = arith.subf %118, %125 : vector<16x128xf32>
    %127 = arith.mulf %126, %126 : vector<16x128xf32>
    %cst_58 = arith.constant dense<0.000000e+00> : vector<16xf32>
    %128 = vector.multi_reduction <add>, %127, %cst_58 [1] : vector<16x128xf32> to vector<16xf32>
    %129 = vector.shape_cast %128 : vector<16xf32> to vector<16x1xf32>
    %cst_59 = arith.constant 1.280000e+02 : f32
    %130 = vector.broadcast %cst_59 : f32 to vector<16x1xf32>
    %131 = arith.divf %129, %130 : vector<16x1xf32>
    %cst_60 = arith.constant 9.99999974E-6 : f32
    %132 = vector.broadcast %cst_60 : f32 to vector<16x1xf32>
    %133 = arith.addf %131, %132 : vector<16x1xf32>
    %134 = math.rsqrt %133 : vector<16x1xf32>
    %135 = vector.broadcast %134 : vector<16x1xf32> to vector<16x128xf32>
    %136 = arith.mulf %126, %135 : vector<16x128xf32>
    %137 = vector.broadcast %119 : vector<1x128xf32> to vector<16x128xf32>
    %138 = arith.mulf %136, %137 : vector<16x128xf32>
    %139 = vector.broadcast %120 : vector<1x128xf32> to vector<16x128xf32>
    %140 = arith.addf %138, %139 : vector<16x128xf32>
    %c0_61 = arith.constant 0 : index
    %c0_62 = arith.constant 0 : index
    %141 = vector.load %arg12[%c0_61, %c0_62] : memref<128x256xf32, #tpu.memory_space<vmem>>, vector<128x256xf32>
    %cst_63 = arith.constant dense<0.000000e+00> : vector<16x256xf32>
    %142 = tpu.matmul %140, %141, %cst_63 {dimension_numbers = #tpu.dot_dimension_numbers<[1], [0], [0], [1], [0, 0, 1, 1], [], []>} : vector<16x128xf32>, vector<128x256xf32>, vector<16x256xf32> -> vector<16x256xf32>
    %c0_64 = arith.constant 0 : index
    %c0_65 = arith.constant 0 : index
    %143 = vector.load %arg13[%c0_64, %c0_65] : memref<1x256xf32, #tpu.memory_space<vmem>>, vector<1x256xf32>
    %144 = vector.broadcast %143 : vector<1x256xf32> to vector<16x256xf32>
    %145 = arith.addf %142, %144 : vector<16x256xf32>
    %cst_66 = arith.constant 5.000000e-01 : f32
    %146 = vector.broadcast %cst_66 : f32 to vector<16x256xf32>
    %147 = arith.mulf %146, %145 : vector<16x256xf32>
    %cst_67 = arith.constant 4.471500e-02 : f32
    %148 = vector.broadcast %cst_67 : f32 to vector<16x256xf32>
    %149 = arith.mulf %148, %145 : vector<16x256xf32>
    %150 = arith.mulf %149, %145 : vector<16x256xf32>
    %151 = arith.mulf %150, %145 : vector<16x256xf32>
    %152 = arith.addf %145, %151 : vector<16x256xf32>
    %cst_68 = arith.constant 0.797884583 : f32
    %153 = vector.broadcast %cst_68 : f32 to vector<16x256xf32>
    %154 = arith.mulf %153, %152 : vector<16x256xf32>
    %155 = math.tanh %154 : vector<16x256xf32>
    %cst_69 = arith.constant 1.000000e+00 : f32
    %156 = vector.broadcast %cst_69 : f32 to vector<16x256xf32>
    %157 = arith.addf %156, %155 : vector<16x256xf32>
    %158 = arith.mulf %147, %157 : vector<16x256xf32>
    %c0_70 = arith.constant 0 : index
    %c0_71 = arith.constant 0 : index
    %159 = vector.load %arg14[%c0_70, %c0_71] : memref<256x128xf32, #tpu.memory_space<vmem>>, vector<256x128xf32>
    %cst_72 = arith.constant dense<0.000000e+00> : vector<16x128xf32>
    %160 = tpu.matmul %158, %159, %cst_72 {dimension_numbers = #tpu.dot_dimension_numbers<[1], [0], [0], [1], [0, 0, 1, 1], [], []>} : vector<16x256xf32>, vector<256x128xf32>, vector<16x128xf32> -> vector<16x128xf32>
    %c0_73 = arith.constant 0 : index
    %c0_74 = arith.constant 0 : index
    %161 = vector.load %arg15[%c0_73, %c0_74] : memref<1x128xf32, #tpu.memory_space<vmem>>, vector<1x128xf32>
    %162 = vector.broadcast %161 : vector<1x128xf32> to vector<16x128xf32>
    %163 = arith.addf %160, %162 : vector<16x128xf32>
    %164 = arith.addf %163, %140 : vector<16x128xf32>
    %c0_75 = arith.constant 0 : index
    %c0_76 = arith.constant 0 : index
    %165 = vector.load %arg16[%c0_75, %c0_76] : memref<1x128xf32, #tpu.memory_space<vmem>>, vector<1x128xf32>
    %c0_77 = arith.constant 0 : index
    %c0_78 = arith.constant 0 : index
    %166 = vector.load %arg17[%c0_77, %c0_78] : memref<1x128xf32, #tpu.memory_space<vmem>>, vector<1x128xf32>
    %cst_79 = arith.constant dense<0.000000e+00> : vector<16xf32>
    %167 = vector.multi_reduction <add>, %164, %cst_79 [1] : vector<16x128xf32> to vector<16xf32>
    %168 = vector.shape_cast %167 : vector<16xf32> to vector<16x1xf32>
    %cst_80 = arith.constant 1.280000e+02 : f32
    %169 = vector.broadcast %cst_80 : f32 to vector<16x1xf32>
    %170 = arith.divf %168, %169 : vector<16x1xf32>
    %171 = vector.broadcast %170 : vector<16x1xf32> to vector<16x128xf32>
    %172 = arith.subf %164, %171 : vector<16x128xf32>
    %173 = arith.mulf %172, %172 : vector<16x128xf32>
    %cst_81 = arith.constant dense<0.000000e+00> : vector<16xf32>
    %174 = vector.multi_reduction <add>, %173, %cst_81 [1] : vector<16x128xf32> to vector<16xf32>
    %175 = vector.shape_cast %174 : vector<16xf32> to vector<16x1xf32>
    %cst_82 = arith.constant 1.280000e+02 : f32
    %176 = vector.broadcast %cst_82 : f32 to vector<16x1xf32>
    %177 = arith.divf %175, %176 : vector<16x1xf32>
    %cst_83 = arith.constant 9.99999974E-6 : f32
    %178 = vector.broadcast %cst_83 : f32 to vector<16x1xf32>
    %179 = arith.addf %177, %178 : vector<16x1xf32>
    %180 = math.rsqrt %179 : vector<16x1xf32>
    %181 = vector.broadcast %180 : vector<16x1xf32> to vector<16x128xf32>
    %182 = arith.mulf %172, %181 : vector<16x128xf32>
    %183 = vector.broadcast %165 : vector<1x128xf32> to vector<16x128xf32>
    %184 = arith.mulf %182, %183 : vector<16x128xf32>
    %185 = vector.broadcast %166 : vector<1x128xf32> to vector<16x128xf32>
    %186 = arith.addf %184, %185 : vector<16x128xf32>
    %c0_84 = arith.constant 0 : index
    %c0_85 = arith.constant 0 : index
    %187 = vector.load %arg18[%c0_84, %c0_85] : memref<128x384xf32, #tpu.memory_space<vmem>>, vector<128x384xf32>
    %cst_86 = arith.constant dense<0.000000e+00> : vector<16x384xf32>
    %188 = tpu.matmul %186, %187, %cst_86 {dimension_numbers = #tpu.dot_dimension_numbers<[1], [0], [0], [1], [0, 0, 1, 1], [], []>} : vector<16x128xf32>, vector<128x384xf32>, vector<16x384xf32> -> vector<16x384xf32>
    %c0_87 = arith.constant 0 : index
    %c0_88 = arith.constant 0 : index
    %189 = vector.load %arg19[%c0_87, %c0_88] : memref<1x384xf32, #tpu.memory_space<vmem>>, vector<1x384xf32>
    %190 = vector.broadcast %189 : vector<1x384xf32> to vector<16x384xf32>
    %191 = arith.addf %188, %190 : vector<16x384xf32>
    %192 = vector.extract_strided_slice %191 {offsets = [0, 0], sizes = [16, 32], strides = [1, 1]} : vector<16x384xf32> to vector<16x32xf32>
    %193 = vector.extract_strided_slice %191 {offsets = [0, 128], sizes = [16, 32], strides = [1, 1]} : vector<16x384xf32> to vector<16x32xf32>
    %194 = vector.extract_strided_slice %191 {offsets = [0, 256], sizes = [16, 32], strides = [1, 1]} : vector<16x384xf32> to vector<16x32xf32>
    %cst_89 = arith.constant dense<0.000000e+00> : vector<16x16xf32>
    %195 = tpu.matmul %192, %193, %cst_89 {dimension_numbers = #tpu.dot_dimension_numbers<[1], [1], [0], [0], [0, 0, 1, 0], [], []>} : vector<16x32xf32>, vector<16x32xf32>, vector<16x16xf32> -> vector<16x16xf32>
    %cst_90 = arith.constant 0.176776692 : f32
    %196 = vector.broadcast %cst_90 : f32 to vector<16x16xf32>
    %197 = arith.mulf %195, %196 : vector<16x16xf32>
    %198 = arith.addf %197, %30 : vector<16x16xf32>
    %cst_91 = arith.constant dense<0xFF800000> : vector<16xf32>
    %199 = vector.multi_reduction <maximumf>, %198, %cst_91 [1] : vector<16x16xf32> to vector<16xf32>
    %200 = vector.shape_cast %199 : vector<16xf32> to vector<16x1xf32>
    %201 = vector.broadcast %200 : vector<16x1xf32> to vector<16x16xf32>
    %202 = arith.subf %198, %201 : vector<16x16xf32>
    %203 = math.exp %202 : vector<16x16xf32>
    %cst_92 = arith.constant dense<0.000000e+00> : vector<16xf32>
    %204 = vector.multi_reduction <add>, %203, %cst_92 [1] : vector<16x16xf32> to vector<16xf32>
    %205 = vector.shape_cast %204 : vector<16xf32> to vector<16x1xf32>
    %206 = tpu.reciprocal %205 {approx = true} : vector<16x1xf32> -> vector<16x1xf32>
    %207 = vector.broadcast %206 : vector<16x1xf32> to vector<16x16xf32>
    %208 = arith.mulf %203, %207 : vector<16x16xf32>
    %cst_93 = arith.constant dense<0.000000e+00> : vector<16x32xf32>
    %209 = tpu.matmul %208, %194, %cst_93 {dimension_numbers = #tpu.dot_dimension_numbers<[1], [0], [0], [1], [0, 0, 1, 1], [], []>} : vector<16x16xf32>, vector<16x32xf32>, vector<16x32xf32> -> vector<16x32xf32>
    %c0_94 = arith.constant 0 : index
    %c0_95 = arith.constant 0 : index
    %210 = vector.load %arg35[%c0_94, %c0_95] : memref<16x128xf32, #tpu.memory_space<vmem>>, vector<16x32xf32>
    tpu.vector_store %arg35[%c0_94, %c0_95], %209 {strides = array<i32>} : memref<16x128xf32, #tpu.memory_space<vmem>>, vector<16x32xf32>,
    %211 = vector.extract_strided_slice %191 {offsets = [0, 32], sizes = [16, 32], strides = [1, 1]} : vector<16x384xf32> to vector<16x32xf32>
    %212 = vector.extract_strided_slice %191 {offsets = [0, 160], sizes = [16, 32], strides = [1, 1]} : vector<16x384xf32> to vector<16x32xf32>
    %213 = vector.extract_strided_slice %191 {offsets = [0, 288], sizes = [16, 32], strides = [1, 1]} : vector<16x384xf32> to vector<16x32xf32>
    %cst_96 = arith.constant dense<0.000000e+00> : vector<16x16xf32>
    %214 = tpu.matmul %211, %212, %cst_96 {dimension_numbers = #tpu.dot_dimension_numbers<[1], [1], [0], [0], [0, 0, 1, 0], [], []>} : vector<16x32xf32>, vector<16x32xf32>, vector<16x16xf32> -> vector<16x16xf32>
    %cst_97 = arith.constant 0.176776692 : f32
    %215 = vector.broadcast %cst_97 : f32 to vector<16x16xf32>
    %216 = arith.mulf %214, %215 : vector<16x16xf32>
    %217 = arith.addf %216, %30 : vector<16x16xf32>
    %cst_98 = arith.constant dense<0xFF800000> : vector<16xf32>
    %218 = vector.multi_reduction <maximumf>, %217, %cst_98 [1] : vector<16x16xf32> to vector<16xf32>
    %219 = vector.shape_cast %218 : vector<16xf32> to vector<16x1xf32>
    %220 = vector.broadcast %219 : vector<16x1xf32> to vector<16x16xf32>
    %221 = arith.subf %217, %220 : vector<16x16xf32>
    %222 = math.exp %221 : vector<16x16xf32>
    %cst_99 = arith.constant dense<0.000000e+00> : vector<16xf32>
    %223 = vector.multi_reduction <add>, %222, %cst_99 [1] : vector<16x16xf32> to vector<16xf32>
    %224 = vector.shape_cast %223 : vector<16xf32> to vector<16x1xf32>
    %225 = tpu.reciprocal %224 {approx = true} : vector<16x1xf32> -> vector<16x1xf32>
    %226 = vector.broadcast %225 : vector<16x1xf32> to vector<16x16xf32>
    %227 = arith.mulf %222, %226 : vector<16x16xf32>
    %cst_100 = arith.constant dense<0.000000e+00> : vector<16x32xf32>
    %228 = tpu.matmul %227, %213, %cst_100 {dimension_numbers = #tpu.dot_dimension_numbers<[1], [0], [0], [1], [0, 0, 1, 1], [], []>} : vector<16x16xf32>, vector<16x32xf32>, vector<16x32xf32> -> vector<16x32xf32>
    %c0_101 = arith.constant 0 : index
    %c32_102 = arith.constant 32 : index
    %229 = vector.load %arg35[%c0_101, %c32_102] : memref<16x128xf32, #tpu.memory_space<vmem>>, vector<16x32xf32>
    tpu.vector_store %arg35[%c0_101, %c32_102], %228 {strides = array<i32>} : memref<16x128xf32, #tpu.memory_space<vmem>>, vector<16x32xf32>,
    %230 = vector.extract_strided_slice %191 {offsets = [0, 64], sizes = [16, 32], strides = [1, 1]} : vector<16x384xf32> to vector<16x32xf32>
    %231 = vector.extract_strided_slice %191 {offsets = [0, 192], sizes = [16, 32], strides = [1, 1]} : vector<16x384xf32> to vector<16x32xf32>
    %232 = vector.extract_strided_slice %191 {offsets = [0, 320], sizes = [16, 32], strides = [1, 1]} : vector<16x384xf32> to vector<16x32xf32>
    %cst_103 = arith.constant dense<0.000000e+00> : vector<16x16xf32>
    %233 = tpu.matmul %230, %231, %cst_103 {dimension_numbers = #tpu.dot_dimension_numbers<[1], [1], [0], [0], [0, 0, 1, 0], [], []>} : vector<16x32xf32>, vector<16x32xf32>, vector<16x16xf32> -> vector<16x16xf32>
    %cst_104 = arith.constant 0.176776692 : f32
    %234 = vector.broadcast %cst_104 : f32 to vector<16x16xf32>
    %235 = arith.mulf %233, %234 : vector<16x16xf32>
    %236 = arith.addf %235, %30 : vector<16x16xf32>
    %cst_105 = arith.constant dense<0xFF800000> : vector<16xf32>
    %237 = vector.multi_reduction <maximumf>, %236, %cst_105 [1] : vector<16x16xf32> to vector<16xf32>
    %238 = vector.shape_cast %237 : vector<16xf32> to vector<16x1xf32>
    %239 = vector.broadcast %238 : vector<16x1xf32> to vector<16x16xf32>
    %240 = arith.subf %236, %239 : vector<16x16xf32>
    %241 = math.exp %240 : vector<16x16xf32>
    %cst_106 = arith.constant dense<0.000000e+00> : vector<16xf32>
    %242 = vector.multi_reduction <add>, %241, %cst_106 [1] : vector<16x16xf32> to vector<16xf32>
    %243 = vector.shape_cast %242 : vector<16xf32> to vector<16x1xf32>
    %244 = tpu.reciprocal %243 {approx = true} : vector<16x1xf32> -> vector<16x1xf32>
    %245 = vector.broadcast %244 : vector<16x1xf32> to vector<16x16xf32>
    %246 = arith.mulf %241, %245 : vector<16x16xf32>
    %cst_107 = arith.constant dense<0.000000e+00> : vector<16x32xf32>
    %247 = tpu.matmul %246, %232, %cst_107 {dimension_numbers = #tpu.dot_dimension_numbers<[1], [0], [0], [1], [0, 0, 1, 1], [], []>} : vector<16x16xf32>, vector<16x32xf32>, vector<16x32xf32> -> vector<16x32xf32>
    %c0_108 = arith.constant 0 : index
    %c64_109 = arith.constant 64 : index
    %248 = vector.load %arg35[%c0_108, %c64_109] : memref<16x128xf32, #tpu.memory_space<vmem>>, vector<16x32xf32>
    tpu.vector_store %arg35[%c0_108, %c64_109], %247 {strides = array<i32>} : memref<16x128xf32, #tpu.memory_space<vmem>>, vector<16x32xf32>,
    %249 = vector.extract_strided_slice %191 {offsets = [0, 96], sizes = [16, 32], strides = [1, 1]} : vector<16x384xf32> to vector<16x32xf32>
    %250 = vector.extract_strided_slice %191 {offsets = [0, 224], sizes = [16, 32], strides = [1, 1]} : vector<16x384xf32> to vector<16x32xf32>
    %251 = vector.extract_strided_slice %191 {offsets = [0, 352], sizes = [16, 32], strides = [1, 1]} : vector<16x384xf32> to vector<16x32xf32>
    %cst_110 = arith.constant dense<0.000000e+00> : vector<16x16xf32>
    %252 = tpu.matmul %249, %250, %cst_110 {dimension_numbers = #tpu.dot_dimension_numbers<[1], [1], [0], [0], [0, 0, 1, 0], [], []>} : vector<16x32xf32>, vector<16x32xf32>, vector<16x16xf32> -> vector<16x16xf32>
    %cst_111 = arith.constant 0.176776692 : f32
    %253 = vector.broadcast %cst_111 : f32 to vector<16x16xf32>
    %254 = arith.mulf %252, %253 : vector<16x16xf32>
    %255 = arith.addf %254, %30 : vector<16x16xf32>
    %cst_112 = arith.constant dense<0xFF800000> : vector<16xf32>
    %256 = vector.multi_reduction <maximumf>, %255, %cst_112 [1] : vector<16x16xf32> to vector<16xf32>
    %257 = vector.shape_cast %256 : vector<16xf32> to vector<16x1xf32>
    %258 = vector.broadcast %257 : vector<16x1xf32> to vector<16x16xf32>
    %259 = arith.subf %255, %258 : vector<16x16xf32>
    %260 = math.exp %259 : vector<16x16xf32>
    %cst_113 = arith.constant dense<0.000000e+00> : vector<16xf32>
    %261 = vector.multi_reduction <add>, %260, %cst_113 [1] : vector<16x16xf32> to vector<16xf32>
    %262 = vector.shape_cast %261 : vector<16xf32> to vector<16x1xf32>
    %263 = tpu.reciprocal %262 {approx = true} : vector<16x1xf32> -> vector<16x1xf32>
    %264 = vector.broadcast %263 : vector<16x1xf32> to vector<16x16xf32>
    %265 = arith.mulf %260, %264 : vector<16x16xf32>
    %cst_114 = arith.constant dense<0.000000e+00> : vector<16x32xf32>
    %266 = tpu.matmul %265, %251, %cst_114 {dimension_numbers = #tpu.dot_dimension_numbers<[1], [0], [0], [1], [0, 0, 1, 1], [], []>} : vector<16x16xf32>, vector<16x32xf32>, vector<16x32xf32> -> vector<16x32xf32>
    %c0_115 = arith.constant 0 : index
    %c96_116 = arith.constant 96 : index
    %267 = vector.load %arg35[%c0_115, %c96_116] : memref<16x128xf32, #tpu.memory_space<vmem>>, vector<16x32xf32>
    tpu.vector_store %arg35[%c0_115, %c96_116], %266 {strides = array<i32>} : memref<16x128xf32, #tpu.memory_space<vmem>>, vector<16x32xf32>,
    %c0_117 = arith.constant 0 : index
    %c0_118 = arith.constant 0 : index
    %268 = vector.load %arg35[%c0_117, %c0_118] : memref<16x128xf32, #tpu.memory_space<vmem>>, vector<16x128xf32>
    %c0_119 = arith.constant 0 : index
    %c0_120 = arith.constant 0 : index
    %269 = vector.load %arg20[%c0_119, %c0_120] : memref<128x128xf32, #tpu.memory_space<vmem>>, vector<128x128xf32>
    %cst_121 = arith.constant dense<0.000000e+00> : vector<16x128xf32>
    %270 = tpu.matmul %268, %269, %cst_121 {dimension_numbers = #tpu.dot_dimension_numbers<[1], [0], [0], [1], [0, 0, 1, 1], [], []>} : vector<16x128xf32>, vector<128x128xf32>, vector<16x128xf32> -> vector<16x128xf32>
    %c0_122 = arith.constant 0 : index
    %c0_123 = arith.constant 0 : index
    %271 = vector.load %arg21[%c0_122, %c0_123] : memref<1x128xf32, #tpu.memory_space<vmem>>, vector<1x128xf32>
    %272 = vector.broadcast %271 : vector<1x128xf32> to vector<16x128xf32>
    %273 = arith.addf %270, %272 : vector<16x128xf32>
    %274 = arith.addf %273, %186 : vector<16x128xf32>
    %c0_124 = arith.constant 0 : index
    %c0_125 = arith.constant 0 : index
    %275 = vector.load %arg22[%c0_124, %c0_125] : memref<1x128xf32, #tpu.memory_space<vmem>>, vector<1x128xf32>
    %c0_126 = arith.constant 0 : index
    %c0_127 = arith.constant 0 : index
    %276 = vector.load %arg23[%c0_126, %c0_127] : memref<1x128xf32, #tpu.memory_space<vmem>>, vector<1x128xf32>
    %cst_128 = arith.constant dense<0.000000e+00> : vector<16xf32>
    %277 = vector.multi_reduction <add>, %274, %cst_128 [1] : vector<16x128xf32> to vector<16xf32>
    %278 = vector.shape_cast %277 : vector<16xf32> to vector<16x1xf32>
    %cst_129 = arith.constant 1.280000e+02 : f32
    %279 = vector.broadcast %cst_129 : f32 to vector<16x1xf32>
    %280 = arith.divf %278, %279 : vector<16x1xf32>
    %281 = vector.broadcast %280 : vector<16x1xf32> to vector<16x128xf32>
    %282 = arith.subf %274, %281 : vector<16x128xf32>
    %283 = arith.mulf %282, %282 : vector<16x128xf32>
    %cst_130 = arith.constant dense<0.000000e+00> : vector<16xf32>
    %284 = vector.multi_reduction <add>, %283, %cst_130 [1] : vector<16x128xf32> to vector<16xf32>
    %285 = vector.shape_cast %284 : vector<16xf32> to vector<16x1xf32>
    %cst_131 = arith.constant 1.280000e+02 : f32
    %286 = vector.broadcast %cst_131 : f32 to vector<16x1xf32>
    %287 = arith.divf %285, %286 : vector<16x1xf32>
    %cst_132 = arith.constant 9.99999974E-6 : f32
    %288 = vector.broadcast %cst_132 : f32 to vector<16x1xf32>
    %289 = arith.addf %287, %288 : vector<16x1xf32>
    %290 = math.rsqrt %289 : vector<16x1xf32>
    %291 = vector.broadcast %290 : vector<16x1xf32> to vector<16x128xf32>
    %292 = arith.mulf %282, %291 : vector<16x128xf32>
    %293 = vector.broadcast %275 : vector<1x128xf32> to vector<16x128xf32>
    %294 = arith.mulf %292, %293 : vector<16x128xf32>
    %295 = vector.broadcast %276 : vector<1x128xf32> to vector<16x128xf32>
    %296 = arith.addf %294, %295 : vector<16x128xf32>
    %c0_133 = arith.constant 0 : index
    %c0_134 = arith.constant 0 : index
    %297 = vector.load %arg24[%c0_133, %c0_134] : memref<128x256xf32, #tpu.memory_space<vmem>>, vector<128x256xf32>
    %cst_135 = arith.constant dense<0.000000e+00> : vector<16x256xf32>
    %298 = tpu.matmul %296, %297, %cst_135 {dimension_numbers = #tpu.dot_dimension_numbers<[1], [0], [0], [1], [0, 0, 1, 1], [], []>} : vector<16x128xf32>, vector<128x256xf32>, vector<16x256xf32> -> vector<16x256xf32>
    %c0_136 = arith.constant 0 : index
    %c0_137 = arith.constant 0 : index
    %299 = vector.load %arg25[%c0_136, %c0_137] : memref<1x256xf32, #tpu.memory_space<vmem>>, vector<1x256xf32>
    %300 = vector.broadcast %299 : vector<1x256xf32> to vector<16x256xf32>
    %301 = arith.addf %298, %300 : vector<16x256xf32>
    %cst_138 = arith.constant 5.000000e-01 : f32
    %302 = vector.broadcast %cst_138 : f32 to vector<16x256xf32>
    %303 = arith.mulf %302, %301 : vector<16x256xf32>
    %cst_139 = arith.constant 4.471500e-02 : f32
    %304 = vector.broadcast %cst_139 : f32 to vector<16x256xf32>
    %305 = arith.mulf %304, %301 : vector<16x256xf32>
    %306 = arith.mulf %305, %301 : vector<16x256xf32>
    %307 = arith.mulf %306, %301 : vector<16x256xf32>
    %308 = arith.addf %301, %307 : vector<16x256xf32>
    %cst_140 = arith.constant 0.797884583 : f32
    %309 = vector.broadcast %cst_140 : f32 to vector<16x256xf32>
    %310 = arith.mulf %309, %308 : vector<16x256xf32>
    %311 = math.tanh %310 : vector<16x256xf32>
    %cst_141 = arith.constant 1.000000e+00 : f32
    %312 = vector.broadcast %cst_141 : f32 to vector<16x256xf32>
    %313 = arith.addf %312, %311 : vector<16x256xf32>
    %314 = arith.mulf %303, %313 : vector<16x256xf32>
    %c0_142 = arith.constant 0 : index
    %c0_143 = arith.constant 0 : index
    %315 = vector.load %arg26[%c0_142, %c0_143] : memref<256x128xf32, #tpu.memory_space<vmem>>, vector<256x128xf32>
    %cst_144 = arith.constant dense<0.000000e+00> : vector<16x128xf32>
    %316 = tpu.matmul %314, %315, %cst_144 {dimension_numbers = #tpu.dot_dimension_numbers<[1], [0], [0], [1], [0, 0, 1, 1], [], []>} : vector<16x256xf32>, vector<256x128xf32>, vector<16x128xf32> -> vector<16x128xf32>
    %c0_145 = arith.constant 0 : index
    %c0_146 = arith.constant 0 : index
    %317 = vector.load %arg27[%c0_145, %c0_146] : memref<1x128xf32, #tpu.memory_space<vmem>>, vector<1x128xf32>
    %318 = vector.broadcast %317 : vector<1x128xf32> to vector<16x128xf32>
    %319 = arith.addf %316, %318 : vector<16x128xf32>
    %320 = arith.addf %319, %296 : vector<16x128xf32>
    %c0_147 = arith.constant 0 : index
    %c0_148 = arith.constant 0 : index
    %321 = vector.load %arg28[%c0_147, %c0_148] : memref<1x128xf32, #tpu.memory_space<vmem>>, vector<1x128xf32>
    %c0_149 = arith.constant 0 : index
    %c0_150 = arith.constant 0 : index
    %322 = vector.load %arg29[%c0_149, %c0_150] : memref<1x128xf32, #tpu.memory_space<vmem>>, vector<1x128xf32>
    %cst_151 = arith.constant dense<0.000000e+00> : vector<16xf32>
    %323 = vector.multi_reduction <add>, %320, %cst_151 [1] : vector<16x128xf32> to vector<16xf32>
    %324 = vector.shape_cast %323 : vector<16xf32> to vector<16x1xf32>
    %cst_152 = arith.constant 1.280000e+02 : f32
    %325 = vector.broadcast %cst_152 : f32 to vector<16x1xf32>
    %326 = arith.divf %324, %325 : vector<16x1xf32>
    %327 = vector.broadcast %326 : vector<16x1xf32> to vector<16x128xf32>
    %328 = arith.subf %320, %327 : vector<16x128xf32>
    %329 = arith.mulf %328, %328 : vector<16x128xf32>
    %cst_153 = arith.constant dense<0.000000e+00> : vector<16xf32>
    %330 = vector.multi_reduction <add>, %329, %cst_153 [1] : vector<16x128xf32> to vector<16xf32>
    %331 = vector.shape_cast %330 : vector<16xf32> to vector<16x1xf32>
    %cst_154 = arith.constant 1.280000e+02 : f32
    %332 = vector.broadcast %cst_154 : f32 to vector<16x1xf32>
    %333 = arith.divf %331, %332 : vector<16x1xf32>
    %cst_155 = arith.constant 9.99999974E-6 : f32
    %334 = vector.broadcast %cst_155 : f32 to vector<16x1xf32>
    %335 = arith.addf %333, %334 : vector<16x1xf32>
    %336 = math.rsqrt %335 : vector<16x1xf32>
    %337 = vector.broadcast %336 : vector<16x1xf32> to vector<16x128xf32>
    %338 = arith.mulf %328, %337 : vector<16x128xf32>
    %339 = vector.broadcast %321 : vector<1x128xf32> to vector<16x128xf32>
    %340 = arith.mulf %338, %339 : vector<16x128xf32>
    %341 = vector.broadcast %322 : vector<1x128xf32> to vector<16x128xf32>
    %342 = arith.addf %340, %341 : vector<16x128xf32>
    %c0_156 = arith.constant 0 : index
    %c0_157 = arith.constant 0 : index
    %343 = vector.load %arg35[%c0_156, %c0_157] : memref<16x128xf32, #tpu.memory_space<vmem>>, vector<16x128xf32>
    tpu.vector_store %arg35[%c0_156, %c0_157], %342 {strides = array<i32>} : memref<16x128xf32, #tpu.memory_space<vmem>>, vector<16x128xf32>,
    %c0_158 = arith.constant 0 : index
    %c0_159 = arith.constant 0 : index
    %344 = tpu.strided_load %arg35[%c0_158, %c0_159] {strides = array<i32: 8, 1>} : memref<16x128xf32, #tpu.memory_space<vmem>>, vector<2x128xf32>
    %c0_160 = arith.constant 0 : index
    %c0_161 = arith.constant 0 : index
    %345 = vector.load %arg30[%c0_160, %c0_161] : memref<128x128xf32, #tpu.memory_space<vmem>>, vector<128x128xf32>
    %cst_162 = arith.constant dense<0.000000e+00> : vector<2x128xf32>
    %346 = tpu.matmul %344, %345, %cst_162 {dimension_numbers = #tpu.dot_dimension_numbers<[1], [0], [0], [1], [0, 0, 1, 1], [], []>} : vector<2x128xf32>, vector<128x128xf32>, vector<2x128xf32> -> vector<2x128xf32>
    %c0_163 = arith.constant 0 : index
    %c0_164 = arith.constant 0 : index
    %347 = vector.load %arg31[%c0_163, %c0_164] : memref<1x128xf32, #tpu.memory_space<vmem>>, vector<1x128xf32>
    %348 = vector.broadcast %347 : vector<1x128xf32> to vector<2x128xf32>
    %349 = arith.addf %346, %348 : vector<2x128xf32>
    %cst_165 = arith.constant 0.000000e+00 : f32
    %350 = vector.broadcast %cst_165 : f32 to vector<2x128xf32>
    %351 = arith.maximumf %349, %350 : vector<2x128xf32>
    %c0_166 = arith.constant 0 : index
    %c0_167 = arith.constant 0 : index
    %352 = vector.load %arg32[%c0_166, %c0_167] : memref<128x128xf32, #tpu.memory_space<vmem>>, vector<128x128xf32>
    %cst_168 = arith.constant dense<0.000000e+00> : vector<2x128xf32>
    %353 = tpu.matmul %351, %352, %cst_168 {dimension_numbers = #tpu.dot_dimension_numbers<[1], [0], [0], [1], [0, 0, 1, 1], [], []>} : vector<2x128xf32>, vector<128x128xf32>, vector<2x128xf32> -> vector<2x128xf32>
    %c0_169 = arith.constant 0 : index
    %c0_170 = arith.constant 0 : index
    %354 = vector.load %arg33[%c0_169, %c0_170] : memref<1x128xf32, #tpu.memory_space<vmem>>, vector<1x128xf32>
    %355 = vector.broadcast %354 : vector<1x128xf32> to vector<2x128xf32>
    %356 = arith.addf %353, %355 : vector<2x128xf32>
    %c0_171 = arith.constant 0 : index
    %c0_172 = arith.constant 0 : index
    %357 = vector.load %arg34[%c0_171, %c0_172] : memref<2x128xf32, #tpu.memory_space<vmem>>, vector<2x128xf32>
    tpu.vector_store %arg34[%c0_171, %c0_172], %356 {strides = array<i32>} : memref<2x128xf32, #tpu.memory_space<vmem>>, vector<2x128xf32>,
    return
  }
  func.func @transform_0(%arg0: i32) -> (i32, i32) {
    %c0_i32 = arith.constant 0 : i32
    %c0_i32_0 = arith.constant 0 : i32
    %c0_i32_1 = arith.constant 0 : i32
    return %c0_i32, %c0_i32_0 : i32, i32
  }
  func.func @transform_1(%arg0: i32) -> (i32, i32) {
    %c0_i32 = arith.constant 0 : i32
    %c0_i32_0 = arith.constant 0 : i32
    %c0_i32_1 = arith.constant 0 : i32
    return %c0_i32, %c0_i32_0 : i32, i32
  }
  func.func @transform_2(%arg0: i32) -> (i32, i32) {
    %c0_i32 = arith.constant 0 : i32
    %c0_i32_0 = arith.constant 0 : i32
    %c0_i32_1 = arith.constant 0 : i32
    return %c0_i32, %c0_i32_0 : i32, i32
  }
  func.func @transform_3(%arg0: i32) -> (i32, i32) {
    %c0_i32 = arith.constant 0 : i32
    %c0_i32_0 = arith.constant 0 : i32
    %c0_i32_1 = arith.constant 0 : i32
    return %c0_i32, %c0_i32_0 : i32, i32
  }
  func.func @transform_4(%arg0: i32) -> (i32, i32) {
    %c0_i32 = arith.constant 0 : i32
    %c0_i32_0 = arith.constant 0 : i32
    %c0_i32_1 = arith.constant 0 : i32
    return %c0_i32, %c0_i32_0 : i32, i32
  }
  func.func @transform_5(%arg0: i32) -> (i32, i32) {
    %c0_i32 = arith.constant 0 : i32
    %c0_i32_0 = arith.constant 0 : i32
    %c0_i32_1 = arith.constant 0 : i32
    return %c0_i32, %c0_i32_0 : i32, i32
  }
  func.func @transform_6(%arg0: i32) -> (i32, i32) {
    %c0_i32 = arith.constant 0 : i32
    %c0_i32_0 = arith.constant 0 : i32
    %c0_i32_1 = arith.constant 0 : i32
    return %c0_i32, %c0_i32_0 : i32, i32
  }
  func.func @transform_7(%arg0: i32) -> (i32, i32) {
    %c0_i32 = arith.constant 0 : i32
    %c0_i32_0 = arith.constant 0 : i32
    %c0_i32_1 = arith.constant 0 : i32
    return %c0_i32, %c0_i32_0 : i32, i32
  }
  func.func @transform_8(%arg0: i32) -> (i32, i32) {
    %c0_i32 = arith.constant 0 : i32
    %c0_i32_0 = arith.constant 0 : i32
    %c0_i32_1 = arith.constant 0 : i32
    return %c0_i32, %c0_i32_0 : i32, i32
  }
  func.func @transform_9(%arg0: i32) -> (i32, i32) {
    %c0_i32 = arith.constant 0 : i32
    %c0_i32_0 = arith.constant 0 : i32
    %c0_i32_1 = arith.constant 0 : i32
    return %c0_i32, %c0_i32_0 : i32, i32
  }
  func.func @transform_10(%arg0: i32) -> (i32, i32) {
    %c0_i32 = arith.constant 0 : i32
    %c0_i32_0 = arith.constant 0 : i32
    %c0_i32_1 = arith.constant 0 : i32
    return %c0_i32, %c0_i32_0 : i32, i32
  }
  func.func @transform_11(%arg0: i32) -> (i32, i32) {
    %c0_i32 = arith.constant 0 : i32
    %c0_i32_0 = arith.constant 0 : i32
    %c0_i32_1 = arith.constant 0 : i32
    return %c0_i32, %c0_i32_0 : i32, i32
  }
  func.func @transform_12(%arg0: i32) -> (i32, i32) {
    %c0_i32 = arith.constant 0 : i32
    %c0_i32_0 = arith.constant 0 : i32
    %c0_i32_1 = arith.constant 0 : i32
    return %c0_i32, %c0_i32_0 : i32, i32
  }
  func.func @transform_13(%arg0: i32) -> (i32, i32) {
    %c0_i32 = arith.constant 0 : i32
    %c0_i32_0 = arith.constant 0 : i32
    %c0_i32_1 = arith.constant 0 : i32
    return %c0_i32, %c0_i32_0 : i32, i32
  }
  func.func @transform_14(%arg0: i32) -> (i32, i32) {
    %c0_i32 = arith.constant 0 : i32
    %c0_i32_0 = arith.constant 0 : i32
    %c0_i32_1 = arith.constant 0 : i32
    return %c0_i32, %c0_i32_0 : i32, i32
  }
  func.func @transform_15(%arg0: i32) -> (i32, i32) {
    %c0_i32 = arith.constant 0 : i32
    %c0_i32_0 = arith.constant 0 : i32
    %c0_i32_1 = arith.constant 0 : i32
    return %c0_i32, %c0_i32_0 : i32, i32
  }
  func.func @transform_16(%arg0: i32) -> (i32, i32) {
    %c0_i32 = arith.constant 0 : i32
    %c0_i32_0 = arith.constant 0 : i32
    %c0_i32_1 = arith.constant 0 : i32
    return %c0_i32, %c0_i32_0 : i32, i32
  }
  func.func @transform_17(%arg0: i32) -> (i32, i32) {
    %c0_i32 = arith.constant 0 : i32
    %c0_i32_0 = arith.constant 0 : i32
    %c0_i32_1 = arith.constant 0 : i32
    return %c0_i32, %c0_i32_0 : i32, i32
  }
  func.func @transform_18(%arg0: i32) -> (i32, i32) {
    %c0_i32 = arith.constant 0 : i32
    %c0_i32_0 = arith.constant 0 : i32
    %c0_i32_1 = arith.constant 0 : i32
    return %c0_i32, %c0_i32_0 : i32, i32
  }
  func.func @transform_19(%arg0: i32) -> (i32, i32) {
    %c0_i32 = arith.constant 0 : i32
    %c0_i32_0 = arith.constant 0 : i32
    %c0_i32_1 = arith.constant 0 : i32
    return %c0_i32, %c0_i32_0 : i32, i32
  }
  func.func @transform_20(%arg0: i32) -> (i32, i32) {
    %c0_i32 = arith.constant 0 : i32
    %c0_i32_0 = arith.constant 0 : i32
    %c0_i32_1 = arith.constant 0 : i32
    return %c0_i32, %c0_i32_0 : i32, i32
  }
  func.func @transform_21(%arg0: i32) -> (i32, i32) {
    %c0_i32 = arith.constant 0 : i32
    %c0_i32_0 = arith.constant 0 : i32
    %c0_i32_1 = arith.constant 0 : i32
    return %c0_i32, %c0_i32_0 : i32, i32
  }
  func.func @transform_22(%arg0: i32) -> (i32, i32) {
    %c0_i32 = arith.constant 0 : i32
    %c0_i32_0 = arith.constant 0 : i32
    %c0_i32_1 = arith.constant 0 : i32
    return %c0_i32, %c0_i32_0 : i32, i32
  }
  func.func @transform_23(%arg0: i32) -> (i32, i32) {
    %c0_i32 = arith.constant 0 : i32
    %c0_i32_0 = arith.constant 0 : i32
    %c0_i32_1 = arith.constant 0 : i32
    return %c0_i32, %c0_i32_0 : i32, i32
  }
  func.func @transform_24(%arg0: i32) -> (i32, i32) {
    %c0_i32 = arith.constant 0 : i32
    %c0_i32_0 = arith.constant 0 : i32
    %c0_i32_1 = arith.constant 0 : i32
    return %c0_i32, %c0_i32_0 : i32, i32
  }
  func.func @transform_25(%arg0: i32) -> (i32, i32) {
    %c0_i32 = arith.constant 0 : i32
    %c0_i32_0 = arith.constant 0 : i32
    %c0_i32_1 = arith.constant 0 : i32
    return %c0_i32, %c0_i32_0 : i32, i32
  }
  func.func @transform_26(%arg0: i32) -> (i32, i32) {
    %c0_i32 = arith.constant 0 : i32
    %c0_i32_0 = arith.constant 0 : i32
    %c0_i32_1 = arith.constant 0 : i32
    return %c0_i32, %c0_i32_0 : i32, i32
  }
  func.func @transform_27(%arg0: i32) -> (i32, i32) {
    %c0_i32 = arith.constant 0 : i32
    %c0_i32_0 = arith.constant 0 : i32
    %c0_i32_1 = arith.constant 0 : i32
    return %c0_i32, %c0_i32_0 : i32, i32
  }
  func.func @transform_28(%arg0: i32) -> (i32, i32) {
    %c0_i32 = arith.constant 0 : i32
    %c0_i32_0 = arith.constant 0 : i32
    %c0_i32_1 = arith.constant 0 : i32
    return %c0_i32, %c0_i32_0 : i32, i32
  }
  func.func @transform_29(%arg0: i32) -> (i32, i32) {
    %c0_i32 = arith.constant 0 : i32
    %c0_i32_0 = arith.constant 0 : i32
    %c0_i32_1 = arith.constant 0 : i32
    return %c0_i32, %c0_i32_0 : i32, i32
  }
  func.func @transform_30(%arg0: i32) -> (i32, i32) {
    %c0_i32 = arith.constant 0 : i32
    %c0_i32_0 = arith.constant 0 : i32
    %c0_i32_1 = arith.constant 0 : i32
    return %c0_i32, %c0_i32_0 : i32, i32
  }
  func.func @transform_31(%arg0: i32) -> (i32, i32) {
    %c0_i32 = arith.constant 0 : i32
    %c0_i32_0 = arith.constant 0 : i32
    %c0_i32_1 = arith.constant 0 : i32
    return %c0_i32, %c0_i32_0 : i32, i32
  }
  func.func @transform_32(%arg0: i32) -> (i32, i32) {
    %c0_i32 = arith.constant 0 : i32
    %c0_i32_0 = arith.constant 0 : i32
    %c0_i32_1 = arith.constant 0 : i32
    return %c0_i32, %c0_i32_0 : i32, i32
  }
  func.func @transform_33(%arg0: i32) -> (i32, i32) {
    %c0_i32 = arith.constant 0 : i32
    %c0_i32_0 = arith.constant 0 : i32
    %c0_i32_1 = arith.constant 0 : i32
    return %c0_i32, %c0_i32_0 : i32, i32
  }
}

</mosaic_0001>

<bundles_post_ra>
// kernel: roberta_class_forward.1
= control target key start
LH: loop header
LB: loop body
LE: loop exit
PB: predicated region body
PF: predicated region fallthrough
CT: control target
= control target key end

     0   :  { %s4524_s6 = smov 1   ;;  %s4525_s10 = smov 2   ;;  %s5277_s0 = inlined_call_operand.smem [shape: u32[34], index: -1, kind: input, shape index: {}] }
   0x1   :  { %s4586_s5 = sld [smem:[%s5277_s0]]   ;;  %s4526_s14 = smov 3  }
   0x2   :  { %s4591_s9 = sld [smem:[%s5277_s0 + %s4524_s6]]   ;;  %s4527_s18 = smov 4  }
   0x3   :  { %s4596_s13 = sld [smem:[%s5277_s0 + %s4525_s10]]   ;;  %s4528_s22 = smov 5  }
   0x4   :  { %s4601_s17 = sld [smem:[%s5277_s0 + %s4526_s14]]   ;;  %s4529_s26 = smov 6  }
   0x5   :  { %s4606_s21 = sld [smem:[%s5277_s0 + %s4527_s18]]   ;;  %s4530_s30 = smov 7  }
   0x6   :  { %s4611_s25 = sld [smem:[%s5277_s0 + %s4528_s22]]   ;;  %s4531_s4 = smov 8  }
   0x7   :  { %s4616_s29 = sld [smem:[%s5277_s0 + %s4529_s26]]   ;;  %s4532_s10 = smov 9  }
   0x8   :  { %s4621_s3 = sld [smem:[%s5277_s0 + %s4530_s30]]   ;;  %s4533_s15 = smov 10  }
   0x9   :  { %s4626_s8 = sld [smem:[%s5277_s0 + %s4531_s4]]   ;;  %s4534_s20 = smov 11  }
   0xa   :  { %s4631_s14 = sld [smem:[%s5277_s0 + %s4532_s10]]   ;;  %s4535_s26 = smov 12  }
   0xb   :  { %s4636_s19 = sld [smem:[%s5277_s0 + %s4533_s15]]   ;;  %s4536_s1 = smov 13  }
   0xc   :  { %s4641_s24 = sld [smem:[%s5277_s0 + %s4534_s20]]   ;;  %s4537_s7 = smov 14  }
   0xd   :  { %s4646_s30 = sld [smem:[%s5277_s0 + %s4535_s26]]   ;;  %s4538_s15 = smov 15  }
   0xe   :  { %s4651_s6 = sld [smem:[%s5277_s0 + %s4536_s1]]   ;;  %s4539_s22 = smov 16  }
   0xf   :  { %5279 = sst [smem:[#allocation21_spill]] %s4626_s8  ;;  %s4540_s28 = smov 17  }
  0x10   :  { %5280 = sst [smem:[#allocation22_spill]] %s4631_s14 }
  0x11   :  { %5281 = sst [smem:[#allocation23_spill]] %s4636_s19 }
  0x12   :  { %5282 = sst [smem:[#allocation24_spill]] %s4641_s24 }
  0x13   :  { %5283 = sst [smem:[#allocation25_spill]] %s4646_s30 }
  0x14   :  { %s4656_s12 = sld [smem:[%s5277_s0 + %s4537_s7]]   ;;  %s4541_s7 = smov 18  }
  0x15   :  { %s4661_s20 = sld [smem:[%s5277_s0 + %s4538_s15]]   ;;  %s4542_s15 = smov 19  }
  0x16   :  { %s4666_s27 = sld [smem:[%s5277_s0 + %s4539_s22]]   ;;  %s4543_s22 = smov 20  }
  0x17   :  { %s4671_s4 = sld [smem:[%s5277_s0 + %s4540_s28]]   ;;  %s4544_s28 = smov 21  }
  0x18   :  { %s4691_s30 = sld [smem:[%s5277_s0 + %s4544_s28]]   ;;  %s4548_s28 = smov 25  }
  0x1a   :  { %5284 = sst [smem:[#allocation26_spill]] %s4656_s12 }
  0x1b   :  { %5285 = sst [smem:[#allocation27_spill]] %s4661_s20 }
  0x1c   :  { %5286 = sst [smem:[#allocation28_spill]] %s4666_s27 }
  0x1d   :  { %s4676_s12 = sld [smem:[%s5277_s0 + %s4541_s7]]   ;;  %s4545_s7 = smov 22  }
  0x1e   :  { %s4681_s20 = sld [smem:[%s5277_s0 + %s4542_s15]]   ;;  %s4546_s15 = smov 23  }
  0x1f   :  { %s4686_s27 = sld [smem:[%s5277_s0 + %s4543_s22]]   ;;  %s4547_s22 = smov 24  }
  0x20   :  { %5289 = sst [smem:[#allocation31_spill]] %s4691_s30 }
  0x21   :  { %s4701_s19 = sld [smem:[%s5277_s0 + %s4546_s15]]   ;;  %s4550_s15 = smov 27  }
  0x22   :  { %s4711_s30 = sld [smem:[%s5277_s0 + %s4548_s28]]   ;;  %s4552_s28 = smov 29  }
  0x23   :  { %5287 = sst [smem:[#allocation29_spill]] %s4676_s12 }
  0x24   :  { %s4696_s12 = sld [smem:[%s5277_s0 + %s4545_s7]]   ;;  %s4549_s7 = smov 26  }
  0x25   :  { %5288 = sst [smem:[#allocation30_spill]] %s4686_s27 }
  0x26   :  { %s4706_s27 = sld [smem:[%s5277_s0 + %s4547_s22]]   ;;  %s4551_s22 = smov 28  }
  0x27   :  { %s4721_s14 = sld [smem:[%s5277_s0 + %s4550_s15]]   ;;  %s4554_s15 = smov 31  }
  0x28   :  { %s4731_s24 = sld [smem:[%s5277_s0 + %s4552_s28]]   ;;  %s4556_s28 = smov 33  }
  0x29   :  { %s4751_s8 = sld [smem:[%s5277_s0 + %s4556_s28]]  }
  0x2a   :  { %5290 = sst [smem:[#allocation32_spill]] %s4696_s12 }
  0x2b   :  { %s4716_s12 = sld [smem:[%s5277_s0 + %s4549_s7]]   ;;  %s4553_s7 = smov 30  }
  0x2c   :  { %5291 = sst [smem:[#allocation33_spill]] %s4706_s27 }
  0x2d   :  { %5293 = sst [smem:[#allocation35_spill]] %s4721_s14 }
  0x2e   :  { %s4726_s27 = sld [smem:[%s5277_s0 + %s4551_s22]]   ;;  %s4555_s22 = smov 32  }
  0x2f   :  { %s4741_s14 = sld [smem:[%s5277_s0 + %s4554_s15]]  }
  0x31   :  { %5292 = sst [smem:[#allocation34_spill]] %s4716_s12 }
  0x32   :  { %s4736_s12 = sld [smem:[%s5277_s0 + %s4553_s7]]  }
  0x34   :  { %5294 = sst [smem:[#allocation36_spill]] %s4726_s27 }
  0x35   :  { %s4746_s27 = sld [smem:[%s5277_s0 + %s4555_s22]]  }
  0x36   :  { %72 = vsyncpa [#allocation4], 0 }
  0x37   :  { %73 = vsyncpa [#allocation7], 0 }
  0x38   :  { %74 = vsyncpa [#allocation10], 0 }
  0x39   :  { %75 = vsyncpa [#allocation13], 0 }
  0x3a   :  { %76 = vsyncpa [#allocation5], 0  ;;  %s4557_s7 = smov [#allocation6]  }
  0x3b   :  { %s118_s10 = sshll.u32 %s4557_s7, 4  ;;  %s119_s10 = int_to_ptr.vmem [resolvable:$true] %s118_s10 }
  0x3c   :  { %s4362_s11 = scalar_lea.vmem %s119_s10, 4096  ;;  %p4367_p1 = scmp.lt.s32.totalorder %s119_s10, %s119_s10 }
  0x3d   :  { %p4363_p0 = scmp.ne.s32.totalorder %s119_s10, %s4362_s11  ;;  %p4368_p2 = scmp.lt.s32.totalorder %s4362_s11, %s4362_s11 }
  0x3f   :  { %p4369_p3 = por %p4368_p2, %p4367_p1 }
  0x41   :  { %p4370_p4 = pnand %p4369_p3, %p4363_p0 }
  0x43   :  { %4373 = shalt.err (!%p4370_p4)
}
  0x44   :  { %s4558_s15 = smov 128   ;;  %s4559_s16 = smov 8  }
  0x45   :  { %124 = dma.hbm_to_vmem [thread:$0]  %s4651_s6, 4096, %s119_s10, [#allocation7], %s4558_s15, %s4558_s15, %s4559_s16  }
  0x46   :  { %s4560_s0 = smov [#allocation9]   ;;  %s4561_s22 = smov [#allocation12]  }
  0x47   :  { %s150_s18 = sshll.u32 %s4560_s0, 4  ;;  %s182_s23 = sshll.u32 %s4561_s22, 4  ;;  %s151_s18 = int_to_ptr.vmem [resolvable:$true] %s150_s18  ;;  %s183_s23 = int_to_ptr.vmem [resolvable:$true] %s182_s23 }
  0x48   :  { %s4382_s26 = scalar_lea.vmem %s151_s18, 2048  ;;  %p4387_p6 = scmp.lt.s32.totalorder %s151_s18, %s151_s18 }
  0x49   :  { %p4383_p5 = scmp.ne.s32.totalorder %s151_s18, %s4382_s26  ;;  %p4388_p7 = scmp.lt.s32.totalorder %s4382_s26, %s4382_s26 }
  0x4b   :  { %p4389_p8 = por %p4388_p7, %p4387_p6 }
  0x4d   :  { %p4390_p9 = pnand %p4389_p8, %p4383_p5 }
  0x4f   :  { %4393 = shalt.err (!%p4390_p9)
}
  0x50   :  { %156 = dma.hbm_to_vmem [thread:$0]  %s4681_s20, 2048, %s151_s18, [#allocation10], %s4558_s15, %s4558_s15, %s4559_s16  }
  0x51   :  { %s4402_s28 = scalar_lea.vmem %s183_s23, 4096  ;;  %p4407_p11 = scmp.lt.s32.totalorder %s183_s23, %s183_s23 }
  0x52   :  { %p4403_p10 = scmp.ne.s32.totalorder %s183_s23, %s4402_s28  ;;  %p4408_p12 = scmp.lt.s32.totalorder %s4402_s28, %s4402_s28 }
  0x54   :  { %p4409_p13 = por %p4408_p12, %p4407_p11 }
  0x56   :  { %p4410_p0 = pnand %p4409_p13, %p4403_p10 }
  0x58   :  { %4413 = shalt.err (!%p4410_p0)
}
  0x59   :  { %188 = dma.hbm_to_vmem [thread:$0]  %s4711_s30, 4096, %s183_s23, [#allocation13], %s4558_s15, %s4558_s15, %s4559_s16  }
  0x5a   :  { %s4562_s6 = smov [#allocation3]  }
  0x5b   :  { %s92_s1 = sshll.u32 %s4562_s6, 4  ;;  %s93_s1 = int_to_ptr.vmem [resolvable:$true] %s92_s1 }
  0x5c   :  { %s4422_s2 = scalar_lea.vmem %s93_s1, 6144  ;;  %p4427_p2 = scmp.lt.s32.totalorder %s93_s1, %s93_s1 }
  0x5d   :  { %p4423_p1 = scmp.ne.s32.totalorder %s93_s1, %s4422_s2  ;;  %p4428_p3 = scmp.lt.s32.totalorder %s4422_s2, %s4422_s2 }
  0x5f   :  { %p4429_p4 = por %p4428_p3, %p4427_p2 }
  0x61   :  { %p4430_p5 = pnand %p4429_p4, %p4423_p1 }
  0x63   :  { %4433 = shalt.err (!%p4430_p5)
}
  0x64   :  { %s4563_s20 = smov 384   ;;  %s4564_s7 = smov 24  }
  0x65   :  { %98 = dma.hbm_to_vmem [thread:$0]  %s4611_s25, 6144, %s93_s1, [#allocation4], %s4563_s20, %s4563_s20, %s4564_s7  }
  0x66   :  { %s4565_s10 = smov [#allocation8]   ;;  %s4566_s0 = smov [#allocation11]  }
  0x67   :  { %s136_s11 = sshll.u32 %s4565_s10, 4  ;;  %s168_s18 = sshll.u32 %s4566_s0, 4  ;;  %s137_s11 = int_to_ptr.vmem [resolvable:$true] %s136_s11  ;;  %s169_s18 = int_to_ptr.vmem [resolvable:$true] %s168_s18 }
  0x68   :  { %s4442_s30 = scalar_lea.vmem %s137_s11, 6144  ;;  %p4447_p7 = scmp.lt.s32.totalorder %s137_s11, %s137_s11 }
  0x69   :  { %p4443_p6 = scmp.ne.s32.totalorder %s137_s11, %s4442_s30  ;;  %p4448_p8 = scmp.lt.s32.totalorder %s4442_s30, %s4442_s30 }
  0x6b   :  { %p4449_p9 = por %p4448_p8, %p4447_p7 }
  0x6d   :  { %p4450_p10 = pnand %p4449_p9, %p4443_p6 }
  0x6f   :  { %4453 = shalt.err (!%p4450_p10)
}
  0x70   :  { %142 = dma.hbm_to_vmem [thread:$0]  %s4671_s4, 6144, %s137_s11, [#allocation7], %s4563_s20, %s4563_s20, %s4564_s7  }
  0x71   :  { %s4462_s22 = scalar_lea.vmem %s169_s18, 4096  ;;  %p4467_p12 = scmp.lt.s32.totalorder %s169_s18, %s169_s18 }
  0x72   :  { %p4463_p11 = scmp.ne.s32.totalorder %s169_s18, %s4462_s22  ;;  %p4468_p13 = scmp.lt.s32.totalorder %s4462_s22, %s4462_s22 }
  0x74   :  { %p4469_p0 = por %p4468_p13, %p4467_p12 }
  0x76   :  { %p4470_p1 = pnand %p4469_p0, %p4463_p11 }
  0x78   :  { %4473 = shalt.err (!%p4470_p1)
}
  0x79   :  { %s4567_s25 = smov 256   ;;  %s4568_s23 = smov 16  }
  0x7a   :  { %174 = dma.hbm_to_vmem [thread:$0]  %s4701_s19, 4096, %s169_s18, [#allocation10], %s4567_s25, %s4567_s25, %s4568_s23  }
  0x7b   :  { %s4569_s26 = smov [#allocation14]  }
  0x7c   :  { %s200_s28 = sshll.u32 %s4569_s26, 4  ;;  %s201_s28 = int_to_ptr.vmem [resolvable:$true] %s200_s28 }
  0x7d   :  { %s4482_s6 = scalar_lea.vmem %s201_s28, 2048  ;;  %p4487_p3 = scmp.lt.s32.totalorder %s201_s28, %s201_s28 }
  0x7e   :  { %p4483_p2 = scmp.ne.s32.totalorder %s201_s28, %s4482_s6  ;;  %p4488_p4 = scmp.lt.s32.totalorder %s4482_s6, %s4482_s6 }
  0x80   :  { %p4489_p5 = por %p4488_p4, %p4487_p3 }
  0x82   :  { %p4490_p6 = pnand %p4489_p5, %p4483_p2 }
  0x84   :  { %4493 = shalt.err (!%p4490_p6)
}
  0x85   :  { %206 = dma.hbm_to_vmem [thread:$0]  %s4731_s24, 2048, %s201_s28, [#allocation13], %s4558_s15, %s4558_s15, %s4559_s16  }
  0x86   :  { %4514 = dma.done.wait [#allocation4], 6144  }
  0x87   :  { %4515 = vsyncadd [#allocation4], 4294961152 }
  0x88   :  { %4516 = dma.done.wait [#allocation7], 10240  }
  0x89   :  { %4517 = vsyncadd [#allocation7], 4294957056 }
  0x8a   :  { %4518 = dma.done.wait [#allocation10], 6144  }
  0x8b   :  { %4519 = vsyncadd [#allocation10], 4294961152 }
  0x8c   :  { %4520 = dma.done.wait [#allocation13], 6144  }
  0x8d   :  { %4521 = vsyncadd [#allocation13], 4294961152  ;;  %v234_v0 = vld [vmem:[%s4586_s5] sm:$0xff]  ;;  %v235_v1 = vld [vmem:[%s4586_s5 + $0x8] sm:$0xff]  ;;  %v4570_v56 = vmov 0.0   ;;  %vm511_vm0 = vcmask 261120  }
  0x8e   :  { %238 = vadd.xlane.f32.xlu0 %v234_v0  ;;  %v340_v2 = vld [vmem:[#allocation3 + $0x170] sm:$0xff]  ;;  %v339_v3 = vld [vmem:[#allocation3 + $0x168] sm:$0xff]  ;;  %v337_v4 = vld [vmem:[#allocation3 + $0x158] sm:$0xff]  ;;  %423 = vmatprep.mubr.f32.mxu0 %v4570_v56  ;;  %vm603_vm3 = vcmask 130048   ;;  %s4573_s5 = smov 96   ;;  %vm923_vm4 = vcmask 523520  }
  0x8f   :  { %359 = vmatprep.subr.mxu0 %v340_v2  ;;  %v336_v5 = vld [vmem:[#allocation3 + $0x150] sm:$0xff]  ;;  %v341_v6 = vld [vmem:[#allocation3 + $0x178] sm:$0xff]  ;;  %v334_v7 = vld [vmem:[#allocation3 + $0x140] sm:$0xff]  ;;  %vm1138_vm5 = vcmask 785920   ;;  %vm1353_vm6 = vcmask 1048320   ;;  %s5299_s19 = sld [smem:[#allocation25_spill]] }
  0x90   :  { %360 = vmatpush1.msra.mxu0 %v339_v3  ;;  %3876 = vmatprep.subr.mxu1 %v341_v6  ;;  %v338_v8 = vld [vmem:[#allocation3 + $0x160] sm:$0xff]  ;;  %v333_v9 = vld [vmem:[#allocation3 + $0x138] sm:$0xff]  ;;  %v331_v10 = vld [vmem:[#allocation3 + $0x128] sm:$0xff]  ;;  %s5300_s24 = sld [smem:[#allocation26_spill]]  ;;  %vm4576_vm7 = vmmov 0   ;;  %s4577_s18 = smov [#allocation15]  }
  0x91   :  { %361 = vmatprep.subr.mxu0 %v337_v4  ;;  %3877 = vmatpush3.msra.mxu1 %v341_v6  ;;  %v330_v11 = vld [vmem:[#allocation3 + $0x120] sm:$0xff]  ;;  %v328_v20 = vld [vmem:[#allocation3 + $0x110] sm:$0xff]  ;;  %v335_v21 = vld [vmem:[#allocation3 + $0x148] sm:$0xff]  ;;  %s5301_s4 = sld [smem:[#allocation27_spill]]  ;;  %s3520_s30 = sshll.u32 %s4577_s18, 4  ;;  %s3521_s30 = int_to_ptr.vmem [resolvable:$true] %s3520_s30 }
  0x92   :  { %240 = vadd.xlane.f32.xlu0 %v235_v1  ;;  %362 = vmatpush1.msra.mxu0 %v336_v5  ;;  %v327_v22 = vld [vmem:[#allocation3 + $0x108] sm:$0xff]  ;;  %v325_v23 = vld [vmem:[#allocation3 + $0xf8] sm:$0xff]  ;;  %v332_v24 = vld [vmem:[#allocation3 + $0x130] sm:$0xff]  ;;  %s5302_s15 = sld [smem:[#allocation28_spill]]  ;;  %s4494_s22 = scalar_lea.vmem %s3521_s30, 32 }
  0x93   :  { %3878 = vmatprep.subr.mxu1 %v338_v8  ;;  %363 = vmatprep.subr.mxu0 %v334_v7  ;;  %v324_v25 = vld [vmem:[#allocation3 + $0xf0] sm:$0xff]  ;;  %v322_v26 = vld [vmem:[#allocation3 + $0xe0] sm:$0xff]  ;;  %v329_v27 = vld [vmem:[#allocation3 + $0x118] sm:$0xff]  ;;  %s5303_s16 = sld [smem:[#allocation29_spill]]  ;;  %p4495_p7 = scmp.ne.s32.totalorder %s3521_s30, %s4494_s22 }
  0x94   :  { %3879 = vmatpush3.msra.mxu1 %v338_v8  ;;  %364 = vmatpush1.msra.mxu0 %v333_v9  ;;  %v321_v28 = vld [vmem:[#allocation3 + $0xd8] sm:$0xff]  ;;  %v319_v29 = vld [vmem:[#allocation3 + $0xc8] sm:$0xff]  ;;  %v326_v30 = vld [vmem:[#allocation3 + $0x100] sm:$0xff]  ;;  %s5304_s1 = sld [smem:[#allocation30_spill]]  ;;  %p4499_p8 = scmp.lt.s32.totalorder %s3521_s30, %s3521_s30 }
  0x95   :  { %365 = vmatprep.subr.mxu0 %v331_v10  ;;  %3880 = vmatprep.subr.mxu1 %v335_v21  ;;  %v318_v31 = vld [vmem:[#allocation3 + $0xc0] sm:$0xff]  ;;  %v316_v32 = vld [vmem:[#allocation3 + $0xb0] sm:$0xff]  ;;  %v323_v33 = vld [vmem:[#allocation3 + $0xe8] sm:$0xff]  ;;  %s5305_s2 = sld [smem:[#allocation31_spill]]  ;;  %p4500_p9 = scmp.lt.s32.totalorder %s4494_s22, %s4494_s22 }
  0x96   :  { %366 = vmatpush1.msra.mxu0 %v330_v11  ;;  %3881 = vmatpush3.msra.mxu1 %v335_v21  ;;  %v315_v34 = vld [vmem:[#allocation3 + $0xa8] sm:$0xff]  ;;  %v313_v35 = vld [vmem:[#allocation3 + $0x98] sm:$0xff]  ;;  %v320_v36 = vld [vmem:[#allocation3 + $0xd0] sm:$0xff]  ;;  %s5306_s20 = sld [smem:[#allocation32_spill]] }
  0x97   :  { %367 = vmatprep.subr.mxu0 %v328_v20  ;;  %3882 = vmatprep.subr.mxu1 %v332_v24  ;;  %v312_v37 = vld [vmem:[#allocation3 + $0x90] sm:$0xff]  ;;  %v310_v38 = vld [vmem:[#allocation3 + $0x80] sm:$0xff]  ;;  %v317_v39 = vld [vmem:[#allocation3 + $0xb8] sm:$0xff]  ;;  %s5307_s7 = sld [smem:[#allocation33_spill]]  ;;  %p4501_p10 = por %p4500_p9, %p4499_p8 }
  0x98   :  { %368 = vmatpush1.msra.mxu0 %v327_v22  ;;  %3883 = vmatpush3.msra.mxu1 %v332_v24  ;;  %v309_v40 = vld [vmem:[#allocation3 + $0x78] sm:$0xff]  ;;  %v307_v41 = vld [vmem:[#allocation3 + $0x68] sm:$0xff]  ;;  %v314_v42 = vld [vmem:[#allocation3 + $0xa0] sm:$0xff]  ;;  %s5308_s10 = sld [smem:[#allocation34_spill]] }
  0x99   :  { %369 = vmatprep.subr.mxu0 %v325_v23  ;;  %3884 = vmatprep.subr.mxu1 %v329_v27  ;;  %v306_v43 = vld [vmem:[#allocation3 + $0x60] sm:$0xff]  ;;  %v304_v44 = vld [vmem:[#allocation3 + $0x50] sm:$0xff]  ;;  %v311_v45 = vld [vmem:[#allocation3 + $0x88] sm:$0xff]  ;;  %s5309_s11 = sld [smem:[#allocation35_spill]]  ;;  %p4502_p11 = pnand %p4501_p10, %p4495_p7 }
  0x9a   :  { %370 = vmatpush1.msra.mxu0 %v324_v25  ;;  %3885 = vmatpush3.msra.mxu1 %v329_v27  ;;  %v303_v46 = vld [vmem:[#allocation3 + $0x48] sm:$0xff]  ;;  %v301_v47 = vld [vmem:[#allocation3 + $0x38] sm:$0xff]  ;;  %v308_v48 = vld [vmem:[#allocation3 + $0x70] sm:$0xff]  ;;  %s5310_s0 = sld [smem:[#allocation36_spill]] }
  0x9b   :  { %371 = vmatprep.subr.mxu0 %v322_v26  ;;  %3886 = vmatprep.subr.mxu1 %v326_v30  ;;  %v300_v49 = vld [vmem:[#allocation3 + $0x30] sm:$0xff]  ;;  %v298_v50 = vld [vmem:[#allocation3 + $0x20] sm:$0xff]  ;;  %v305_v51 = vld [vmem:[#allocation3 + $0x58] sm:$0xff] }
  0x9c   :  { %372 = vmatpush1.msra.mxu0 %v321_v28  ;;  %3887 = vmatpush3.msra.mxu1 %v326_v30  ;;  %v297_v52 = vld [vmem:[#allocation3 + $0x18] sm:$0xff]  ;;  %v295_v53 = vld [vmem:[#allocation3 + $0x8] sm:$0xff]  ;;  %v302_v54 = vld [vmem:[#allocation3 + $0x40] sm:$0xff] }
  0x9d   :  { %373 = vmatprep.subr.mxu0 %v319_v29  ;;  %3888 = vmatprep.subr.mxu1 %v323_v33  ;;  %v294_v55 = vld [vmem:[#allocation3] sm:$0xff]  ;;  %v299_v57 = vld [vmem:[#allocation3 + $0x28] sm:$0xff]  ;;  %v296_v58 = vld [vmem:[#allocation3 + $0x10] sm:$0xff] }
  0x9e   :  { %374 = vmatpush1.msra.mxu0 %v318_v31  ;;  %3889 = vmatpush3.msra.mxu1 %v323_v33  ;;  %v3565_v2 = vld [vmem:[%s4601_s17] ss:$0 sm:$0xff]  ;;  %v278_v11 = vld [vmem:[%s4591_s9 + $0x8] sm:$0xff]  ;;  %s5295_s17 = sld [smem:[#allocation21_spill]] }
  0x9f   :  { %375 = vmatprep.subr.mxu0 %v316_v32  ;;  %3890 = vmatprep.subr.mxu1 %v320_v36  ;;  %v3566_v4 = vld [vmem:[%s4606_s21] ss:$0 sm:$0xff]  ;;  %s5296_s21 = sld [smem:[#allocation24_spill]] }
  0xa0   :  { %376 = vmatpush1.msra.mxu0 %v315_v34  ;;  %3891 = vmatpush3.msra.mxu1 %v320_v36  ;;  %v3567_v36 = vld [vmem:[%s4596_s13] ss:$0 sm:$0xff]  ;;  %s4575_s13 = smov 32  }
  0xa1   :  { %377 = vmatprep.subr.mxu0 %v313_v35  ;;  %3892 = vmatprep.subr.mxu1 %v317_v39 }
  0xa2   :  { %378 = vmatpush1.msra.mxu0 %v312_v37  ;;  %3893 = vmatpush3.msra.mxu1 %v317_v39  ;;  %v4572_v39 = vmov -1e+09  }
  0xa3   :  { %379 = vmatprep.subr.mxu0 %v310_v38  ;;  %3894 = vmatprep.subr.mxu1 %v314_v42 }
  0xa4   :  { %380 = vmatpush1.msra.mxu0 %v309_v40  ;;  %3895 = vmatpush3.msra.mxu1 %v314_v42 }
  0xa5   :  { %381 = vmatprep.subr.mxu0 %v307_v41  ;;  %3896 = vmatprep.subr.mxu1 %v311_v45 }
  0xa6   :  { %382 = vmatpush1.msra.mxu0 %v306_v43  ;;  %3897 = vmatpush3.msra.mxu1 %v311_v45 }
  0xa7   :  { %383 = vmatprep.subr.mxu0 %v304_v44  ;;  %3898 = vmatprep.subr.mxu1 %v308_v48 }
  0xa8   :  { %384 = vmatpush1.msra.mxu0 %v303_v46  ;;  %3899 = vmatpush3.msra.mxu1 %v308_v48 }
  0xa9   :  { %385 = vmatprep.subr.mxu0 %v301_v47  ;;  %3900 = vmatprep.subr.mxu1 %v305_v51 }
  0xaa   :  { %386 = vmatpush1.msra.mxu0 %v300_v49  ;;  %3901 = vmatpush3.msra.mxu1 %v305_v51 }
  0xab   :  { %387 = vmatprep.subr.mxu0 %v298_v50  ;;  %3902 = vmatprep.subr.mxu1 %v302_v54 }
  0xac   :  { %388 = vmatpush1.msra.mxu0 %v297_v52  ;;  %3903 = vmatpush3.msra.mxu1 %v302_v54 }
  0xad   :  { %389 = vmatprep.subr.mxu0 %v295_v53  ;;  %3904 = vmatprep.subr.mxu1 %v299_v57 }
  0xae   :  { %390 = vmatpush1.msra.mxu0 %v294_v55  ;;  %3905 = vmatpush3.msra.mxu1 %v299_v57 }
  0xaf   :  { %3906 = vmatprep.subr.mxu1 %v296_v58 }
  0xb0   :  { %3907 = vmatpush3.msra.mxu1 %v296_v58 }
 0x117   :  { %v239_v12 = vpop.xlane.xlu0 %238 }
 0x118   :  { %v243_v13 = vmul.f32 0.0078125, %v239_v12  ;;  %v277_v12 = vld [vmem:[%s4591_s9] sm:$0xff]  ;;  %s4574_s9 = smov 64  }
 0x11a   :  { %v4774_v14 = vsub.f32 %v234_v0, %v243_v13  ;;  %v4571_v13 = vmov 0  }
 0x11b   :  { %v241_v15 = vpop.xlane.xlu0 %240  ;;  %4253 = vset.pattern.permute.xlu1 %v4571_v13  ;;  %4252 = vset.pattern.permute.xlu0 %v4571_v13 }
 0x11c   :  { %v244_v16 = vmul.f32 0.0078125, %v241_v15  ;;  %v247_v17 = vmul.f32 %v4774_v14, %v4774_v14  ;;  %281 = vperm.xlu0 %4252, %v277_v12  }
 0x11e   :  { %v4778_v18 = vsub.f32 %v235_v1, %v244_v16  ;;  %249 = vadd.xlane.f32.xlu1 %v247_v17  ;;  %v342_v17 = vld [vmem:[%s4616_s29] sm:$0x7]  ;;  %s5297_s29 = sld [smem:[#allocation22_spill]] }
 0x120   :  { %v248_v19 = vmul.f32 %v4778_v18, %v4778_v18 }
 0x122   :  { %251 = vadd.xlane.f32.xlu1 %v248_v19 }
 0x133   :  { %284 = vperm.xlu1 %4253, %v278_v11  }
 0x197   :  { %v282_v37 = vpop.permute.xlu0 %281 }
 0x198   :  { %vm290_vm2 = vcmp.eq.s32.totalorder %v282_v37, %v3567_v36 }
 0x199   :  { %v4843_v43 = vsel %vm290_vm2, 0.0, %v4572_v39 }
 0x1a7   :  { %v250_v59 = vpop.xlane.xlu1 %249 }
 0x1a8   :  { %v253_v60 = vmul.f32 0.0078125, %v250_v59 }
 0x1aa   :  { %v255_v61 = vadd.f32 1e-05, %v253_v60 }
 0x1ab   :  { %v252_v62 = vpop.xlane.xlu1 %251 }
 0x1ac   :  { %4254 = vrsqrt.f32 %v255_v61  ;;  %v254_v63 = vmul.f32 0.0078125, %v252_v62 }
 0x1ae   :  { %v256_v0 = vadd.f32 1e-05, %v254_v63 }
 0x1af   :  { %v285_v35 = vpop.permute.xlu1 %284 }
 0x1b0   :  { %4256 = vrsqrt.f32 %v256_v0  ;;  %vm291_vm1 = vcmp.eq.s32.totalorder %v285_v35, %v3567_v36 }
 0x1b1   :  { %v4841_v40 = vsel %vm291_vm1, 0.0, %v4572_v39 }
 0x1b9   :  { %v4255_v1 = vpop.eup %4254 }
 0x1ba   :  { %v259_v3 = vmul.f32 %v4255_v1, %v4774_v14  ;;  %v344_v14 = vlaneseq }
 0x1bc   :  { %v267_v5 = vmul.f32 %v3565_v2, %v259_v3  ;;  %v4798_v15 = vshrl.u32 %v344_v14, 7 }
 0x1bd   :  { %v4257_v6 = vpop.eup %4256 }
 0x1be   :  { %v4786_v7 = vadd.f32 %v3566_v4, %v267_v5  ;;  %v260_v8 = vmul.f32 %v4257_v6, %v4778_v18  ;;  %v4801_v16 = vsub.s32 0, %v4798_v15  ;;  %v4808_v21 = vsub.s32 1, %v4798_v15 }
 0x1bf   :  { %v354_v25 = vsub.s32 2, %v4798_v15 }
 0x1c0   :  { %424 = vmatmul.mubr.f32.vlgmr.msra.gmra.mxu0 %v4786_v7  ;;  %3908 = vmatprep.mubr.f32.mxu1 %v4786_v7  ;;  %v268_v9 = vmul.f32 %v3565_v2, %v260_v8  ;;  %v347_v18 = vrot.slane %v342_v17, %v4801_v16  ;;  %v351_v24 = vrot.slane %v342_v17, %v4808_v21 }
 0x1c1   :  { %429 = vmatprep.mubr.f32.mxu0 %v4570_v56  ;;  %v355_v29 = vrot.slane %v342_v17, %v354_v25 }
 0x1c2   :  { %v4792_v10 = vadd.f32 %v3566_v4, %v268_v9 }
 0x1c4   :  { %430 = vmatmul.mubr.f32.gmra.mxu0 %v4792_v10  ;;  %3909 = vmatmul.mubr.f32.vlgmr.msra.gmra.mxu1 %v4792_v10 }
 0x280   :  { %v425_v19 = vpop.f32.mrf.mxu0 }
 0x281   :  { %v4805_v20 = vadd.f32 %v425_v19, %v347_v18 }
 0x282   :  { %v427_v22 = vpop.f32.mrf.mxu0 }
 0x283   :  { %3915 = vmatprep.mubr.msk.f32.mxu1 %vm511_vm0, %v4805_v20  ;;  %v4816_v28 = vadd.f32 %v427_v22, %v351_v24 }
 0x284   :  { %v431_v23 = vpop.f32.mrf.mxu0  ;;  %v3910_v30 = vpop.f32.mrf.mxu1 }
 0x285   :  { %v4826_v31 = vadd.f32 %v3910_v30, %v355_v29  ;;  %v4830_v33 = vadd.f32 %v431_v23, %v347_v18 }
 0x286   :  { %v433_v26 = vpop.f32.mrf.mxu0  ;;  %v502_v32 = vpop.f32.mrf.mxu1 }
 0x287   :  { %v4814_v27 = vadd.f32 %v433_v26, %v351_v24  ;;  %v4833_v34 = vadd.f32 %v502_v32, %v355_v29 }
 0x289   :  { %3911 = vmatprep.subr.msk.mxu1 %vm511_vm0, %v4814_v27 }
 0x28a   :  { %3912 = vmatpush3.xpose.msk.msra.mxu1 %vm511_vm0, %v4814_v27 }
 0x28b   :  { %3913 = vmatprep.subr.msk.mxu1 %vm511_vm0, %v4816_v28 }
 0x28e   :  { %3914 = vmatpush3.xpose.msk.msra.mxu1 %vm511_vm0, %v4816_v28 }
 0x28f   :  { %3918 = vmatprep.subr.mxu1 %v4826_v31 }
 0x291   :  { %3916 = vmatmul.mubr.msk.f32.vlgmr.msra.gmra.mxu1 %vm511_vm0, %v4830_v33 }
 0x292   :  { %3919 = vmatpush3.msra.mxu1 %v4826_v31 }
 0x293   :  { %3920 = vmatprep.subr.mxu1 %v4833_v34 }
 0x294   :  { %3921 = vmatpush3.msra.mxu1 %v4833_v34 }
 0x351   :  { %v3917_v38 = vpop.f32.mrf.mxu1 }
 0x352   :  { %v600_v41 = vmul.f32 0.17677669, %v3917_v38 }
 0x353   :  { %v590_v42 = vpop.f32.mrf.mxu1 }
 0x354   :  { %v599_v44 = vmul.f32 0.17677669, %v590_v42  ;;  %v602_v45 = vadd.f32 %v600_v41, %v4841_v40 }
 0x356   :  { %v607_v46 = vsel %vm603_vm3, %v602_v45, -inf  ;;  %v601_v47 = vadd.f32 %v599_v44, %v4843_v43 }
 0x357   :  { %608 = vmax.xlane.f32.xlu0 %v607_v46 }
 0x358   :  { %v604_v48 = vsel %vm603_vm3, %v601_v47, -inf }
 0x359   :  { %605 = vmax.xlane.f32.xlu1 %v604_v48 }
 0x36a   :  { %715 = vrot.lane.b32.xlu1 %v4814_v27, %s4573_s5 }
 0x36d   :  { %713 = vrot.lane.b32.xlu0 %v4816_v28, %s4573_s5 }
 0x36e   :  { %709 = vrot.lane.b32.xlu1 %v4805_v20, %s4573_s5 }
 0x371   :  { %928 = vrot.lane.b32.xlu0 %v4830_v33, %s4574_s9 }
 0x372   :  { %932 = vrot.lane.b32.xlu1 %v4814_v27, %s4574_s9 }
 0x3e0   :  { %v609_v49 = vpop.xlane.xlu0 %608 }
 0x3e1   :  { %v611_v50 = vsub.f32 %v602_v45, %v609_v49 }
 0x3e2   :  { %v606_v51 = vpop.xlane.xlu1 %605 }
 0x3e3   :  { %v614_v52 = vmul.f32 1.442695, %v611_v50  ;;  %v610_v53 = vsub.f32 %v601_v47, %v606_v51 }
 0x3e4   :  { %v714_v6 = vpop.permute.xlu0 %713 }
 0x3e5   :  { %4258 = vpow2.f32 %v614_v52  ;;  %v612_v54 = vmul.f32 1.442695, %v610_v53 }
 0x3e6   :  { %v716_v55 = vpop.permute.xlu1 %715 }
 0x3e7   :  { %4260 = vpow2.f32 %v612_v54  ;;  %3925 = vmatprep.subr.msk.mxu1 %vm511_vm0, %v716_v55 }
 0x3e8   :  { %v929_v11 = vpop.permute.xlu0 %928 }
 0x3ea   :  { %v710_v61 = vpop.permute.xlu1 %709 }
 0x3ee   :  { %v933_v62 = vpop.permute.xlu1 %932 }
 0x3f2   :  { %v4259_v57 = vpop.eup %4258 }
 0x3f3   :  { %v619_v58 = vsel %vm603_vm3, %v4259_v57, 0.0 }
 0x3f4   :  { %v4261_v59 = vpop.eup %4260  ;;  %620 = vadd.xlane.f32.xlu1 %v619_v58 }
 0x3f5   :  { %v616_v60 = vsel %vm603_vm3, %v4261_v59, 0.0 }
 0x3f8   :  { %617 = vadd.xlane.f32.xlu1 %v616_v60 }
 0x409   :  { %711 = vrot.lane.b32.xlu1 %v4830_v33, %s4573_s5 }
 0x40d   :  { %930 = vrot.lane.b32.xlu1 %v4816_v28, %s4574_s9 }
 0x411   :  { %926 = vrot.lane.b32.xlu1 %v4805_v20, %s4574_s9 }
 0x47d   :  { %v621_v63 = vpop.xlane.xlu1 %620 }
 0x47e   :  { %4262 = vrcp.f32 %v621_v63 }
 0x481   :  { %v618_v0 = vpop.xlane.xlu1 %617 }
 0x482   :  { %4264 = vrcp.f32 %v618_v0 }
 0x485   :  { %v712_v3 = vpop.permute.xlu1 %711 }
 0x489   :  { %v931_v8 = vpop.permute.xlu1 %930 }
 0x48b   :  { %v4263_v1 = vpop.eup %4262 }
 0x48c   :  { %v625_v5 = vmul.f32 %v4263_v1, %v4259_v57 }
 0x48d   :  { %v927_v9 = vpop.permute.xlu1 %926 }
 0x48f   :  { %v4265_v2 = vpop.eup %4264 }
 0x490   :  { %v624_v4 = vmul.f32 %v4265_v2, %v4261_v59 }
 0x492   :  { %3922 = vmatprep.mubr.msk.f32.mxu1 %vm603_vm3, %v624_v4 }
 0x493   :  { %3923 = vmatmul.mubr.msk.f32.vlgmr.msra.gmra.mxu1 %vm603_vm3, %v625_v5 }
 0x494   :  { %3926 = vmatpush3.xpose.msk.msra.mxu1 %vm511_vm0, %v716_v55  ;;  %3929 = vmatprep.mubr.msk.f32.mxu1 %vm511_vm0, %v710_v61 }
 0x495   :  { %3927 = vmatprep.subr.msk.mxu1 %vm511_vm0, %v714_v6 }
 0x498   :  { %3928 = vmatpush3.xpose.msk.msra.mxu1 %vm511_vm0, %v714_v6 }
 0x499   :  { %3939 = vmatprep.subr.msk.mxu1 %vm511_vm0, %v933_v62 }
 0x49b   :  { %3930 = vmatmul.mubr.msk.f32.vlgmr.msra.gmra.mxu1 %vm511_vm0, %v712_v3 }
 0x49c   :  { %3940 = vmatpush3.xpose.msk.msra.mxu1 %vm511_vm0, %v933_v62  ;;  %3943 = vmatprep.mubr.msk.f32.mxu1 %vm511_vm0, %v927_v9 }
 0x49d   :  { %3941 = vmatprep.subr.msk.mxu1 %vm511_vm0, %v931_v8 }
 0x4a0   :  { %3942 = vmatpush3.xpose.msk.msra.mxu1 %vm511_vm0, %v931_v8 }
 0x4a3   :  { %3944 = vmatmul.mubr.msk.f32.vlgmr.msra.gmra.mxu1 %vm511_vm0, %v929_v11 }
 0x553   :  { %v3924_v12 = vpop.f32.mrf.mxu1 }
 0x554   :  { %708 = vst.msk [vmem:[#allocation2 + $0x8] sm:$0xff] %vm511_vm0, %v3924_v12 }
 0x555   :  { %v698_v13 = vpop.f32.mrf.mxu1 }
 0x556   :  { %707 = vst.msk [vmem:[#allocation2] sm:$0xff] %vm511_vm0, %v698_v13 }
 0x55b   :  { %v3931_v14 = vpop.f32.mrf.mxu1 }
 0x55c   :  { %v801_v47 = vmul.f32 0.17677669, %v3931_v14 }
 0x55d   :  { %v791_v17 = vpop.f32.mrf.mxu1 }
 0x55e   :  { %v800_v46 = vmul.f32 0.17677669, %v791_v17  ;;  %v803_v49 = vadd.f32 %v801_v47, %v4841_v40 }
 0x560   :  { %v802_v48 = vadd.f32 %v800_v46, %v4843_v43  ;;  %v807_v50 = vsel %vm603_vm3, %v803_v49, -inf }
 0x563   :  { %v3945_v18 = vpop.f32.mrf.mxu1 }
 0x564   :  { %v1018_v19 = vmul.f32 0.17677669, %v3945_v18 }
 0x565   :  { %v1008_v22 = vpop.f32.mrf.mxu1 }
 0x566   :  { %v1017_v23 = vmul.f32 0.17677669, %v1008_v22  ;;  %v1020_v24 = vadd.f32 %v1018_v19, %v4841_v40 }
 0x568   :  { %v1024_v26 = vsel %vm603_vm3, %v1020_v24, -inf  ;;  %v1019_v29 = vadd.f32 %v1017_v23, %v4843_v43 }
 0x569   :  { %1025 = vmax.xlane.f32.xlu0 %v1024_v26 }
 0x56a   :  { %v1021_v30 = vsel %vm603_vm3, %v1019_v29, -inf }
 0x56b   :  { %1022 = vmax.xlane.f32.xlu1 %v1021_v30 }
 0x5f2   :  { %v1026_v32 = vpop.xlane.xlu0 %1025 }
 0x5f3   :  { %v1028_v35 = vsub.f32 %v1020_v24, %v1026_v32 }
 0x5f4   :  { %v1023_v36 = vpop.xlane.xlu1 %1022 }
 0x5f5   :  { %v1031_v37 = vmul.f32 1.442695, %v1028_v35  ;;  %v1027_v38 = vsub.f32 %v1019_v29, %v1023_v36 }
 0x5f7   :  { %4266 = vpow2.f32 %v1031_v37  ;;  %v1029_v39 = vmul.f32 1.442695, %v1027_v38 }
 0x5f9   :  { %4268 = vpow2.f32 %v1029_v39 }
 0x604   :  { %v4267_v41 = vpop.eup %4266 }
 0x605   :  { %v1036_v42 = vsel %vm603_vm3, %v4267_v41, 0.0 }
 0x606   :  { %v4269_v44 = vpop.eup %4268  ;;  %1037 = vadd.xlane.f32.xlu1 %v1036_v42 }
 0x607   :  { %v1033_v45 = vsel %vm603_vm3, %v4269_v44, 0.0 }
 0x608   :  { %1034 = vadd.xlane.f32.xlu0 %v1033_v45 }
 0x617   :  { %1043 = vrot.lane.b32.xlu1 %v4833_v34, %s4574_s9 }
 0x61b   :  { %1147 = vrot.lane.b32.xlu1 %v4814_v27, %s4575_s13  ;;  %v804_v27 = vsel %vm603_vm3, %v802_v48, -inf }
 0x61e   :  { %1045 = vrot.lane.b32.xlu0 %v4826_v31, %s4574_s9 }
 0x61f   :  { %1141 = vrot.lane.b32.xlu1 %v4805_v20, %s4575_s13 }
 0x622   :  { %1145 = vrot.lane.b32.xlu0 %v4816_v28, %s4575_s13 }
 0x626   :  { %1143 = vrot.lane.b32.xlu0 %v4830_v33, %s4575_s13 }
 0x643   :  { %805 = vmax.xlane.f32.xlu1 %v804_v27 }
 0x645   :  { %808 = vmax.xlane.f32.xlu0 %v807_v50 }
 0x68f   :  { %v1038_v51 = vpop.xlane.xlu1 %1037 }
 0x690   :  { %4270 = vrcp.f32 %v1038_v51 }
 0x691   :  { %v1035_v20 = vpop.xlane.xlu0 %1034 }
 0x692   :  { %4272 = vrcp.f32 %v1035_v20 }
 0x693   :  { %v1044_v28 = vpop.permute.xlu1 %1043 }
 0x695   :  { %v1046_v52 = vpop.permute.xlu0 %1045 }
 0x696   :  { %3946 = vmatprep.subr.mxu1 %v1046_v52 }
 0x697   :  { %3947 = vmatpush3.msra.mxu1 %v1046_v52  ;;  %v1148_v33 = vpop.permute.xlu1 %1147 }
 0x698   :  { %3948 = vmatprep.subr.mxu1 %v1044_v28 }
 0x699   :  { %3949 = vmatpush3.msra.mxu1 %v1044_v28  ;;  %v1146_v59 = vpop.permute.xlu0 %1145 }
 0x69a   :  { %3953 = vmatprep.subr.msk.mxu1 %vm511_vm0, %v1148_v33 }
 0x69b   :  { %v1142_v58 = vpop.permute.xlu1 %1141 }
 0x69d   :  { %v4271_v53 = vpop.eup %4270  ;;  %v1144_v60 = vpop.permute.xlu0 %1143 }
 0x69e   :  { %v1042_v57 = vmul.f32 %v4271_v53, %v4267_v41  ;;  %v1373_v53 = vld [vmem:[%s4621_s3 + $0x78] sm:$0xff] }
 0x69f   :  { %v4273_v54 = vpop.eup %4272 }
 0x6a0   :  { %v1041_v55 = vmul.f32 %v4273_v54, %v4269_v44  ;;  %v1372_v54 = vld [vmem:[%s4621_s3 + $0x70] sm:$0xff] }
 0x6a2   :  { %3950 = vmatprep.mubr.msk.f32.mxu1 %vm603_vm3, %v1041_v55  ;;  %v1371_v55 = vld [vmem:[%s4621_s3 + $0x68] sm:$0xff] }
 0x6a3   :  { %3951 = vmatmul.mubr.msk.f32.vlgmr.msra.gmra.mxu1 %vm603_vm3, %v1042_v57  ;;  %v1370_v57 = vld [vmem:[%s4621_s3 + $0x60] sm:$0xff] }
 0x6a4   :  { %3954 = vmatpush3.xpose.msk.msra.mxu1 %vm511_vm0, %v1148_v33  ;;  %3957 = vmatprep.mubr.msk.f32.mxu1 %vm511_vm0, %v1142_v58  ;;  %v1369_v58 = vld [vmem:[%s4621_s3 + $0x58] sm:$0xff] }
 0x6a5   :  { %3955 = vmatprep.subr.msk.mxu1 %vm511_vm0, %v1146_v59 }
 0x6a8   :  { %3956 = vmatpush3.xpose.msk.msra.mxu1 %vm511_vm0, %v1146_v59  ;;  %v1368_v59 = vld [vmem:[%s4621_s3 + $0x50] sm:$0xff] }
 0x6ab   :  { %3958 = vmatmul.mubr.msk.f32.vlgmr.msra.gmra.mxu1 %vm511_vm0, %v1144_v60  ;;  %v1367_v60 = vld [vmem:[%s4621_s3 + $0x48] sm:$0xff] }
 0x6ac   :  { %1606 = vmatprep.mubr.f32.mxu1 %v4570_v56 }
 0x6cc   :  { %v806_v62 = vpop.xlane.xlu1 %805 }
 0x6cd   :  { %v810_v0 = vsub.f32 %v802_v48, %v806_v62  ;;  %v1365_v62 = vld [vmem:[%s4621_s3 + $0x38] sm:$0xff] }
 0x6ce   :  { %v809_v61 = vpop.xlane.xlu0 %808 }
 0x6cf   :  { %v811_v63 = vsub.f32 %v803_v49, %v809_v61  ;;  %v812_v2 = vmul.f32 1.442695, %v810_v0  ;;  %v1366_v61 = vld [vmem:[%s4621_s3 + $0x40] sm:$0xff]  ;;  %v1363_v0 = vld [vmem:[%s4621_s3 + $0x28] sm:$0xff] }
 0x6d1   :  { %v814_v1 = vmul.f32 1.442695, %v811_v63  ;;  %v1364_v63 = vld [vmem:[%s4621_s3 + $0x30] sm:$0xff] }
 0x6d3   :  { %4274 = vpow2.f32 %v814_v1 }
 0x6d4   :  { %4276 = vpow2.f32 %v812_v2 }
 0x6e0   :  { %v4275_v14 = vpop.eup %4274 }
 0x6e1   :  { %v4277_v18 = vpop.eup %4276  ;;  %v819_v19 = vsel %vm603_vm3, %v4275_v14, 0.0 }
 0x6e2   :  { %v816_v22 = vsel %vm603_vm3, %v4277_v18, 0.0 }
 0x763   :  { %v4914_v3 = vpop.f32.mrf.mxu1 }
 0x765   :  { %v4916_v4 = vpop.f32.mrf.mxu1 }
 0x76b   :  { %v3959_v5 = vpop.f32.mrf.mxu1 }
 0x76c   :  { %v1233_v6 = vmul.f32 0.17677669, %v3959_v5  ;;  %v1362_v5 = vld [vmem:[%s4621_s3 + $0x20] sm:$0xff] }
 0x76d   :  { %v1223_v8 = vpop.f32.mrf.mxu1 }
 0x76e   :  { %v1232_v9 = vmul.f32 0.17677669, %v1223_v8  ;;  %v1235_v11 = vadd.f32 %v1233_v6, %v4841_v40  ;;  %v1361_v6 = vld [vmem:[%s4621_s3 + $0x18] sm:$0xff]  ;;  %v1360_v8 = vld [vmem:[%s4621_s3 + $0x10] sm:$0xff] }
 0x770   :  { %v1239_v12 = vsel %vm603_vm3, %v1235_v11, -inf  ;;  %v1234_v13 = vadd.f32 %v1232_v9, %v4843_v43  ;;  %v1359_v9 = vld [vmem:[%s4621_s3 + $0x8] sm:$0xff] }
 0x771   :  { %1240 = vmax.xlane.f32.xlu1 %v1239_v12 }
 0x772   :  { %v1236_v17 = vsel %vm603_vm3, %v1234_v13, -inf }
 0x773   :  { %1237 = vmax.xlane.f32.xlu0 %v1236_v17 }
 0x775   :  { %820 = vadd.xlane.f32.xlu1 %v819_v19 }
 0x777   :  { %817 = vadd.xlane.f32.xlu0 %v816_v22  ;;  %v3592_v22 = vld [vmem:[%s5295_s17] ss:$0 sm:$0xff] }
 0x786   :  { %828 = vrot.lane.b32.xlu1 %v4833_v34, %s4573_s5 }
 0x78d   :  { %830 = vrot.lane.b32.xlu0 %v4826_v31, %s4573_s5 }
 0x7fa   :  { %v1241_v23 = vpop.xlane.xlu1 %1240 }
 0x7fb   :  { %v1243_v24 = vsub.f32 %v1235_v11, %v1241_v23  ;;  %v1358_v11 = vld [vmem:[%s4621_s3] sm:$0xff]  ;;  %s5298_s3 = sld [smem:[#allocation23_spill]] }
 0x7fc   :  { %v1238_v26 = vpop.xlane.xlu0 %1237 }
 0x7fd   :  { %v1246_v29 = vmul.f32 1.442695, %v1243_v24  ;;  %v1242_v30 = vsub.f32 %v1234_v13, %v1238_v26 }
 0x7fe   :  { %v821_v32 = vpop.xlane.xlu1 %820 }
 0x7ff   :  { %4278 = vpow2.f32 %v1246_v29  ;;  %v1244_v35 = vmul.f32 1.442695, %v1242_v30 }
 0x800   :  { %4280 = vrcp.f32 %v821_v32  ;;  %v818_v36 = vpop.xlane.xlu0 %817 }
 0x801   :  { %4282 = vpow2.f32 %v1244_v35  ;;  %v1529_v35 = vld [vmem:[%s5296_s21 + $0xf8] sm:$0xff] }
 0x802   :  { %4284 = vrcp.f32 %v818_v36  ;;  %v829_v38 = vpop.permute.xlu1 %828  ;;  %v1528_v36 = vld [vmem:[%s5296_s21 + $0xf0] sm:$0xff]  ;;  %1542 = vmatprep.subr.mxu1 %v1529_v35  ;;  %v1670_v35 = vld [vmem:[#allocation6 + $0x78] sm:$0xff] }
 0x803   :  { %1543 = vmatpush1.msra.mxu1 %v1528_v36  ;;  %v1685_v36 = vld [vmem:[#allocation6 + $0xf0] sm:$0xff] }
 0x804   :  { %v831_v37 = vpop.permute.xlu0 %830 }
 0x805   :  { %3932 = vmatprep.subr.mxu0 %v831_v37 }
 0x806   :  { %3933 = vmatpush3.msra.mxu0 %v831_v37  ;;  %v1527_v37 = vld [vmem:[%s5296_s21 + $0xe8] sm:$0xff] }
 0x807   :  { %3934 = vmatprep.subr.mxu0 %v829_v38  ;;  %1544 = vmatprep.subr.mxu1 %v1527_v37  ;;  %v1669_v37 = vld [vmem:[#allocation6 + $0x70] sm:$0xff] }
 0x808   :  { %3935 = vmatpush3.msra.mxu0 %v829_v38  ;;  %v1526_v38 = vld [vmem:[%s5296_s21 + $0xe0] sm:$0xff] }
 0x809   :  { %1545 = vmatpush1.msra.mxu1 %v1526_v38  ;;  %v1684_v38 = vld [vmem:[#allocation6 + $0xe8] sm:$0xff] }
 0x80c   :  { %v4279_v39 = vpop.eup %4278 }
 0x80d   :  { %v4281_v41 = vpop.eup %4280  ;;  %v1251_v42 = vsel %vm603_vm3, %v4279_v39, 0.0 }
 0x80e   :  { %v4283_v44 = vpop.eup %4282  ;;  %1252 = vadd.xlane.f32.xlu1 %v1251_v42  ;;  %v825_v48 = vmul.f32 %v4281_v41, %v4275_v14  ;;  %v1524_v41 = vld [vmem:[%s5296_s21 + $0xd0] sm:$0xff] }
 0x80f   :  { %v4285_v45 = vpop.eup %4284  ;;  %v1248_v46 = vsel %vm603_vm3, %v4283_v44, 0.0 }
 0x810   :  { %1249 = vadd.xlane.f32.xlu0 %v1248_v46  ;;  %v824_v47 = vmul.f32 %v4285_v45, %v4277_v18 }
 0x812   :  { %3936 = vmatprep.mubr.msk.f32.mxu0 %vm603_vm3, %v824_v47 }
 0x813   :  { %3937 = vmatmul.mubr.msk.f32.vlgmr.msra.gmra.mxu0 %vm603_vm3, %v825_v48 }
 0x81f   :  { %1260 = vrot.lane.b32.xlu1 %v4826_v31, %s4575_s13 }
 0x826   :  { %1258 = vrot.lane.b32.xlu0 %v4833_v34, %s4575_s13 }
 0x897   :  { %v1253_v49 = vpop.xlane.xlu1 %1252 }
 0x898   :  { %4286 = vrcp.f32 %v1253_v49  ;;  %v1523_v49 = vld [vmem:[%s5296_s21 + $0xc8] sm:$0xff] }
 0x899   :  { %v1250_v27 = vpop.xlane.xlu0 %1249 }
 0x89a   :  { %4288 = vrcp.f32 %v1250_v27  ;;  %v1522_v27 = vld [vmem:[%s5296_s21 + $0xc0] sm:$0xff] }
 0x89b   :  { %v1261_v50 = vpop.permute.xlu1 %1260 }
 0x89c   :  { %3960 = vmatprep.subr.mxu0 %v1261_v50 }
 0x89d   :  { %v1259_v51 = vpop.permute.xlu0 %1258  ;;  %3961 = vmatpush3.msra.mxu0 %v1261_v50  ;;  %v1521_v50 = vld [vmem:[%s5296_s21 + $0xb8] sm:$0xff] }
 0x89e   :  { %3962 = vmatprep.subr.mxu0 %v1259_v51 }
 0x89f   :  { %3963 = vmatpush3.msra.mxu0 %v1259_v51  ;;  %v1520_v51 = vld [vmem:[%s5296_s21 + $0xb0] sm:$0xff] }
 0x8a0   :  { %3967 = vmatprep.subr.mxu0 %v1373_v53 }
 0x8a5   :  { %v4287_v20 = vpop.eup %4286 }
 0x8a6   :  { %v1257_v31 = vmul.f32 %v4287_v20, %v4279_v39  ;;  %v1525_v39 = vld [vmem:[%s5296_s21 + $0xd8] sm:$0xff]  ;;  %v1519_v20 = vld [vmem:[%s5296_s21 + $0xa8] sm:$0xff] }
 0x8a7   :  { %v4289_v28 = vpop.eup %4288  ;;  %1546 = vmatprep.subr.mxu1 %v1525_v39  ;;  %v1668_v39 = vld [vmem:[#allocation6 + $0x68] sm:$0xff] }
 0x8a8   :  { %v1256_v52 = vmul.f32 %v4289_v28, %v4283_v44  ;;  %1547 = vmatpush1.msra.mxu1 %v1524_v41  ;;  %v1518_v28 = vld [vmem:[%s5296_s21 + $0xa0] sm:$0xff]  ;;  %v1683_v41 = vld [vmem:[#allocation6 + $0xe0] sm:$0xff] }
 0x8a9   :  { %1548 = vmatprep.subr.mxu1 %v1523_v49  ;;  %v1663_v49 = vld [vmem:[#allocation6 + $0x40] sm:$0xff] }
 0x8aa   :  { %3964 = vmatprep.mubr.msk.f32.mxu0 %vm603_vm3, %v1256_v52  ;;  %1549 = vmatpush1.msra.mxu1 %v1522_v27  ;;  %v1517_v52 = vld [vmem:[%s5296_s21 + $0x98] sm:$0xff]  ;;  %v1678_v27 = vld [vmem:[#allocation6 + $0xb8] sm:$0xff] }
 0x8ab   :  { %3965 = vmatmul.mubr.msk.f32.vlgmr.msra.gmra.mxu0 %vm603_vm3, %v1257_v31  ;;  %1550 = vmatprep.subr.mxu1 %v1521_v50  ;;  %v1516_v31 = vld [vmem:[%s5296_s21 + $0x90] sm:$0xff]  ;;  %v1662_v50 = vld [vmem:[#allocation6 + $0x38] sm:$0xff] }
 0x8ac   :  { %3968 = vmatpush3.msra.mxu0 %v1373_v53  ;;  %1551 = vmatpush1.msra.mxu1 %v1520_v51  ;;  %v1513_v53 = vld [vmem:[%s5296_s21 + $0x78] sm:$0xff]  ;;  %v1677_v51 = vld [vmem:[#allocation6 + $0xb0] sm:$0xff] }
 0x8ad   :  { %3969 = vmatprep.subr.mxu0 %v1372_v54  ;;  %1552 = vmatprep.subr.mxu1 %v1519_v20  ;;  %v1661_v20 = vld [vmem:[#allocation6 + $0x30] sm:$0xff] }
 0x8ae   :  { %3970 = vmatpush3.msra.mxu0 %v1372_v54  ;;  %1553 = vmatpush1.msra.mxu1 %v1518_v28  ;;  %v1512_v54 = vld [vmem:[%s5296_s21 + $0x70] sm:$0xff]  ;;  %v1676_v28 = vld [vmem:[#allocation6 + $0xa8] sm:$0xff] }
 0x8af   :  { %3971 = vmatprep.subr.mxu0 %v1371_v55  ;;  %1554 = vmatprep.subr.mxu1 %v1517_v52  ;;  %v1660_v52 = vld [vmem:[#allocation6 + $0x28] sm:$0xff] }
 0x8b0   :  { %3972 = vmatpush3.msra.mxu0 %v1371_v55  ;;  %1555 = vmatpush1.msra.mxu1 %v1516_v31  ;;  %v1511_v55 = vld [vmem:[%s5296_s21 + $0x68] sm:$0xff]  ;;  %v1675_v31 = vld [vmem:[#allocation6 + $0xa0] sm:$0xff] }
 0x8b1   :  { %3973 = vmatprep.subr.mxu0 %v1370_v57 }
 0x8b2   :  { %3974 = vmatpush3.msra.mxu0 %v1370_v57  ;;  %v1510_v57 = vld [vmem:[%s5296_s21 + $0x60] sm:$0xff] }
 0x8b3   :  { %3975 = vmatprep.subr.mxu0 %v1369_v58 }
 0x8b4   :  { %3976 = vmatpush3.msra.mxu0 %v1369_v58  ;;  %v1509_v58 = vld [vmem:[%s5296_s21 + $0x58] sm:$0xff] }
 0x8b5   :  { %3977 = vmatprep.subr.mxu0 %v1368_v59 }
 0x8b6   :  { %3978 = vmatpush3.msra.mxu0 %v1368_v59  ;;  %v1508_v59 = vld [vmem:[%s5296_s21 + $0x50] sm:$0xff] }
 0x8b7   :  { %3979 = vmatprep.subr.mxu0 %v1367_v60 }
 0x8b8   :  { %3980 = vmatpush3.msra.mxu0 %v1367_v60  ;;  %v1507_v60 = vld [vmem:[%s5296_s21 + $0x48] sm:$0xff] }
 0x8b9   :  { %3981 = vmatprep.subr.mxu0 %v1366_v61 }
 0x8ba   :  { %3982 = vmatpush3.msra.mxu0 %v1366_v61  ;;  %v1506_v61 = vld [vmem:[%s5296_s21 + $0x40] sm:$0xff] }
 0x8bb   :  { %3983 = vmatprep.subr.mxu0 %v1365_v62 }
 0x8bc   :  { %3984 = vmatpush3.msra.mxu0 %v1365_v62  ;;  %v1505_v62 = vld [vmem:[%s5296_s21 + $0x38] sm:$0xff] }
 0x8bd   :  { %3985 = vmatprep.subr.mxu0 %v1364_v63 }
 0x8be   :  { %3986 = vmatpush3.msra.mxu0 %v1364_v63  ;;  %v1504_v63 = vld [vmem:[%s5296_s21 + $0x30] sm:$0xff] }
 0x8bf   :  { %3987 = vmatprep.subr.mxu0 %v1363_v0 }
 0x8c0   :  { %3988 = vmatpush3.msra.mxu0 %v1363_v0  ;;  %v1503_v0 = vld [vmem:[%s5296_s21 + $0x28] sm:$0xff] }
 0x8c1   :  { %3989 = vmatprep.subr.mxu0 %v1362_v5 }
 0x8c2   :  { %3990 = vmatpush3.msra.mxu0 %v1362_v5  ;;  %v1498_v5 = vld [vmem:[%s5296_s21] sm:$0xff] }
 0x8c3   :  { %3991 = vmatprep.subr.mxu0 %v1361_v6 }
 0x8c4   :  { %3992 = vmatpush3.msra.mxu0 %v1361_v6 }
 0x8c5   :  { %3993 = vmatprep.subr.mxu0 %v1360_v8 }
 0x8c6   :  { %3994 = vmatpush3.msra.mxu0 %v1360_v8 }
 0x8c7   :  { %3995 = vmatprep.subr.mxu0 %v1359_v9 }
 0x8c8   :  { %3996 = vmatpush3.msra.mxu0 %v1359_v9 }
 0x8c9   :  { %3997 = vmatprep.subr.mxu0 %v1358_v11 }
 0x8ca   :  { %3998 = vmatpush3.msra.mxu0 %v1358_v11 }
 0x8d3   :  { %v3938_v34 = vpop.f32.mrf.mxu0 }
 0x8d4   :  { %919 = vrot.lane.b32.xlu0 %v3938_v34, %s4575_s13  ;;  %v1515_v34 = vld [vmem:[%s5296_s21 + $0x88] sm:$0xff] }
 0x8d5   :  { %v906_v33 = vpop.f32.mrf.mxu0  ;;  %1556 = vmatprep.subr.mxu1 %v1515_v34  ;;  %v1659_v34 = vld [vmem:[#allocation6 + $0x20] sm:$0xff] }
 0x8d6   :  { %917 = vrot.lane.b32.xlu1 %v906_v33, %s4575_s13  ;;  %v1514_v33 = vld [vmem:[%s5296_s21 + $0x80] sm:$0xff] }
 0x8d7   :  { %1557 = vmatpush1.msra.mxu1 %v1514_v33  ;;  %v1674_v33 = vld [vmem:[#allocation6 + $0x98] sm:$0xff] }
 0x8d8   :  { %1134 = vrot.lane.b32.xlu0 %v4914_v3, %s4574_s9  ;;  %1558 = vmatprep.subr.mxu1 %v1513_v53  ;;  %v1658_v53 = vld [vmem:[#allocation6 + $0x18] sm:$0xff] }
 0x8d9   :  { %1559 = vmatpush1.msra.mxu1 %v1512_v54  ;;  %v1673_v54 = vld [vmem:[#allocation6 + $0x90] sm:$0xff] }
 0x8da   :  { %1132 = vrot.lane.b32.xlu1 %v4916_v4, %s4574_s9  ;;  %1560 = vmatprep.subr.mxu1 %v1511_v55  ;;  %v1657_v55 = vld [vmem:[#allocation6 + $0x10] sm:$0xff] }
 0x8db   :  { %1561 = vmatpush1.msra.mxu1 %v1510_v57  ;;  %v1672_v57 = vld [vmem:[#allocation6 + $0x88] sm:$0xff] }
 0x8dc   :  { %1562 = vmatprep.subr.mxu1 %v1509_v58  ;;  %v1656_v58 = vld [vmem:[#allocation6 + $0x8] sm:$0xff] }
 0x8dd   :  { %1563 = vmatpush1.msra.mxu1 %v1508_v59  ;;  %v1671_v59 = vld [vmem:[#allocation6 + $0x80] sm:$0xff] }
 0x8de   :  { %1564 = vmatprep.subr.mxu1 %v1507_v60  ;;  %v1655_v60 = vld [vmem:[#allocation6] sm:$0xff] }
 0x8df   :  { %1565 = vmatpush1.msra.mxu1 %v1506_v61  ;;  %v1530_v61 = vld [vmem:[%s5299_s19] sm:$0x3] }
 0x8e0   :  { %1566 = vmatprep.subr.mxu1 %v1505_v62  ;;  %v1535_v62 = vrot.slane %v1530_v61, %v4801_v16 }
 0x8e1   :  { %1567 = vmatpush1.msra.mxu1 %v1504_v63  ;;  %v1539_v63 = vrot.slane %v1530_v61, %v4808_v21 }
 0x8e2   :  { %1568 = vmatprep.subr.mxu1 %v1503_v0 }
 0x946   :  { %v920_v1 = vpop.permute.xlu0 %919 }
 0x947   :  { %925 = vst.msk [vmem:[#allocation2 + $0x8] sm:$0xff] %vm923_vm4, %v920_v1  ;;  %v1502_v1 = vld [vmem:[%s5296_s21 + $0x20] sm:$0xff] }
 0x948   :  { %v918_v2 = vpop.permute.xlu1 %917  ;;  %1569 = vmatpush1.msra.mxu1 %v1502_v1 }
 0x949   :  { %924 = vst.msk [vmem:[#allocation2] sm:$0xff] %vm923_vm4, %v918_v2  ;;  %v1501_v2 = vld [vmem:[%s5296_s21 + $0x18] sm:$0xff] }
 0x94a   :  { %v1135_v3 = vpop.permute.xlu0 %1134  ;;  %1570 = vmatprep.subr.mxu1 %v1501_v2 }
 0x94b   :  { %1140 = vst.msk [vmem:[#allocation2 + $0x8] sm:$0xff] %vm1138_vm5, %v1135_v3  ;;  %v1500_v3 = vld [vmem:[%s5296_s21 + $0x10] sm:$0xff] }
 0x94c   :  { %v1133_v4 = vpop.permute.xlu1 %1132  ;;  %1571 = vmatpush1.msra.mxu1 %v1500_v3 }
 0x94d   :  { %1139 = vst.msk [vmem:[#allocation2] sm:$0xff] %vm1138_vm5, %v1133_v4  ;;  %v1499_v4 = vld [vmem:[%s5296_s21 + $0x8] sm:$0xff] }
 0x94e   :  { %1572 = vmatprep.subr.mxu1 %v1499_v4 }
 0x94f   :  { %1573 = vmatpush1.msra.mxu1 %v1498_v5 }
 0x96b   :  { %v3966_v12 = vpop.f32.mrf.mxu0 }
 0x96c   :  { %1349 = vrot.lane.b32.xlu0 %v3966_v12, %s4573_s5 }
 0x96d   :  { %v1336_v13 = vpop.f32.mrf.mxu0 }
 0x96e   :  { %1347 = vrot.lane.b32.xlu1 %v1336_v13, %s4573_s5 }
 0x9de   :  { %v1350_v14 = vpop.permute.xlu0 %1349 }
 0x9df   :  { %1355 = vst.msk [vmem:[#allocation2 + $0x8] sm:$0xff] %vm1353_vm6, %v1350_v14 }
 0x9e0   :  { %v1348_v17 = vpop.permute.xlu1 %1347 }
 0x9e1   :  { %1354 = vst.msk [vmem:[#allocation2] sm:$0xff] %vm1353_vm6, %v1348_v17 }
 0x9e6   :  { %v1357_v19 = vld [vmem:[#allocation2 + $0x8] sm:$0xff] }
 0x9e8   :  { %v1356_v18 = vld [vmem:[#allocation2] sm:$0xff] }
 0x9e9   :  { %3999 = vmatprep.mubr.f32.mxu0 %v1356_v18 }
 0x9ea   :  { %4000 = vmatmul.mubr.f32.vlgmr.msra.gmra.mxu0 %v1357_v19 }
 0xaaa   :  { %v4001_v23 = vpop.f32.mrf.mxu0 }
 0xaab   :  { %v1453_v24 = vadd.f32 %v4001_v23, %v3592_v22 }
 0xaac   :  { %v1447_v26 = vpop.f32.mrf.mxu0 }
 0xaad   :  { %v1448_v29 = vadd.f32 %v3592_v22, %v1447_v26  ;;  %v1457_v30 = vadd.f32 %v1453_v24, %v4792_v10  ;;  %v3593_v22 = vld [vmem:[%s5297_s29] ss:$0 sm:$0xff] }
 0xaae   :  { %v3594_v24 = vld [vmem:[%s5298_s3] ss:$0 sm:$0xff] }
 0xaaf   :  { %1462 = vadd.xlane.f32.xlu0 %v1457_v30  ;;  %v1456_v32 = vadd.f32 %v1448_v29, %v4786_v7 }
 0xab1   :  { %1460 = vadd.xlane.f32.xlu1 %v1456_v32 }
 0xb38   :  { %v1463_v10 = vpop.xlane.xlu0 %1462 }
 0xb39   :  { %v1465_v42 = vmul.f32 0.0078125, %v1463_v10  ;;  %v1667_v10 = vld [vmem:[#allocation6 + $0x60] sm:$0xff] }
 0xb3a   :  { %v1461_v7 = vpop.xlane.xlu1 %1460 }
 0xb3b   :  { %v4977_v44 = vsub.f32 %v1457_v30, %v1465_v42  ;;  %v1464_v45 = vmul.f32 0.0078125, %v1461_v7  ;;  %v1682_v42 = vld [vmem:[#allocation6 + $0xd8] sm:$0xff] }
 0xb3c   :  { %v1666_v7 = vld [vmem:[#allocation6 + $0x58] sm:$0xff] }
 0xb3d   :  { %v4979_v46 = vsub.f32 %v1456_v32, %v1464_v45  ;;  %v1469_v47 = vmul.f32 %v4977_v44, %v4977_v44  ;;  %v1686_v32 = vld [vmem:[#allocation6 + $0xf8] sm:$0xff]  ;;  %v1665_v45 = vld [vmem:[#allocation6 + $0x50] sm:$0xff] }
 0xb3e   :  { %3698 = vmatprep.subr.mxu0 %v1686_v32 }
 0xb3f   :  { %1472 = vadd.xlane.f32.xlu1 %v1469_v47  ;;  %v1468_v48 = vmul.f32 %v4979_v46, %v4979_v46  ;;  %3699 = vmatpush3.msra.mxu0 %v1670_v35  ;;  %v1664_v47 = vld [vmem:[#allocation6 + $0x48] sm:$0xff] }
 0xb40   :  { %3700 = vmatprep.subr.mxu0 %v1685_v36 }
 0xb41   :  { %1470 = vadd.xlane.f32.xlu0 %v1468_v48  ;;  %3701 = vmatpush3.msra.mxu0 %v1669_v37  ;;  %v1679_v48 = vld [vmem:[#allocation6 + $0xc0] sm:$0xff] }
 0xb42   :  { %3702 = vmatprep.subr.mxu0 %v1684_v38 }
 0xb43   :  { %3703 = vmatpush3.msra.mxu0 %v1668_v39 }
 0xb44   :  { %3704 = vmatprep.subr.mxu0 %v1683_v41 }
 0xb45   :  { %3705 = vmatpush3.msra.mxu0 %v1667_v10 }
 0xb46   :  { %3706 = vmatprep.subr.mxu0 %v1682_v42 }
 0xb47   :  { %3707 = vmatpush3.msra.mxu0 %v1666_v7 }
 0xbc8   :  { %v1473_v6 = vpop.xlane.xlu1 %1472 }
 0xbc9   :  { %v1475_v8 = vmul.f32 0.0078125, %v1473_v6 }
 0xbca   :  { %v1471_v9 = vpop.xlane.xlu0 %1470 }
 0xbcb   :  { %v1477_v11 = vadd.f32 1e-05, %v1475_v8  ;;  %v1474_v12 = vmul.f32 0.0078125, %v1471_v9 }
 0xbcd   :  { %4290 = vrsqrt.f32 %v1477_v11  ;;  %v1476_v13 = vadd.f32 1e-05, %v1474_v12 }
 0xbcf   :  { %4292 = vrsqrt.f32 %v1476_v13 }
 0xbda   :  { %v4291_v14 = vpop.eup %4290 }
 0xbdb   :  { %v1481_v19 = vmul.f32 %v4291_v14, %v4977_v44  ;;  %v1681_v44 = vld [vmem:[#allocation6 + $0xd0] sm:$0xff] }
 0xbdc   :  { %v4293_v17 = vpop.eup %4292  ;;  %3708 = vmatprep.subr.mxu0 %v1681_v44 }
 0xbdd   :  { %v1480_v18 = vmul.f32 %v4293_v17, %v4979_v46  ;;  %v1489_v29 = vmul.f32 %v3593_v22, %v1481_v19  ;;  %v1680_v46 = vld [vmem:[#allocation6 + $0xc8] sm:$0xff]  ;;  %3709 = vmatpush3.msra.mxu0 %v1665_v45 }
 0xbde   :  { %3710 = vmatprep.subr.mxu0 %v1680_v46 }
 0xbdf   :  { %v1488_v23 = vmul.f32 %v3593_v22, %v1480_v18  ;;  %v5019_v30 = vadd.f32 %v3594_v24, %v1489_v29  ;;  %3711 = vmatpush3.msra.mxu0 %v1664_v47 }
 0xbe0   :  { %3712 = vmatprep.subr.mxu0 %v1679_v48 }
 0xbe1   :  { %v5015_v26 = vadd.f32 %v3594_v24, %v1488_v23  ;;  %3713 = vmatpush3.msra.mxu0 %v1663_v49 }
 0xbe2   :  { %3714 = vmatprep.subr.mxu0 %v1678_v27 }
 0xbe3   :  { %1607 = vmatmul.mubr.f32.vlgmr.msra.gmra.mxu1 %v5015_v26  ;;  %3715 = vmatpush3.msra.mxu0 %v1662_v50 }
 0xbe4   :  { %1612 = vmatprep.mubr.f32.mxu1 %v4570_v56  ;;  %3716 = vmatprep.subr.mxu0 %v1677_v51 }
 0xbe5   :  { %3717 = vmatpush3.msra.mxu0 %v1661_v20 }
 0xbe6   :  { %3718 = vmatprep.subr.mxu0 %v1676_v28 }
 0xbe7   :  { %1613 = vmatmul.mubr.f32.gmra.mxu1 %v5019_v30  ;;  %3719 = vmatpush3.msra.mxu0 %v1660_v52 }
 0xbe8   :  { %1940 = vmatprep.mubr.f32.mxu1 %v4570_v56  ;;  %3720 = vmatprep.subr.mxu0 %v1675_v31 }
 0xbe9   :  { %3721 = vmatpush3.msra.mxu0 %v1659_v34 }
 0xbea   :  { %3722 = vmatprep.subr.mxu0 %v1674_v33 }
 0xbeb   :  { %3723 = vmatpush3.msra.mxu0 %v1658_v53  ;;  %v3595_v53 = vld [vmem:[%s5300_s24] ss:$0 sm:$0xff] }
 0xbec   :  { %3724 = vmatprep.subr.mxu0 %v1673_v54 }
 0xbed   :  { %3725 = vmatpush3.msra.mxu0 %v1657_v55 }
 0xbee   :  { %3726 = vmatprep.subr.mxu0 %v1672_v57 }
 0xbef   :  { %3727 = vmatpush3.msra.mxu0 %v1656_v58 }
 0xbf0   :  { %3728 = vmatprep.subr.mxu0 %v1671_v59 }
 0xbf1   :  { %3729 = vmatpush3.msra.mxu0 %v1655_v60 }
 0xca3   :  { %v1608_v0 = vpop.f32.mrf.mxu1 }
 0xca4   :  { %v1609_v1 = vadd.f32 %v1608_v0, %v1535_v62  ;;  %v1857_v0 = vld [vmem:[#allocation8 + $0x170] sm:$0xff] }
 0xca5   :  { %v1610_v2 = vpop.f32.mrf.mxu1  ;;  %1876 = vmatprep.subr.mxu1 %v1857_v0 }
 0xca6   :  { %v1623_v3 = vmul.f32 0.044715, %v1609_v1  ;;  %v1611_v4 = vadd.f32 %v1610_v2, %v1539_v63  ;;  %v1619_v48 = vmul.f32 0.5, %v1609_v1  ;;  %v1854_v2 = vld [vmem:[#allocation8 + $0x158] sm:$0xff] }
 0xca7   :  { %v1614_v5 = vpop.f32.mrf.mxu1 }
 0xca8   :  { %v1627_v6 = vmul.f32 %v1623_v3, %v1609_v1  ;;  %v1624_v8 = vmul.f32 0.044715, %v1611_v4  ;;  %v1615_v9 = vadd.f32 %v1614_v5, %v1535_v62  ;;  %v1620_v45 = vmul.f32 0.5, %v1611_v4  ;;  %v1853_v3 = vld [vmem:[#allocation8 + $0x150] sm:$0xff]  ;;  %v1851_v5 = vld [vmem:[#allocation8 + $0x140] sm:$0xff] }
 0xca9   :  { %v1616_v11 = vpop.f32.mrf.mxu1 }
 0xcaa   :  { %v1631_v12 = vmul.f32 %v1627_v6, %v1609_v1  ;;  %v1628_v13 = vmul.f32 %v1624_v8, %v1611_v4  ;;  %v1625_v14 = vmul.f32 0.044715, %v1615_v9  ;;  %v1617_v17 = vadd.f32 %v1616_v11, %v1539_v63  ;;  %v1855_v6 = vld [vmem:[#allocation8 + $0x160] sm:$0xff]  ;;  %v1850_v8 = vld [vmem:[#allocation8 + $0x138] sm:$0xff] }
 0xcab   :  { %v1621_v52 = vmul.f32 0.5, %v1615_v9 }
 0xcac   :  { %v1635_v18 = vadd.f32 %v1631_v12, %v1609_v1  ;;  %v1629_v19 = vmul.f32 %v1625_v14, %v1615_v9  ;;  %v1626_v22 = vmul.f32 0.044715, %v1617_v17  ;;  %v1632_v23 = vmul.f32 %v1628_v13, %v1611_v4  ;;  %v1856_v1 = vld [vmem:[#allocation8 + $0x168] sm:$0xff] }
 0xcad   :  { %v1622_v20 = vmul.f32 0.5, %v1617_v17  ;;  %1877 = vmatpush1.msra.mxu1 %v1856_v1 }
 0xcae   :  { %v1630_v24 = vmul.f32 %v1626_v22, %v1617_v17  ;;  %v1636_v29 = vadd.f32 %v1632_v23, %v1611_v4  ;;  %v1639_v32 = vmul.f32 0.7978846, %v1635_v18  ;;  %v1633_v35 = vmul.f32 %v1629_v19, %v1615_v9  ;;  %v1858_v4 = vld [vmem:[#allocation8 + $0x178] sm:$0xff]  ;;  %1878 = vmatprep.subr.mxu1 %v1854_v2  ;;  %v1845_v22 = vld [vmem:[#allocation8 + $0x110] sm:$0xff]  ;;  %v1852_v23 = vld [vmem:[#allocation8 + $0x148] sm:$0xff] }
 0xcaf   :  { %4002 = vmatprep.subr.mxu0 %v1858_v4  ;;  %1879 = vmatpush1.msra.mxu1 %v1853_v3 }
 0xcb0   :  { %v1640_v36 = vmul.f32 0.7978846, %v1636_v29  ;;  %4294 = vtanh.f32 %v1639_v32  ;;  %v1634_v37 = vmul.f32 %v1630_v24, %v1617_v17  ;;  %v1637_v38 = vadd.f32 %v1633_v35, %v1615_v9  ;;  %1880 = vmatprep.subr.mxu1 %v1851_v5  ;;  %v1847_v9 = vld [vmem:[#allocation8 + $0x120] sm:$0xff]  ;;  %v1844_v24 = vld [vmem:[#allocation8 + $0x108] sm:$0xff]  ;;  %v1842_v29 = vld [vmem:[#allocation8 + $0xf8] sm:$0xff] }
 0xcb1   :  { %1881 = vmatpush1.msra.mxu1 %v1850_v8  ;;  %v1849_v32 = vld [vmem:[#allocation8 + $0x130] sm:$0xff] }
 0xcb2   :  { %4296 = vtanh.f32 %v1640_v36  ;;  %v1638_v39 = vadd.f32 %v1634_v37, %v1617_v17  ;;  %v1641_v41 = vmul.f32 0.7978846, %v1637_v38  ;;  %v1841_v35 = vld [vmem:[#allocation8 + $0xf0] sm:$0xff]  ;;  %v1839_v36 = vld [vmem:[#allocation8 + $0xe0] sm:$0xff]  ;;  %v1846_v37 = vld [vmem:[#allocation8 + $0x118] sm:$0xff] }
 0xcb3   :  { %v1838_v38 = vld [vmem:[#allocation8 + $0xd8] sm:$0xff] }
 0xcb4   :  { %v1642_v10 = vmul.f32 0.7978846, %v1638_v39  ;;  %4298 = vtanh.f32 %v1641_v41  ;;  %v1836_v39 = vld [vmem:[#allocation8 + $0xc8] sm:$0xff]  ;;  %v1843_v41 = vld [vmem:[#allocation8 + $0x100] sm:$0xff] }
 0xcb6   :  { %4300 = vtanh.f32 %v1642_v10  ;;  %v1835_v10 = vld [vmem:[#allocation8 + $0xc0] sm:$0xff] }
 0xcbd   :  { %v4295_v42 = vpop.eup %4294 }
 0xcbe   :  { %v1647_v44 = vadd.f32 1.0, %v4295_v42  ;;  %v1833_v42 = vld [vmem:[#allocation8 + $0xb0] sm:$0xff] }
 0xcbf   :  { %v4297_v7 = vpop.eup %4296 }
 0xcc0   :  { %v1648_v46 = vadd.f32 1.0, %v4297_v7  ;;  %v1651_v50 = vmul.f32 %v1647_v44, %v1619_v48  ;;  %v1840_v7 = vld [vmem:[#allocation8 + $0xe8] sm:$0xff]  ;;  %v1827_v48 = vld [vmem:[#allocation8 + $0x80] sm:$0xff] }
 0xcc1   :  { %v4299_v47 = vpop.eup %4298  ;;  %v1832_v44 = vld [vmem:[#allocation8 + $0xa8] sm:$0xff] }
 0xcc2   :  { %v1652_v49 = vmul.f32 %v1648_v46, %v1620_v45  ;;  %v1649_v51 = vadd.f32 1.0, %v4299_v47  ;;  %v1830_v45 = vld [vmem:[#allocation8 + $0x98] sm:$0xff]  ;;  %v1837_v46 = vld [vmem:[#allocation8 + $0xd0] sm:$0xff] }
 0xcc3   :  { %v4301_v27 = vpop.eup %4300  ;;  %v1829_v47 = vld [vmem:[#allocation8 + $0x90] sm:$0xff] }
 0xcc4   :  { %1758 = vmatprep.mubr.f32.mxu0 %v1652_v49  ;;  %v1650_v28 = vadd.f32 1.0, %v4301_v27  ;;  %v1653_v34 = vmul.f32 %v1649_v51, %v1621_v52  ;;  %v1834_v49 = vld [vmem:[#allocation8 + $0xb8] sm:$0xff]  ;;  %v1831_v51 = vld [vmem:[#allocation8 + $0xa0] sm:$0xff]  ;;  %v1828_v52 = vld [vmem:[#allocation8 + $0x88] sm:$0xff] }
 0xcc5   :  { %1759 = vmatmul.mubr.f32.vlgmr.msra.gmra.mxu0 %v1651_v50  ;;  %v1826_v27 = vld [vmem:[#allocation8 + $0x78] sm:$0xff]  ;;  %v1824_v50 = vld [vmem:[#allocation8 + $0x68] sm:$0xff] }
 0xcc6   :  { %v1654_v31 = vmul.f32 %v1650_v28, %v1622_v20  ;;  %4003 = vmatpush3.msra.mxu0 %v1858_v4  ;;  %v1823_v20 = vld [vmem:[#allocation8 + $0x60] sm:$0xff]  ;;  %v1821_v28 = vld [vmem:[#allocation8 + $0x50] sm:$0xff] }
 0xcc7   :  { %4004 = vmatprep.subr.mxu0 %v1855_v6 }
 0xcc8   :  { %1763 = vmatprep.mubr.f32.mxu0 %v1654_v31  ;;  %4005 = vmatpush3.msra.mxu0 %v1855_v6  ;;  %v1820_v31 = vld [vmem:[#allocation8 + $0x48] sm:$0xff]  ;;  %v3596_v6 = vld [vmem:[%s5301_s4] ss:$0 sm:$0xff] }
 0xcc9   :  { %1764 = vmatmul.mubr.f32.gmra.mxu0 %v1653_v34  ;;  %4006 = vmatprep.subr.mxu0 %v1852_v23  ;;  %v1818_v34 = vld [vmem:[#allocation8 + $0x38] sm:$0xff] }
 0xcca   :  { %4007 = vmatpush3.msra.mxu0 %v1852_v23 }
 0xccb   :  { %4008 = vmatprep.subr.mxu0 %v1849_v32 }
 0xccc   :  { %4009 = vmatpush3.msra.mxu0 %v1849_v32 }
 0xccd   :  { %4010 = vmatprep.subr.mxu0 %v1846_v37 }
 0xcce   :  { %4011 = vmatpush3.msra.mxu0 %v1846_v37 }
 0xccf   :  { %4012 = vmatprep.subr.mxu0 %v1843_v41 }
 0xcd0   :  { %4013 = vmatpush3.msra.mxu0 %v1843_v41 }
 0xcd1   :  { %4014 = vmatprep.subr.mxu0 %v1840_v7 }
 0xcd2   :  { %4015 = vmatpush3.msra.mxu0 %v1840_v7 }
 0xcd3   :  { %4016 = vmatprep.subr.mxu0 %v1837_v46 }
 0xcd4   :  { %4017 = vmatpush3.msra.mxu0 %v1837_v46 }
 0xcd5   :  { %4018 = vmatprep.subr.mxu0 %v1834_v49 }
 0xcd6   :  { %4019 = vmatpush3.msra.mxu0 %v1834_v49 }
 0xcd7   :  { %4020 = vmatprep.subr.mxu0 %v1831_v51 }
 0xcd8   :  { %4021 = vmatpush3.msra.mxu0 %v1831_v51 }
 0xcd9   :  { %4022 = vmatprep.subr.mxu0 %v1828_v52 }
 0xcda   :  { %4023 = vmatpush3.msra.mxu0 %v1828_v52 }
 0xd85   :  { %v3730_v33 = vpop.f32.mrf.mxu0 }
 0xd87   :  { %v3731_v54 = vpop.f32.mrf.mxu0 }
 0xd88   :  { %v3732_v55 = vadd.f32 %v3731_v54, %v3730_v33  ;;  %v1825_v33 = vld [vmem:[#allocation8 + $0x70] sm:$0xff]  ;;  %v1815_v54 = vld [vmem:[#allocation8 + $0x20] sm:$0xff] }
 0xd89   :  { %v3733_v57 = vpop.f32.mrf.mxu0  ;;  %4024 = vmatprep.subr.mxu0 %v1825_v33 }
 0xd8a   :  { %v1761_v58 = vadd.f32 %v3732_v55, %v3595_v53  ;;  %v1822_v55 = vld [vmem:[#allocation8 + $0x58] sm:$0xff]  ;;  %4025 = vmatpush3.msra.mxu0 %v1825_v33 }
 0xd8b   :  { %v3734_v59 = vpop.f32.mrf.mxu0  ;;  %4026 = vmatprep.subr.mxu0 %v1822_v55 }
 0xd8c   :  { %v3735_v60 = vadd.f32 %v3734_v59, %v3733_v57  ;;  %v1769_v61 = vadd.f32 %v1761_v58, %v5015_v26  ;;  %v1848_v26 = vld [vmem:[#allocation8 + $0x128] sm:$0xff]  ;;  %v1814_v57 = vld [vmem:[#allocation8 + $0x18] sm:$0xff]  ;;  %v1819_v59 = vld [vmem:[#allocation8 + $0x40] sm:$0xff]  ;;  %4027 = vmatpush3.msra.mxu0 %v1822_v55 }
 0xd8d   :  { %1882 = vmatprep.subr.mxu1 %v1848_v26  ;;  %v1812_v58 = vld [vmem:[#allocation8 + $0x8] sm:$0xff]  ;;  %4028 = vmatprep.subr.mxu0 %v1819_v59  ;;  %v3597_v26 = vld [vmem:[%s5302_s15] ss:$0 sm:$0xff] }
 0xd8e   :  { %v1766_v62 = vadd.f32 %v3735_v60, %v3595_v53  ;;  %1773 = vadd.xlane.f32.xlu0 %v1769_v61  ;;  %1883 = vmatpush1.msra.mxu1 %v1847_v9  ;;  %v1817_v53 = vld [vmem:[#allocation8 + $0x30] sm:$0xff]  ;;  %v1811_v60 = vld [vmem:[#allocation8] sm:$0xff] }
 0xd8f   :  { %1884 = vmatprep.subr.mxu1 %v1845_v22  ;;  %4029 = vmatpush3.msra.mxu0 %v1819_v59 }
 0xd90   :  { %v1770_v63 = vadd.f32 %v1766_v62, %v5019_v30  ;;  %1885 = vmatpush1.msra.mxu1 %v1844_v24  ;;  %v1813_v62 = vld [vmem:[#allocation8 + $0x10] sm:$0xff] }
 0xd91   :  { %1886 = vmatprep.subr.mxu1 %v1842_v29 }
 0xd92   :  { %1775 = vadd.xlane.f32.xlu1 %v1770_v63  ;;  %1887 = vmatpush1.msra.mxu1 %v1841_v35 }
 0xd93   :  { %1888 = vmatprep.subr.mxu1 %v1839_v36 }
 0xd94   :  { %1889 = vmatpush1.msra.mxu1 %v1838_v38 }
 0xd95   :  { %1890 = vmatprep.subr.mxu1 %v1836_v39 }
 0xd96   :  { %1891 = vmatpush1.msra.mxu1 %v1835_v10 }
 0xd97   :  { %1892 = vmatprep.subr.mxu1 %v1833_v42 }
 0xd98   :  { %1893 = vmatpush1.msra.mxu1 %v1832_v44 }
 0xd99   :  { %1894 = vmatprep.subr.mxu1 %v1830_v45 }
 0xd9a   :  { %1895 = vmatpush1.msra.mxu1 %v1829_v47 }
 0xd9b   :  { %1896 = vmatprep.subr.mxu1 %v1827_v48 }
 0xd9c   :  { %1897 = vmatpush1.msra.mxu1 %v1826_v27 }
 0xd9d   :  { %1898 = vmatprep.subr.mxu1 %v1824_v50 }
 0xd9e   :  { %1899 = vmatpush1.msra.mxu1 %v1823_v20 }
 0xd9f   :  { %1900 = vmatprep.subr.mxu1 %v1821_v28 }
 0xda0   :  { %1901 = vmatpush1.msra.mxu1 %v1820_v31 }
 0xda1   :  { %1902 = vmatprep.subr.mxu1 %v1818_v34 }
 0xda2   :  { %1903 = vmatpush1.msra.mxu1 %v1817_v53 }
 0xda3   :  { %1904 = vmatprep.subr.mxu1 %v1815_v54 }
 0xda4   :  { %1905 = vmatpush1.msra.mxu1 %v1814_v57 }
 0xda5   :  { %1906 = vmatprep.subr.mxu1 %v1812_v58 }
 0xda6   :  { %1907 = vmatpush1.msra.mxu1 %v1811_v60 }
 0xe17   :  { %v1774_v30 = vpop.xlane.xlu0 %1773 }
 0xe18   :  { %v1777_v11 = vmul.f32 0.0078125, %v1774_v30 }
 0xe1a   :  { %v5029_v12 = vsub.f32 %v1769_v61, %v1777_v11  ;;  %v1816_v61 = vld [vmem:[#allocation8 + $0x28] sm:$0xff] }
 0xe1b   :  { %v1776_v13 = vpop.xlane.xlu1 %1775  ;;  %4030 = vmatprep.subr.mxu0 %v1816_v61 }
 0xe1c   :  { %v1778_v14 = vmul.f32 0.0078125, %v1776_v13  ;;  %v1781_v17 = vmul.f32 %v5029_v12, %v5029_v12  ;;  %4031 = vmatpush3.msra.mxu0 %v1816_v61 }
 0xe1d   :  { %4032 = vmatprep.subr.mxu0 %v1813_v62 }
 0xe1e   :  { %v5033_v18 = vsub.f32 %v1770_v63, %v1778_v14  ;;  %1783 = vadd.xlane.f32.xlu0 %v1781_v17  ;;  %4033 = vmatpush3.msra.mxu0 %v1813_v62 }
 0xe20   :  { %v1782_v19 = vmul.f32 %v5033_v18, %v5033_v18 }
 0xe22   :  { %1785 = vadd.xlane.f32.xlu1 %v1782_v19 }
 0xea7   :  { %v1784_v63 = vpop.xlane.xlu0 %1783 }
 0xea8   :  { %v1787_v0 = vmul.f32 0.0078125, %v1784_v63 }
 0xeaa   :  { %v1789_v1 = vadd.f32 1e-05, %v1787_v0 }
 0xeab   :  { %v1786_v2 = vpop.xlane.xlu1 %1785 }
 0xeac   :  { %4302 = vrsqrt.f32 %v1789_v1  ;;  %v1788_v3 = vmul.f32 0.0078125, %v1786_v2 }
 0xeae   :  { %v1790_v4 = vadd.f32 1e-05, %v1788_v3 }
 0xeb0   :  { %4304 = vrsqrt.f32 %v1790_v4 }
 0xeb9   :  { %v4303_v5 = vpop.eup %4302 }
 0xeba   :  { %v1793_v8 = vmul.f32 %v4303_v5, %v5029_v12  ;;  %v1859_v12 = vld [vmem:[%s5303_s16] sm:$0x7] }
 0xebb   :  { %v1864_v19 = vrot.slane %v1859_v12, %v4801_v16  ;;  %v1868_v29 = vrot.slane %v1859_v12, %v4808_v21  ;;  %v1872_v37 = vrot.slane %v1859_v12, %v354_v25 }
 0xebc   :  { %v1801_v9 = vmul.f32 %v3596_v6, %v1793_v8 }
 0xebd   :  { %v4305_v30 = vpop.eup %4304 }
 0xebe   :  { %v5040_v11 = vadd.f32 %v3597_v26, %v1801_v9  ;;  %v1794_v13 = vmul.f32 %v4305_v30, %v5033_v18 }
 0xec0   :  { %1941 = vmatmul.mubr.f32.vlgmr.msra.gmra.mxu1 %v5040_v11  ;;  %4034 = vmatprep.mubr.f32.mxu0 %v5040_v11  ;;  %v1802_v14 = vmul.f32 %v3596_v6, %v1794_v13 }
 0xec1   :  { %1946 = vmatprep.mubr.f32.mxu1 %v4570_v56 }
 0xec2   :  { %v5046_v17 = vadd.f32 %v3597_v26, %v1802_v14 }
 0xec4   :  { %1947 = vmatmul.mubr.f32.gmra.mxu1 %v5046_v17  ;;  %4035 = vmatmul.mubr.f32.vlgmr.msra.gmra.mxu0 %v5046_v17 }
 0xf80   :  { %v1942_v22 = vpop.f32.mrf.mxu1 }
 0xf81   :  { %v5052_v23 = vadd.f32 %v1942_v22, %v1864_v19 }
 0xf82   :  { %v1944_v18 = vpop.f32.mrf.mxu1 }
 0xf83   :  { %4041 = vmatprep.mubr.msk.f32.mxu1 %vm511_vm0, %v5052_v23  ;;  %v5059_v36 = vadd.f32 %v1944_v18, %v1868_v29 }
 0xf84   :  { %v1948_v24 = vpop.f32.mrf.mxu1  ;;  %v4036_v38 = vpop.f32.mrf.mxu0 }
 0xf85   :  { %v5069_v39 = vadd.f32 %v4036_v38, %v1872_v37  ;;  %v5073_v10 = vadd.f32 %v1948_v24, %v1864_v19 }
 0xf86   :  { %v1950_v32 = vpop.f32.mrf.mxu1  ;;  %v2019_v41 = vpop.f32.mrf.mxu0 }
 0xf87   :  { %v5057_v35 = vadd.f32 %v1950_v32, %v1868_v29  ;;  %v5076_v15 = vadd.f32 %v2019_v41, %v1872_v37 }
 0xf89   :  { %4037 = vmatprep.subr.msk.mxu1 %vm511_vm0, %v5057_v35 }
 0xf8a   :  { %4038 = vmatpush3.xpose.msk.msra.mxu1 %vm511_vm0, %v5057_v35 }
 0xf8b   :  { %4039 = vmatprep.subr.msk.mxu1 %vm511_vm0, %v5059_v36 }
 0xf8e   :  { %4040 = vmatpush3.xpose.msk.msra.mxu1 %vm511_vm0, %v5059_v36 }
 0xf8f   :  { %4044 = vmatprep.subr.mxu1 %v5069_v39 }
 0xf91   :  { %4042 = vmatmul.mubr.msk.f32.vlgmr.msra.gmra.mxu1 %vm511_vm0, %v5073_v10 }
 0xf92   :  { %4045 = vmatpush3.msra.mxu1 %v5069_v39 }
 0xf93   :  { %4046 = vmatprep.subr.mxu1 %v5076_v15 }
 0xf94   :  { %4047 = vmatpush3.msra.mxu1 %v5076_v15 }
0x1051   :  { %v4043_v25 = vpop.f32.mrf.mxu1 }
0x1052   :  { %v2116_v42 = vmul.f32 0.17677669, %v4043_v25 }
0x1053   :  { %v2106_v7 = vpop.f32.mrf.mxu1 }
0x1054   :  { %v2115_v44 = vmul.f32 0.17677669, %v2106_v7  ;;  %v2118_v45 = vadd.f32 %v2116_v42, %v4841_v40 }
0x1056   :  { %v2122_v46 = vsel %vm603_vm3, %v2118_v45, -inf  ;;  %v2117_v47 = vadd.f32 %v2115_v44, %v4843_v43 }
0x1057   :  { %2123 = vmax.xlane.f32.xlu1 %v2122_v46 }
0x1058   :  { %v2119_v48 = vsel %vm603_vm3, %v2117_v47, -inf }
0x1059   :  { %2120 = vmax.xlane.f32.xlu0 %v2119_v48 }
0x10e0   :  { %v2124_v49 = vpop.xlane.xlu1 %2123 }
0x10e1   :  { %v2126_v27 = vsub.f32 %v2118_v45, %v2124_v49 }
0x10e2   :  { %v2121_v50 = vpop.xlane.xlu0 %2120 }
0x10e3   :  { %v2129_v51 = vmul.f32 1.442695, %v2126_v27  ;;  %v2125_v20 = vsub.f32 %v2117_v47, %v2121_v50 }
0x10e5   :  { %4306 = vpow2.f32 %v2129_v51  ;;  %v2127_v28 = vmul.f32 1.442695, %v2125_v20 }
0x10e7   :  { %4308 = vpow2.f32 %v2127_v28 }
0x10f2   :  { %v4307_v52 = vpop.eup %4306 }
0x10f3   :  { %v2134_v31 = vsel %vm603_vm3, %v4307_v52, 0.0 }
0x10f4   :  { %v4309_v34 = vpop.eup %4308  ;;  %2135 = vadd.xlane.f32.xlu1 %v2134_v31 }
0x10f5   :  { %v2131_v33 = vsel %vm603_vm3, %v4309_v34, 0.0 }
0x10f6   :  { %2132 = vadd.xlane.f32.xlu0 %v2131_v33 }
0x1105   :  { %2228 = vrot.lane.b32.xlu1 %v5059_v36, %s4573_s5 }
0x1109   :  { %2224 = vrot.lane.b32.xlu1 %v5052_v23, %s4573_s5 }
0x110c   :  { %2230 = vrot.lane.b32.xlu0 %v5057_v35, %s4573_s5 }
0x1110   :  { %2226 = vrot.lane.b32.xlu0 %v5073_v10, %s4573_s5 }
0x117d   :  { %v2136_v53 = vpop.xlane.xlu1 %2135 }
0x117e   :  { %4310 = vrcp.f32 %v2136_v53 }
0x117f   :  { %v2133_v54 = vpop.xlane.xlu0 %2132 }
0x1180   :  { %4312 = vrcp.f32 %v2133_v54 }
0x1181   :  { %v2229_v57 = vpop.permute.xlu1 %2228 }
0x1183   :  { %v2231_v55 = vpop.permute.xlu0 %2230 }
0x1184   :  { %4051 = vmatprep.subr.msk.mxu1 %vm511_vm0, %v2231_v55 }
0x1185   :  { %v2225_v62 = vpop.permute.xlu1 %2224 }
0x1187   :  { %v2227_v63 = vpop.permute.xlu0 %2226 }
0x118b   :  { %v4311_v58 = vpop.eup %4310 }
0x118c   :  { %v2140_v61 = vmul.f32 %v4311_v58, %v4307_v52 }
0x118d   :  { %v4313_v59 = vpop.eup %4312 }
0x118e   :  { %v2139_v60 = vmul.f32 %v4313_v59, %v4309_v34 }
0x1190   :  { %4048 = vmatprep.mubr.msk.f32.mxu1 %vm603_vm3, %v2139_v60 }
0x1191   :  { %4049 = vmatmul.mubr.msk.f32.vlgmr.msra.gmra.mxu1 %vm603_vm3, %v2140_v61 }
0x1192   :  { %4052 = vmatpush3.xpose.msk.msra.mxu1 %vm511_vm0, %v2231_v55  ;;  %4055 = vmatprep.mubr.msk.f32.mxu1 %vm511_vm0, %v2225_v62 }
0x1193   :  { %4053 = vmatprep.subr.msk.mxu1 %vm511_vm0, %v2229_v57 }
0x1196   :  { %4054 = vmatpush3.xpose.msk.msra.mxu1 %vm511_vm0, %v2229_v57 }
0x1199   :  { %4056 = vmatmul.mubr.msk.f32.vlgmr.msra.gmra.mxu1 %vm511_vm0, %v2227_v63 }
0x1251   :  { %v4050_v0 = vpop.f32.mrf.mxu1 }
0x1252   :  { %2223 = vst.msk [vmem:[#allocation2 + $0x8] sm:$0xff] %vm511_vm0, %v4050_v0 }
0x1253   :  { %v2213_v1 = vpop.f32.mrf.mxu1 }
0x1254   :  { %2222 = vst.msk [vmem:[#allocation2] sm:$0xff] %vm511_vm0, %v2213_v1 }
0x1259   :  { %v4057_v2 = vpop.f32.mrf.mxu1 }
0x125a   :  { %v2316_v3 = vmul.f32 0.17677669, %v4057_v2 }
0x125b   :  { %v2306_v4 = vpop.f32.mrf.mxu1 }
0x125c   :  { %v2315_v5 = vmul.f32 0.17677669, %v2306_v4  ;;  %v2318_v6 = vadd.f32 %v2316_v3, %v4841_v40 }
0x125e   :  { %v2322_v8 = vsel %vm603_vm3, %v2318_v6, -inf  ;;  %v2317_v26 = vadd.f32 %v2315_v5, %v4843_v43 }
0x125f   :  { %2323 = vmax.xlane.f32.xlu0 %v2322_v8 }
0x1260   :  { %v2319_v9 = vsel %vm603_vm3, %v2317_v26, -inf }
0x1261   :  { %2320 = vmax.xlane.f32.xlu1 %v2319_v9 }
0x12e8   :  { %v2324_v30 = vpop.xlane.xlu0 %2323 }
0x12e9   :  { %v2326_v13 = vsub.f32 %v2318_v6, %v2324_v30 }
0x12ea   :  { %v2321_v14 = vpop.xlane.xlu1 %2320 }
0x12eb   :  { %v2329_v12 = vmul.f32 1.442695, %v2326_v13  ;;  %v2325_v19 = vsub.f32 %v2317_v26, %v2321_v14 }
0x12ed   :  { %4314 = vpow2.f32 %v2329_v12  ;;  %v2327_v22 = vmul.f32 1.442695, %v2325_v19 }
0x12ef   :  { %4316 = vpow2.f32 %v2327_v22 }
0x12fa   :  { %v4315_v18 = vpop.eup %4314 }
0x12fb   :  { %v2334_v24 = vsel %vm603_vm3, %v4315_v18, 0.0 }
0x12fc   :  { %v4317_v29 = vpop.eup %4316  ;;  %2335 = vadd.xlane.f32.xlu1 %v2334_v24 }
0x12fd   :  { %v2331_v32 = vsel %vm603_vm3, %v4317_v29, 0.0 }
0x12fe   :  { %2332 = vadd.xlane.f32.xlu0 %v2331_v32 }
0x130d   :  { %2343 = vrot.lane.b32.xlu1 %v5076_v15, %s4573_s5 }
0x1311   :  { %2446 = vrot.lane.b32.xlu1 %v5057_v35, %s4574_s9 }
0x1314   :  { %2345 = vrot.lane.b32.xlu0 %v5069_v39, %s4573_s5 }
0x1315   :  { %2440 = vrot.lane.b32.xlu1 %v5052_v23, %s4574_s9 }
0x1318   :  { %2444 = vrot.lane.b32.xlu0 %v5059_v36, %s4574_s9 }
0x1319   :  { %2442 = vrot.lane.b32.xlu1 %v5073_v10, %s4574_s9 }
0x131c   :  { %2660 = vrot.lane.b32.xlu0 %v5057_v35, %s4575_s13 }
0x131d   :  { %2654 = vrot.lane.b32.xlu1 %v5052_v23, %s4575_s13 }
0x1320   :  { %2658 = vrot.lane.b32.xlu0 %v5059_v36, %s4575_s13 }
0x1324   :  { %2656 = vrot.lane.b32.xlu0 %v5073_v10, %s4575_s13 }
0x1385   :  { %v2336_v37 = vpop.xlane.xlu1 %2335 }
0x1386   :  { %4318 = vrcp.f32 %v2336_v37 }
0x1387   :  { %v2333_v38 = vpop.xlane.xlu0 %2332 }
0x1388   :  { %4320 = vrcp.f32 %v2333_v38 }
0x1389   :  { %v2344_v41 = vpop.permute.xlu1 %2343 }
0x138b   :  { %v2346_v25 = vpop.permute.xlu0 %2345 }
0x138c   :  { %4058 = vmatprep.subr.mxu1 %v2346_v25 }
0x138d   :  { %4059 = vmatpush3.msra.mxu1 %v2346_v25  ;;  %v2447_v42 = vpop.permute.xlu1 %2446 }
0x138e   :  { %4060 = vmatprep.subr.mxu1 %v2344_v41 }
0x138f   :  { %4061 = vmatpush3.msra.mxu1 %v2344_v41  ;;  %v2445_v36 = vpop.permute.xlu0 %2444 }
0x1390   :  { %4065 = vmatprep.subr.msk.mxu1 %vm511_vm0, %v2447_v42 }
0x1391   :  { %v2441_v7 = vpop.permute.xlu1 %2440 }
0x1393   :  { %v4319_v23 = vpop.eup %4318  ;;  %v2661_v46 = vpop.permute.xlu0 %2660 }
0x1394   :  { %v2340_v45 = vmul.f32 %v4319_v23, %v4315_v18 }
0x1395   :  { %v4321_v35 = vpop.eup %4320  ;;  %v2443_v10 = vpop.permute.xlu1 %2442 }
0x1396   :  { %v2339_v44 = vmul.f32 %v4321_v35, %v4317_v29 }
0x1397   :  { %v2659_v48 = vpop.permute.xlu0 %2658 }
0x1398   :  { %4062 = vmatprep.mubr.msk.f32.mxu1 %vm603_vm3, %v2339_v44 }
0x1399   :  { %4063 = vmatmul.mubr.msk.f32.vlgmr.msra.gmra.mxu1 %vm603_vm3, %v2340_v45  ;;  %v2655_v47 = vpop.permute.xlu1 %2654 }
0x139a   :  { %4066 = vmatpush3.xpose.msk.msra.mxu1 %vm511_vm0, %v2447_v42  ;;  %4069 = vmatprep.mubr.msk.f32.mxu1 %vm511_vm0, %v2441_v7 }
0x139b   :  { %4067 = vmatprep.subr.msk.mxu1 %vm511_vm0, %v2445_v36  ;;  %v2657_v49 = vpop.permute.xlu0 %2656 }
0x139e   :  { %4068 = vmatpush3.xpose.msk.msra.mxu1 %vm511_vm0, %v2445_v36 }
0x139f   :  { %4079 = vmatprep.subr.msk.mxu1 %vm511_vm0, %v2661_v46 }
0x13a1   :  { %4070 = vmatmul.mubr.msk.f32.vlgmr.msra.gmra.mxu1 %vm511_vm0, %v2443_v10 }
0x13a2   :  { %4080 = vmatpush3.xpose.msk.msra.mxu1 %vm511_vm0, %v2661_v46  ;;  %4083 = vmatprep.mubr.msk.f32.mxu1 %vm511_vm0, %v2655_v47  ;;  %v2885_v47 = vld [vmem:[#allocation9 + $0x78] sm:$0xff] }
0x13a3   :  { %4081 = vmatprep.subr.msk.mxu1 %vm511_vm0, %v2659_v48 }
0x13a6   :  { %4082 = vmatpush3.xpose.msk.msra.mxu1 %vm511_vm0, %v2659_v48  ;;  %v2884_v48 = vld [vmem:[#allocation9 + $0x70] sm:$0xff] }
0x13a9   :  { %4084 = vmatmul.mubr.msk.f32.vlgmr.msra.gmra.mxu1 %vm511_vm0, %v2657_v49  ;;  %v2883_v49 = vld [vmem:[#allocation9 + $0x68] sm:$0xff] }
0x13aa   :  { %3118 = vmatprep.mubr.f32.mxu1 %v4570_v56 }
0x1459   :  { %v4064_v27 = vpop.f32.mrf.mxu1 }
0x145b   :  { %v2421_v50 = vpop.f32.mrf.mxu1 }
0x1461   :  { %v4071_v51 = vpop.f32.mrf.mxu1 }
0x1462   :  { %v2532_v20 = vmul.f32 0.17677669, %v4071_v51  ;;  %v2880_v51 = vld [vmem:[#allocation9 + $0x50] sm:$0xff] }
0x1463   :  { %v2522_v28 = vpop.f32.mrf.mxu1 }
0x1464   :  { %v2531_v52 = vmul.f32 0.17677669, %v2522_v28  ;;  %v2534_v31 = vadd.f32 %v2532_v20, %v4841_v40  ;;  %v2879_v20 = vld [vmem:[#allocation9 + $0x48] sm:$0xff]  ;;  %v2878_v28 = vld [vmem:[#allocation9 + $0x40] sm:$0xff] }
0x1466   :  { %v2538_v34 = vsel %vm603_vm3, %v2534_v31, -inf  ;;  %v2533_v33 = vadd.f32 %v2531_v52, %v4843_v43  ;;  %v2877_v52 = vld [vmem:[#allocation9 + $0x38] sm:$0xff] }
0x1467   :  { %2539 = vmax.xlane.f32.xlu0 %v2538_v34  ;;  %v2875_v34 = vld [vmem:[#allocation9 + $0x28] sm:$0xff] }
0x1468   :  { %v2535_v53 = vsel %vm603_vm3, %v2533_v33, -inf }
0x1469   :  { %2536 = vmax.xlane.f32.xlu1 %v2535_v53  ;;  %v4085_v54 = vpop.f32.mrf.mxu1  ;;  %v2873_v53 = vld [vmem:[#allocation9 + $0x18] sm:$0xff] }
0x146a   :  { %v2746_v55 = vmul.f32 0.17677669, %v4085_v54  ;;  %v2872_v54 = vld [vmem:[#allocation9 + $0x10] sm:$0xff] }
0x146b   :  { %v2736_v57 = vpop.f32.mrf.mxu1 }
0x146c   :  { %v2745_v58 = vmul.f32 0.17677669, %v2736_v57  ;;  %v2748_v59 = vadd.f32 %v2746_v55, %v4841_v40  ;;  %v2871_v57 = vld [vmem:[#allocation9 + $0x8] sm:$0xff] }
0x146e   :  { %v2752_v60 = vsel %vm603_vm3, %v2748_v59, -inf  ;;  %v2747_v61 = vadd.f32 %v2745_v58, %v4843_v43 }
0x146f   :  { %2753 = vmax.xlane.f32.xlu1 %v2752_v60 }
0x1470   :  { %v2749_v62 = vsel %vm603_vm3, %v2747_v61, -inf }
0x1471   :  { %2750 = vmax.xlane.f32.xlu0 %v2749_v62 }
0x1480   :  { %2557 = vrot.lane.b32.xlu1 %v5076_v15, %s4574_s9 }
0x1487   :  { %2559 = vrot.lane.b32.xlu0 %v5069_v39, %s4574_s9 }
0x14f0   :  { %v2540_v63 = vpop.xlane.xlu0 %2539 }
0x14f1   :  { %v2542_v0 = vsub.f32 %v2534_v31, %v2540_v63  ;;  %v2876_v31 = vld [vmem:[#allocation9 + $0x30] sm:$0xff] }
0x14f2   :  { %v2537_v1 = vpop.xlane.xlu1 %2536 }
0x14f3   :  { %v2545_v2 = vmul.f32 1.442695, %v2542_v0  ;;  %v2541_v3 = vsub.f32 %v2533_v33, %v2537_v1  ;;  %v2874_v33 = vld [vmem:[#allocation9 + $0x20] sm:$0xff] }
0x14f5   :  { %4322 = vpow2.f32 %v2545_v2  ;;  %v2543_v40 = vmul.f32 1.442695, %v2541_v3 }
0x14f7   :  { %4324 = vpow2.f32 %v2543_v40  ;;  %v3622_v40 = vld [vmem:[%s5304_s1] ss:$0 sm:$0xff] }
0x14f8   :  { %v2754_v4 = vpop.xlane.xlu1 %2753 }
0x14f9   :  { %v2756_v43 = vsub.f32 %v2748_v59, %v2754_v4  ;;  %v2870_v59 = vld [vmem:[#allocation9] sm:$0xff] }
0x14fa   :  { %v2751_v5 = vpop.xlane.xlu0 %2750 }
0x14fb   :  { %v2759_v6 = vmul.f32 1.442695, %v2756_v43  ;;  %v2755_v8 = vsub.f32 %v2747_v61, %v2751_v5 }
0x14fc   :  { %v2558_v30 = vpop.permute.xlu1 %2557 }
0x14fd   :  { %4326 = vpow2.f32 %v2759_v6  ;;  %v2757_v26 = vmul.f32 1.442695, %v2755_v8 }
0x14fe   :  { %v2560_v9 = vpop.permute.xlu0 %2559 }
0x14ff   :  { %4328 = vpow2.f32 %v2757_v26  ;;  %4072 = vmatprep.subr.mxu0 %v2560_v9 }
0x1500   :  { %4073 = vmatpush3.msra.mxu0 %v2560_v9  ;;  %v3041_v9 = vld [vmem:[#allocation11 + $0xf8] sm:$0xff] }
0x1501   :  { %4074 = vmatprep.subr.mxu0 %v2558_v30  ;;  %3054 = vmatprep.subr.mxu1 %v3041_v9  ;;  %v3180_v9 = vld [vmem:[#allocation12 + $0x68] sm:$0xff] }
0x1502   :  { %v4323_v13 = vpop.eup %4322  ;;  %4075 = vmatpush3.msra.mxu0 %v2558_v30  ;;  %v3040_v30 = vld [vmem:[#allocation11 + $0xf0] sm:$0xff] }
0x1503   :  { %v2550_v14 = vsel %vm603_vm3, %v4323_v13, 0.0  ;;  %3055 = vmatpush1.msra.mxu1 %v3040_v30  ;;  %v3195_v30 = vld [vmem:[#allocation12 + $0xe0] sm:$0xff] }
0x1504   :  { %v4325_v12 = vpop.eup %4324  ;;  %2551 = vadd.xlane.f32.xlu1 %v2550_v14  ;;  %v3038_v14 = vld [vmem:[#allocation11 + $0xe0] sm:$0xff] }
0x1505   :  { %v2547_v19 = vsel %vm603_vm3, %v4325_v12, 0.0 }
0x1506   :  { %2548 = vadd.xlane.f32.xlu0 %v2547_v19  ;;  %v3036_v19 = vld [vmem:[#allocation11 + $0xd0] sm:$0xff] }
0x150a   :  { %v4327_v22 = vpop.eup %4326 }
0x150b   :  { %v2764_v18 = vsel %vm603_vm3, %v4327_v22, 0.0 }
0x150c   :  { %v4329_v24 = vpop.eup %4328  ;;  %2765 = vadd.xlane.f32.xlu1 %v2764_v18 }
0x150d   :  { %v2761_v29 = vsel %vm603_vm3, %v4329_v24, 0.0 }
0x150e   :  { %2762 = vadd.xlane.f32.xlu0 %v2761_v29 }
0x151d   :  { %2773 = vrot.lane.b32.xlu1 %v5069_v39, %s4575_s13 }
0x1521   :  { %2432 = vrot.lane.b32.xlu1 %v2421_v50, %s4575_s13  ;;  %v2881_v50 = vld [vmem:[#allocation9 + $0x58] sm:$0xff] }
0x1524   :  { %2771 = vrot.lane.b32.xlu0 %v5076_v15, %s4575_s13 }
0x1528   :  { %2434 = vrot.lane.b32.xlu0 %v4064_v27, %s4575_s13  ;;  %v2882_v27 = vld [vmem:[#allocation9 + $0x60] sm:$0xff] }
0x158d   :  { %v2552_v32 = vpop.xlane.xlu1 %2551 }
0x158e   :  { %4330 = vrcp.f32 %v2552_v32 }
0x158f   :  { %v2549_v37 = vpop.xlane.xlu0 %2548 }
0x1590   :  { %4332 = vrcp.f32 %v2549_v37 }
0x1595   :  { %v2766_v38 = vpop.xlane.xlu1 %2765 }
0x1596   :  { %4334 = vrcp.f32 %v2766_v38  ;;  %v3035_v38 = vld [vmem:[#allocation11 + $0xc8] sm:$0xff] }
0x1597   :  { %v2763_v41 = vpop.xlane.xlu0 %2762 }
0x1598   :  { %4336 = vrcp.f32 %v2763_v41  ;;  %v3034_v41 = vld [vmem:[#allocation11 + $0xc0] sm:$0xff] }
0x1599   :  { %v2774_v25 = vpop.permute.xlu1 %2773 }
0x159a   :  { %4086 = vmatprep.subr.mxu0 %v2774_v25 }
0x159b   :  { %v2772_v42 = vpop.permute.xlu0 %2771  ;;  %v4331_v23 = vpop.eup %4330 }
0x159c   :  { %v2556_v36 = vmul.f32 %v4331_v23, %v4323_v13  ;;  %v3039_v13 = vld [vmem:[#allocation11 + $0xe8] sm:$0xff] }
0x159d   :  { %v4333_v39 = vpop.eup %4332  ;;  %v2433_v35 = vpop.permute.xlu1 %2432  ;;  %3056 = vmatprep.subr.mxu1 %v3039_v13  ;;  %v3031_v23 = vld [vmem:[#allocation11 + $0xa8] sm:$0xff]  ;;  %v3179_v13 = vld [vmem:[#allocation12 + $0x60] sm:$0xff] }
0x159e   :  { %2438 = vst.msk [vmem:[#allocation2] sm:$0xff] %vm923_vm4, %v2433_v35  ;;  %v2555_v7 = vmul.f32 %v4333_v39, %v4325_v12  ;;  %v3037_v12 = vld [vmem:[#allocation11 + $0xd8] sm:$0xff]  ;;  %3057 = vmatpush1.msra.mxu1 %v3038_v14  ;;  %v3030_v39 = vld [vmem:[#allocation11 + $0xa0] sm:$0xff] }
0x159f   :  { %v2435_v15 = vpop.permute.xlu0 %2434  ;;  %3058 = vmatprep.subr.mxu1 %v3037_v12  ;;  %v3029_v35 = vld [vmem:[#allocation11 + $0x98] sm:$0xff] }
0x15a0   :  { %2439 = vst.msk [vmem:[#allocation2 + $0x8] sm:$0xff] %vm923_vm4, %v2435_v15  ;;  %4076 = vmatprep.mubr.msk.f32.mxu0 %vm603_vm3, %v2555_v7  ;;  %3059 = vmatpush1.msra.mxu1 %v3036_v19  ;;  %v3028_v7 = vld [vmem:[#allocation11 + $0x90] sm:$0xff]  ;;  %v3027_v15 = vld [vmem:[#allocation11 + $0x88] sm:$0xff]  ;;  %v3194_v14 = vld [vmem:[#allocation12 + $0xd8] sm:$0xff] }
0x15a1   :  { %4077 = vmatmul.mubr.msk.f32.vlgmr.msra.gmra.mxu0 %vm603_vm3, %v2556_v36  ;;  %3060 = vmatprep.subr.mxu1 %v3035_v38  ;;  %v3026_v36 = vld [vmem:[#allocation11 + $0x80] sm:$0xff]  ;;  %v3178_v12 = vld [vmem:[#allocation12 + $0x58] sm:$0xff]  ;;  %v3193_v19 = vld [vmem:[#allocation12 + $0xd0] sm:$0xff] }
0x15a2   :  { %4087 = vmatpush3.msra.mxu0 %v2774_v25  ;;  %3061 = vmatpush1.msra.mxu1 %v3034_v41  ;;  %v3033_v25 = vld [vmem:[#allocation11 + $0xb8] sm:$0xff]  ;;  %v3173_v38 = vld [vmem:[#allocation12 + $0x30] sm:$0xff]  ;;  %v3188_v41 = vld [vmem:[#allocation12 + $0xa8] sm:$0xff] }
0x15a3   :  { %4088 = vmatprep.subr.mxu0 %v2772_v42  ;;  %v4335_v44 = vpop.eup %4334  ;;  %3062 = vmatprep.subr.mxu1 %v3033_v25  ;;  %v3172_v25 = vld [vmem:[#allocation12 + $0x28] sm:$0xff] }
0x15a4   :  { %4089 = vmatpush3.msra.mxu0 %v2772_v42  ;;  %v2770_v46 = vmul.f32 %v4335_v44, %v4327_v22  ;;  %v3032_v42 = vld [vmem:[#allocation11 + $0xb0] sm:$0xff]  ;;  %v3025_v44 = vld [vmem:[#allocation11 + $0x78] sm:$0xff] }
0x15a5   :  { %v4337_v45 = vpop.eup %4336  ;;  %4093 = vmatprep.subr.mxu0 %v2885_v47  ;;  %3063 = vmatpush1.msra.mxu1 %v3032_v42  ;;  %v3187_v42 = vld [vmem:[#allocation12 + $0xa0] sm:$0xff] }
0x15a6   :  { %v2769_v10 = vmul.f32 %v4337_v45, %v4329_v24  ;;  %3064 = vmatprep.subr.mxu1 %v3031_v23  ;;  %v3024_v45 = vld [vmem:[#allocation11 + $0x70] sm:$0xff]  ;;  %v3171_v23 = vld [vmem:[#allocation12 + $0x20] sm:$0xff] }
0x15a7   :  { %3065 = vmatpush1.msra.mxu1 %v3030_v39  ;;  %v3186_v39 = vld [vmem:[#allocation12 + $0x98] sm:$0xff] }
0x15a8   :  { %4090 = vmatprep.mubr.msk.f32.mxu0 %vm603_vm3, %v2769_v10  ;;  %3066 = vmatprep.subr.mxu1 %v3029_v35  ;;  %v3023_v10 = vld [vmem:[#allocation11 + $0x68] sm:$0xff]  ;;  %v3170_v35 = vld [vmem:[#allocation12 + $0x18] sm:$0xff] }
0x15a9   :  { %4091 = vmatmul.mubr.msk.f32.vlgmr.msra.gmra.mxu0 %vm603_vm3, %v2770_v46  ;;  %3067 = vmatpush1.msra.mxu1 %v3028_v7  ;;  %v3022_v46 = vld [vmem:[#allocation11 + $0x60] sm:$0xff]  ;;  %v3185_v7 = vld [vmem:[#allocation12 + $0x90] sm:$0xff] }
0x15aa   :  { %4094 = vmatpush3.msra.mxu0 %v2885_v47  ;;  %3068 = vmatprep.subr.mxu1 %v3027_v15  ;;  %v3021_v47 = vld [vmem:[#allocation11 + $0x58] sm:$0xff]  ;;  %v3169_v15 = vld [vmem:[#allocation12 + $0x10] sm:$0xff] }
0x15ab   :  { %4095 = vmatprep.subr.mxu0 %v2884_v48  ;;  %3069 = vmatpush1.msra.mxu1 %v3026_v36  ;;  %v3184_v36 = vld [vmem:[#allocation12 + $0x88] sm:$0xff] }
0x15ac   :  { %4096 = vmatpush3.msra.mxu0 %v2884_v48  ;;  %3070 = vmatprep.subr.mxu1 %v3025_v44  ;;  %v3020_v48 = vld [vmem:[#allocation11 + $0x50] sm:$0xff]  ;;  %v3168_v44 = vld [vmem:[#allocation12 + $0x8] sm:$0xff] }
0x15ad   :  { %4097 = vmatprep.subr.mxu0 %v2883_v49  ;;  %3071 = vmatpush1.msra.mxu1 %v3024_v45  ;;  %v3183_v45 = vld [vmem:[#allocation12 + $0x80] sm:$0xff] }
0x15ae   :  { %4098 = vmatpush3.msra.mxu0 %v2883_v49  ;;  %3072 = vmatprep.subr.mxu1 %v3023_v10  ;;  %v3019_v49 = vld [vmem:[#allocation11 + $0x48] sm:$0xff]  ;;  %v3167_v10 = vld [vmem:[#allocation12] sm:$0xff] }
0x15af   :  { %4099 = vmatprep.subr.mxu0 %v2882_v27  ;;  %3073 = vmatpush1.msra.mxu1 %v3022_v46  ;;  %v3042_v46 = vld [vmem:[%s5307_s7] sm:$0x3] }
0x15b0   :  { %4100 = vmatpush3.msra.mxu0 %v2882_v27  ;;  %3074 = vmatprep.subr.mxu1 %v3021_v47  ;;  %v3018_v27 = vld [vmem:[#allocation11 + $0x40] sm:$0xff]  ;;  %v3047_v47 = vrot.slane %v3042_v46, %v4801_v16 }
0x15b1   :  { %4101 = vmatprep.subr.mxu0 %v2881_v50  ;;  %3075 = vmatpush1.msra.mxu1 %v3020_v48  ;;  %v3051_v48 = vrot.slane %v3042_v46, %v4808_v21 }
0x15b2   :  { %4102 = vmatpush3.msra.mxu0 %v2881_v50  ;;  %v3017_v50 = vld [vmem:[#allocation11 + $0x38] sm:$0xff]  ;;  %3076 = vmatprep.subr.mxu1 %v3019_v49 }
0x15b3   :  { %4103 = vmatprep.subr.mxu0 %v2880_v51  ;;  %3077 = vmatpush1.msra.mxu1 %v3018_v27 }
0x15b4   :  { %4104 = vmatpush3.msra.mxu0 %v2880_v51  ;;  %v3016_v51 = vld [vmem:[#allocation11 + $0x30] sm:$0xff]  ;;  %3078 = vmatprep.subr.mxu1 %v3017_v50 }
0x15b5   :  { %4105 = vmatprep.subr.mxu0 %v2879_v20  ;;  %3079 = vmatpush1.msra.mxu1 %v3016_v51 }
0x15b6   :  { %4106 = vmatpush3.msra.mxu0 %v2879_v20  ;;  %v3015_v20 = vld [vmem:[#allocation11 + $0x28] sm:$0xff] }
0x15b7   :  { %4107 = vmatprep.subr.mxu0 %v2878_v28  ;;  %3080 = vmatprep.subr.mxu1 %v3015_v20 }
0x15b8   :  { %4108 = vmatpush3.msra.mxu0 %v2878_v28  ;;  %v3014_v28 = vld [vmem:[#allocation11 + $0x20] sm:$0xff] }
0x15b9   :  { %4109 = vmatprep.subr.mxu0 %v2877_v52  ;;  %3081 = vmatpush1.msra.mxu1 %v3014_v28 }
0x15ba   :  { %4110 = vmatpush3.msra.mxu0 %v2877_v52  ;;  %v3013_v52 = vld [vmem:[#allocation11 + $0x18] sm:$0xff] }
0x15bb   :  { %4111 = vmatprep.subr.mxu0 %v2876_v31  ;;  %3082 = vmatprep.subr.mxu1 %v3013_v52 }
0x15bc   :  { %4112 = vmatpush3.msra.mxu0 %v2876_v31  ;;  %v3012_v31 = vld [vmem:[#allocation11 + $0x10] sm:$0xff] }
0x15bd   :  { %4113 = vmatprep.subr.mxu0 %v2875_v34  ;;  %3083 = vmatpush1.msra.mxu1 %v3012_v31 }
0x15be   :  { %4114 = vmatpush3.msra.mxu0 %v2875_v34  ;;  %v3011_v34 = vld [vmem:[#allocation11 + $0x8] sm:$0xff] }
0x15bf   :  { %4115 = vmatprep.subr.mxu0 %v2874_v33  ;;  %3084 = vmatprep.subr.mxu1 %v3011_v34 }
0x15c0   :  { %4116 = vmatpush3.msra.mxu0 %v2874_v33  ;;  %v3010_v33 = vld [vmem:[#allocation11] sm:$0xff] }
0x15c1   :  { %4117 = vmatprep.subr.mxu0 %v2873_v53  ;;  %3085 = vmatpush1.msra.mxu1 %v3010_v33 }
0x15c2   :  { %4118 = vmatpush3.msra.mxu0 %v2873_v53  ;;  %4128 = vmatprep.subr.mxu1 %v4570_v56 }
0x15c3   :  { %4119 = vmatprep.subr.mxu0 %v2872_v54 }
0x15c4   :  { %4120 = vmatpush3.msra.mxu0 %v2872_v54 }
0x15c5   :  { %4121 = vmatprep.subr.mxu0 %v2871_v57 }
0x15c6   :  { %4122 = vmatpush3.msra.mxu0 %v2871_v57 }
0x15c7   :  { %4123 = vmatprep.subr.mxu0 %v2870_v59 }
0x15c8   :  { %4124 = vmatpush3.msra.mxu0 %v2870_v59 }
0x1661   :  { %v4078_v55 = vpop.f32.mrf.mxu0 }
0x1662   :  { %2648 = vrot.lane.b32.xlu0 %v4078_v55, %s4574_s9 }
0x1663   :  { %v2635_v58 = vpop.f32.mrf.mxu0 }
0x1664   :  { %2646 = vrot.lane.b32.xlu1 %v2635_v58, %s4574_s9 }
0x1669   :  { %v4092_v60 = vpop.f32.mrf.mxu0 }
0x166a   :  { %2862 = vrot.lane.b32.xlu0 %v4092_v60, %s4573_s5 }
0x166b   :  { %v2849_v61 = vpop.f32.mrf.mxu0 }
0x166c   :  { %2860 = vrot.lane.b32.xlu1 %v2849_v61, %s4573_s5 }
0x16d4   :  { %v2649_v62 = vpop.permute.xlu0 %2648 }
0x16d5   :  { %2653 = vst.msk [vmem:[#allocation2 + $0x8] sm:$0xff] %vm1138_vm5, %v2649_v62 }
0x16d6   :  { %v2647_v63 = vpop.permute.xlu1 %2646 }
0x16d7   :  { %2652 = vst.msk [vmem:[#allocation2] sm:$0xff] %vm1138_vm5, %v2647_v63 }
0x16dc   :  { %v2863_v0 = vpop.permute.xlu0 %2862 }
0x16dd   :  { %2867 = vst.msk [vmem:[#allocation2 + $0x8] sm:$0xff] %vm1353_vm6, %v2863_v0  ;;  %v3623_v0 = vld [vmem:[%s5305_s2] ss:$0 sm:$0xff] }
0x16de   :  { %v2861_v1 = vpop.permute.xlu1 %2860 }
0x16df   :  { %2866 = vst.msk [vmem:[#allocation2] sm:$0xff] %vm1353_vm6, %v2861_v1 }
0x16e4   :  { %v2869_v3 = vld [vmem:[#allocation2 + $0x8] sm:$0xff] }
0x16e6   :  { %v2868_v2 = vld [vmem:[#allocation2] sm:$0xff] }
0x16e7   :  { %4125 = vmatprep.mubr.f32.mxu0 %v2868_v2  ;;  %v3624_v2 = vld [vmem:[%s5306_s20] ss:$0 sm:$0xff] }
0x16e8   :  { %4126 = vmatmul.mubr.f32.vlgmr.msra.gmra.mxu0 %v2869_v3 }
0x17a8   :  { %v4127_v4 = vpop.f32.mrf.mxu0 }
0x17a9   :  { %v2965_v43 = vadd.f32 %v4127_v4, %v3622_v40 }
0x17aa   :  { %v2959_v5 = vpop.f32.mrf.mxu0 }
0x17ab   :  { %v2960_v6 = vadd.f32 %v3622_v40, %v2959_v5  ;;  %v2969_v8 = vadd.f32 %v2965_v43, %v5046_v17  ;;  %v3198_v43 = vld [vmem:[#allocation12 + $0xf8] sm:$0xff] }
0x17ac   :  { %3804 = vmatprep.subr.mxu0 %v3198_v43  ;;  %v3182_v5 = vld [vmem:[#allocation12 + $0x78] sm:$0xff] }
0x17ad   :  { %v2968_v26 = vadd.f32 %v2960_v6, %v5040_v11  ;;  %2974 = vadd.xlane.f32.xlu0 %v2969_v8  ;;  %3805 = vmatpush3.msra.mxu0 %v3182_v5  ;;  %v3197_v6 = vld [vmem:[#allocation12 + $0xf0] sm:$0xff] }
0x17ae   :  { %3806 = vmatprep.subr.mxu0 %v3197_v6 }
0x17af   :  { %2972 = vadd.xlane.f32.xlu1 %v2968_v26 }
0x1836   :  { %v2975_v22 = vpop.xlane.xlu0 %2974 }
0x1837   :  { %v2977_v18 = vmul.f32 0.0078125, %v2975_v22  ;;  %v3177_v22 = vld [vmem:[#allocation12 + $0x50] sm:$0xff] }
0x1838   :  { %v2973_v24 = vpop.xlane.xlu1 %2972 }
0x1839   :  { %v5187_v17 = vsub.f32 %v2969_v8, %v2977_v18  ;;  %v2976_v11 = vmul.f32 0.0078125, %v2973_v24  ;;  %v3181_v8 = vld [vmem:[#allocation12 + $0x70] sm:$0xff]  ;;  %v3192_v18 = vld [vmem:[#allocation12 + $0xc8] sm:$0xff] }
0x183a   :  { %3807 = vmatpush3.msra.mxu0 %v3181_v8  ;;  %v3176_v24 = vld [vmem:[#allocation12 + $0x48] sm:$0xff] }
0x183b   :  { %v5189_v29 = vsub.f32 %v2968_v26, %v2976_v11  ;;  %v2981_v32 = vmul.f32 %v5187_v17, %v5187_v17  ;;  %v3196_v26 = vld [vmem:[#allocation12 + $0xe8] sm:$0xff]  ;;  %v3175_v11 = vld [vmem:[#allocation12 + $0x40] sm:$0xff] }
0x183c   :  { %3808 = vmatprep.subr.mxu0 %v3196_v26 }
0x183d   :  { %2984 = vadd.xlane.f32.xlu1 %v2981_v32  ;;  %v2980_v37 = vmul.f32 %v5189_v29, %v5189_v29  ;;  %3809 = vmatpush3.msra.mxu0 %v3180_v9  ;;  %v3174_v32 = vld [vmem:[#allocation12 + $0x38] sm:$0xff] }
0x183e   :  { %3810 = vmatprep.subr.mxu0 %v3195_v30 }
0x183f   :  { %2982 = vadd.xlane.f32.xlu0 %v2980_v37  ;;  %3811 = vmatpush3.msra.mxu0 %v3179_v13  ;;  %v3189_v37 = vld [vmem:[#allocation12 + $0xb0] sm:$0xff] }
0x1840   :  { %3812 = vmatprep.subr.mxu0 %v3194_v14 }
0x1841   :  { %3813 = vmatpush3.msra.mxu0 %v3178_v12 }
0x1842   :  { %3814 = vmatprep.subr.mxu0 %v3193_v19 }
0x1843   :  { %3815 = vmatpush3.msra.mxu0 %v3177_v22 }
0x1844   :  { %3816 = vmatprep.subr.mxu0 %v3192_v18 }
0x1845   :  { %3817 = vmatpush3.msra.mxu0 %v3176_v24 }
0x18c6   :  { %v2985_v53 = vpop.xlane.xlu1 %2984 }
0x18c7   :  { %v2987_v54 = vmul.f32 0.0078125, %v2985_v53 }
0x18c8   :  { %v2983_v55 = vpop.xlane.xlu0 %2982 }
0x18c9   :  { %v2989_v57 = vadd.f32 1e-05, %v2987_v54  ;;  %v2986_v58 = vmul.f32 0.0078125, %v2983_v55 }
0x18cb   :  { %4338 = vrsqrt.f32 %v2989_v57  ;;  %v2988_v59 = vadd.f32 1e-05, %v2986_v58 }
0x18cd   :  { %4340 = vrsqrt.f32 %v2988_v59 }
0x18d8   :  { %v4339_v60 = vpop.eup %4338 }
0x18d9   :  { %v2993_v63 = vmul.f32 %v4339_v60, %v5187_v17  ;;  %v3191_v17 = vld [vmem:[#allocation12 + $0xc0] sm:$0xff] }
0x18da   :  { %v4341_v61 = vpop.eup %4340  ;;  %3818 = vmatprep.subr.mxu0 %v3191_v17 }
0x18db   :  { %v2992_v62 = vmul.f32 %v4341_v61, %v5189_v29  ;;  %v3001_v40 = vmul.f32 %v3623_v0, %v2993_v63  ;;  %v3190_v29 = vld [vmem:[#allocation12 + $0xb8] sm:$0xff]  ;;  %3819 = vmatpush3.msra.mxu0 %v3175_v11 }
0x18dc   :  { %3820 = vmatprep.subr.mxu0 %v3190_v29 }
0x18dd   :  { %v3000_v1 = vmul.f32 %v3623_v0, %v2992_v62  ;;  %v5204_v4 = vadd.f32 %v3624_v2, %v3001_v40  ;;  %3821 = vmatpush3.msra.mxu0 %v3174_v32 }
0x18de   :  { %3822 = vmatprep.subr.mxu0 %v3189_v37 }
0x18df   :  { %v5200_v3 = vadd.f32 %v3624_v2, %v3000_v1  ;;  %3823 = vmatpush3.msra.mxu0 %v3173_v38  ;;  %v3625_v38 = vld [vmem:[%s5308_s10] ss:$0 sm:$0xff] }
0x18e0   :  { %3824 = vmatprep.subr.mxu0 %v3188_v41 }
0x18e1   :  { %3119 = vmatmul.mubr.f32.vlgmr.msra.gmra.mxu1 %v5200_v3  ;;  %3825 = vmatpush3.msra.mxu0 %v3172_v25 }
0x18e2   :  { %3124 = vmatprep.mubr.f32.mxu1 %v4570_v56  ;;  %3826 = vmatprep.subr.mxu0 %v3187_v42 }
0x18e3   :  { %3827 = vmatpush3.msra.mxu0 %v3171_v23 }
0x18e4   :  { %3828 = vmatprep.subr.mxu0 %v3186_v39 }
0x18e5   :  { %3125 = vmatmul.mubr.f32.gmra.mxu1 %v5204_v4  ;;  %3829 = vmatpush3.msra.mxu0 %v3170_v35 }
0x18e6   :  { %3830 = vmatprep.subr.mxu0 %v3185_v7  ;;  %4160 = vmatprep.mubr.msk.f32.mxu1 %vm4576_vm7, %v4570_v56 }
0x18e7   :  { %3831 = vmatpush3.msra.mxu0 %v3169_v15 }
0x18e8   :  { %3832 = vmatprep.subr.mxu0 %v3184_v36 }
0x18e9   :  { %3833 = vmatpush3.msra.mxu0 %v3168_v44 }
0x18ea   :  { %3834 = vmatprep.subr.mxu0 %v3183_v45 }
0x18eb   :  { %3835 = vmatpush3.msra.mxu0 %v3167_v10 }
0x18ec   :  { %4163 = vmatprep.subr.mxu0 %v4570_v56 }
0x19a1   :  { %v3120_v49 = vpop.f32.mrf.mxu1 }
0x19a2   :  { %v3121_v27 = vadd.f32 %v3120_v49, %v3047_v47 }
0x19a3   :  { %v3122_v50 = vpop.f32.mrf.mxu1 }
0x19a4   :  { %v3135_v51 = vmul.f32 0.044715, %v3121_v27  ;;  %v3123_v20 = vadd.f32 %v3122_v50, %v3051_v48  ;;  %v3131_v14 = vmul.f32 0.5, %v3121_v27  ;;  %v3339_v50 = vld [vmem:[#allocation14 + $0x68] sm:$0xff] }
0x19a5   :  { %v3126_v28 = vpop.f32.mrf.mxu1 }
0x19a6   :  { %v3139_v52 = vmul.f32 %v3135_v51, %v3121_v27  ;;  %v3136_v31 = vmul.f32 0.044715, %v3123_v20  ;;  %v3127_v34 = vadd.f32 %v3126_v28, %v3047_v47  ;;  %v3132_v9 = vmul.f32 0.5, %v3123_v20  ;;  %v3338_v51 = vld [vmem:[#allocation14 + $0x60] sm:$0xff]  ;;  %v3336_v28 = vld [vmem:[#allocation14 + $0x50] sm:$0xff] }
0x19a7   :  { %v3128_v33 = vpop.f32.mrf.mxu1 }
0x19a8   :  { %v3143_v53 = vmul.f32 %v3139_v52, %v3121_v27  ;;  %v3140_v54 = vmul.f32 %v3136_v31, %v3123_v20  ;;  %v3137_v55 = vmul.f32 0.044715, %v3127_v34  ;;  %v3129_v57 = vadd.f32 %v3128_v33, %v3051_v48  ;;  %v3335_v52 = vld [vmem:[#allocation14 + $0x48] sm:$0xff]  ;;  %v3334_v31 = vld [vmem:[#allocation14 + $0x40] sm:$0xff]  ;;  %v3332_v33 = vld [vmem:[#allocation14 + $0x30] sm:$0xff] }
0x19a9   :  { %v3133_v11 = vmul.f32 0.5, %v3127_v34 }
0x19aa   :  { %v3147_v58 = vadd.f32 %v3143_v53, %v3121_v27  ;;  %v3141_v59 = vmul.f32 %v3137_v55, %v3127_v34  ;;  %v3138_v60 = vmul.f32 0.044715, %v3129_v57  ;;  %v3144_v16 = vmul.f32 %v3140_v54, %v3123_v20  ;;  %v3341_v27 = vld [vmem:[#allocation14 + $0x78] sm:$0xff]  ;;  %v3331_v53 = vld [vmem:[#allocation14 + $0x28] sm:$0xff]  ;;  %v3330_v54 = vld [vmem:[#allocation14 + $0x20] sm:$0xff] }
0x19ab   :  { %v3134_v24 = vmul.f32 0.5, %v3129_v57  ;;  %4129 = vmatpush3.msra.mxu1 %v3341_v27  ;;  %v3329_v55 = vld [vmem:[#allocation14 + $0x18] sm:$0xff] }
0x19ac   :  { %v3142_v61 = vmul.f32 %v3138_v60, %v3129_v57  ;;  %v3148_v21 = vadd.f32 %v3144_v16, %v3123_v20  ;;  %v3151_v62 = vmul.f32 0.7978846, %v3147_v58  ;;  %v3145_v63 = vmul.f32 %v3141_v59, %v3127_v34  ;;  %4130 = vmatprep.subr.mxu1 %v4570_v56  ;;  %v3337_v20 = vld [vmem:[#allocation14 + $0x58] sm:$0xff]  ;;  %v3327_v58 = vld [vmem:[#allocation14 + $0x8] sm:$0xff]  ;;  %v3326_v59 = vld [vmem:[#allocation14] sm:$0xff] }
0x19ad   :  { %v3435_v60 = vld [vmem:[%s4741_s14 + $0x78] sm:$0xff]  ;;  %v3434_v16 = vld [vmem:[%s4741_s14 + $0x70] sm:$0xff] }
0x19ae   :  { %v3152_v0 = vmul.f32 0.7978846, %v3148_v21  ;;  %4342 = vtanh.f32 %v3151_v62  ;;  %v3146_v1 = vmul.f32 %v3142_v61, %v3129_v57  ;;  %v3149_v2 = vadd.f32 %v3145_v63, %v3127_v34  ;;  %v3333_v34 = vld [vmem:[#allocation14 + $0x38] sm:$0xff]  ;;  %v3432_v21 = vld [vmem:[%s4741_s14 + $0x60] sm:$0xff]  ;;  %v3431_v62 = vld [vmem:[%s4741_s14 + $0x58] sm:$0xff] }
0x19af   :  { %v3433_v61 = vld [vmem:[%s4741_s14 + $0x68] sm:$0xff]  ;;  %v3430_v63 = vld [vmem:[%s4741_s14 + $0x50] sm:$0xff] }
0x19b0   :  { %4344 = vtanh.f32 %v3152_v0  ;;  %v3150_v40 = vadd.f32 %v3146_v1, %v3129_v57  ;;  %v3153_v43 = vmul.f32 0.7978846, %v3149_v2  ;;  %v3328_v57 = vld [vmem:[#allocation14 + $0x10] sm:$0xff]  ;;  %v3429_v0 = vld [vmem:[%s4741_s14 + $0x48] sm:$0xff]  ;;  %v3427_v2 = vld [vmem:[%s4741_s14 + $0x38] sm:$0xff] }
0x19b1   :  { %v3428_v1 = vld [vmem:[%s4741_s14 + $0x40] sm:$0xff] }
0x19b2   :  { %v3154_v5 = vmul.f32 0.7978846, %v3150_v40  ;;  %4346 = vtanh.f32 %v3153_v43  ;;  %v3426_v40 = vld [vmem:[%s4741_s14 + $0x30] sm:$0xff]  ;;  %v3425_v43 = vld [vmem:[%s4741_s14 + $0x28] sm:$0xff] }
0x19b4   :  { %4348 = vtanh.f32 %v3154_v5  ;;  %v3424_v5 = vld [vmem:[%s4741_s14 + $0x20] sm:$0xff] }
0x19bb   :  { %v4343_v6 = vpop.eup %4342 }
0x19bc   :  { %v3159_v26 = vadd.f32 1.0, %v4343_v6  ;;  %v3423_v6 = vld [vmem:[%s4741_s14 + $0x18] sm:$0xff] }
0x19bd   :  { %v4345_v8 = vpop.eup %4344 }
0x19be   :  { %v3160_v30 = vadd.f32 1.0, %v4345_v8  ;;  %v3163_v22 = vmul.f32 %v3159_v26, %v3131_v14 }
0x19bf   :  { %v4347_v13 = vpop.eup %4346 }
0x19c0   :  { %v3164_v12 = vmul.f32 %v3160_v30, %v3132_v9  ;;  %v3161_v18 = vadd.f32 1.0, %v4347_v13 }
0x19c1   :  { %v4349_v19 = vpop.eup %4348 }
0x19c2   :  { %3270 = vmatprep.mubr.f32.mxu0 %v3164_v12  ;;  %v3162_v17 = vadd.f32 1.0, %v4349_v19  ;;  %v3165_v32 = vmul.f32 %v3161_v18, %v3133_v11  ;;  %v3626_v19 = vld [vmem:[%s5309_s11] ss:$0 sm:$0xff] }
0x19c3   :  { %3271 = vmatmul.mubr.f32.vlgmr.msra.gmra.mxu0 %v3163_v22  ;;  %v3627_v18 = vld [vmem:[%s5310_s0] ss:$0 sm:$0xff] }
0x19c4   :  { %v3166_v29 = vmul.f32 %v3162_v17, %v3134_v24  ;;  %4164 = vmatpush3.msra.mxu0 %v3435_v60 }
0x19c5   :  { %4165 = vmatprep.subr.mxu0 %v4570_v56 }
0x19c6   :  { %3275 = vmatprep.mubr.f32.mxu0 %v3166_v29  ;;  %4166 = vmatpush3.msra.mxu0 %v3434_v16 }
0x19c7   :  { %3276 = vmatmul.mubr.f32.gmra.mxu0 %v3165_v32  ;;  %4167 = vmatprep.subr.mxu0 %v4570_v56 }
0x19c8   :  { %4195 = vmatprep.mubr.msk.f32.mxu0 %vm4576_vm7, %v4570_v56  ;;  %4168 = vmatpush3.msra.mxu0 %v3433_v61 }
0x19c9   :  { %4169 = vmatprep.subr.mxu0 %v4570_v56 }
0x19ca   :  { %4170 = vmatpush3.msra.mxu0 %v3432_v21 }
0x19cb   :  { %4171 = vmatprep.subr.mxu0 %v4570_v56 }
0x19cc   :  { %4172 = vmatpush3.msra.mxu0 %v3431_v62 }
0x19cd   :  { %4173 = vmatprep.subr.mxu0 %v4570_v56 }
0x19ce   :  { %4174 = vmatpush3.msra.mxu0 %v3430_v63 }
0x19cf   :  { %4175 = vmatprep.subr.mxu0 %v4570_v56 }
0x19d0   :  { %4176 = vmatpush3.msra.mxu0 %v3429_v0 }
0x19d1   :  { %4177 = vmatprep.subr.mxu0 %v4570_v56 }
0x19d2   :  { %4178 = vmatpush3.msra.mxu0 %v3428_v1 }
0x19d3   :  { %4179 = vmatprep.subr.mxu0 %v4570_v56 }
0x19d4   :  { %4180 = vmatpush3.msra.mxu0 %v3427_v2 }
0x19d5   :  { %4181 = vmatprep.subr.mxu0 %v4570_v56 }
0x19d6   :  { %4182 = vmatpush3.msra.mxu0 %v3426_v40 }
0x19d7   :  { %4183 = vmatprep.subr.mxu0 %v4570_v56 }
0x19d8   :  { %4184 = vmatpush3.msra.mxu0 %v3425_v43 }
0x19d9   :  { %4185 = vmatprep.subr.mxu0 %v4570_v56 }
0x19da   :  { %4186 = vmatpush3.msra.mxu0 %v3424_v5 }
0x19db   :  { %4187 = vmatprep.subr.mxu0 %v4570_v56 }
0x19dc   :  { %4188 = vmatpush3.msra.mxu0 %v3423_v6 }
0x19dd   :  { %4189 = vmatprep.subr.mxu0 %v4570_v56 }
0x1a83   :  { %v3836_v37 = vpop.f32.mrf.mxu0 }
0x1a85   :  { %v3837_v41 = vpop.f32.mrf.mxu0 }
0x1a86   :  { %v3838_v25 = vadd.f32 %v3837_v41, %v3836_v37  ;;  %v3422_v41 = vld [vmem:[%s4741_s14 + $0x10] sm:$0xff] }
0x1a87   :  { %v3839_v42 = vpop.f32.mrf.mxu0  ;;  %4190 = vmatpush3.msra.mxu0 %v3422_v41 }
0x1a88   :  { %v3273_v23 = vadd.f32 %v3838_v25, %v3625_v38  ;;  %4191 = vmatprep.subr.mxu0 %v4570_v56  ;;  %v3421_v25 = vld [vmem:[%s4741_s14 + $0x8] sm:$0xff] }
0x1a89   :  { %v3840_v39 = vpop.f32.mrf.mxu0  ;;  %4192 = vmatpush3.msra.mxu0 %v3421_v25 }
0x1a8a   :  { %v3841_v35 = vadd.f32 %v3840_v39, %v3839_v42  ;;  %v3281_v7 = vadd.f32 %v3273_v23, %v5200_v3  ;;  %v3420_v42 = vld [vmem:[%s4741_s14] sm:$0xff]  ;;  %4193 = vmatprep.subr.mxu0 %v4570_v56 }
0x1a8b   :  { %4194 = vmatpush3.msra.mxu0 %v3420_v42  ;;  %v3628_v23 = vld [vmem:[%s4736_s12] ss:$0 sm:$0xff] }
0x1a8c   :  { %v3278_v15 = vadd.f32 %v3841_v35, %v3625_v38  ;;  %3285 = vadd.xlane.f32.xlu0 %v3281_v7 }
0x1a8e   :  { %v3282_v36 = vadd.f32 %v3278_v15, %v5204_v4  ;;  %v3340_v4 = vld [vmem:[#allocation14 + $0x70] sm:$0xff] }
0x1a8f   :  { %4131 = vmatpush3.msra.mxu1 %v3340_v4 }
0x1a90   :  { %3287 = vadd.xlane.f32.xlu1 %v3282_v36  ;;  %4132 = vmatprep.subr.mxu1 %v4570_v56 }
0x1a91   :  { %4133 = vmatpush3.msra.mxu1 %v3339_v50 }
0x1a92   :  { %4134 = vmatprep.subr.mxu1 %v4570_v56 }
0x1a93   :  { %4135 = vmatpush3.msra.mxu1 %v3338_v51 }
0x1a94   :  { %4136 = vmatprep.subr.mxu1 %v4570_v56 }
0x1a95   :  { %4137 = vmatpush3.msra.mxu1 %v3337_v20 }
0x1a96   :  { %4138 = vmatprep.subr.mxu1 %v4570_v56 }
0x1a97   :  { %4139 = vmatpush3.msra.mxu1 %v3336_v28 }
0x1a98   :  { %4140 = vmatprep.subr.mxu1 %v4570_v56 }
0x1a99   :  { %4141 = vmatpush3.msra.mxu1 %v3335_v52 }
0x1a9a   :  { %4142 = vmatprep.subr.mxu1 %v4570_v56 }
0x1a9b   :  { %4143 = vmatpush3.msra.mxu1 %v3334_v31 }
0x1a9c   :  { %4144 = vmatprep.subr.mxu1 %v4570_v56 }
0x1a9d   :  { %4145 = vmatpush3.msra.mxu1 %v3333_v34 }
0x1a9e   :  { %4146 = vmatprep.subr.mxu1 %v4570_v56 }
0x1a9f   :  { %4147 = vmatpush3.msra.mxu1 %v3332_v33 }
0x1aa0   :  { %4148 = vmatprep.subr.mxu1 %v4570_v56 }
0x1aa1   :  { %4149 = vmatpush3.msra.mxu1 %v3331_v53 }
0x1aa2   :  { %4150 = vmatprep.subr.mxu1 %v4570_v56 }
0x1aa3   :  { %4151 = vmatpush3.msra.mxu1 %v3330_v54 }
0x1aa4   :  { %4152 = vmatprep.subr.mxu1 %v4570_v56 }
0x1aa5   :  { %4153 = vmatpush3.msra.mxu1 %v3329_v55 }
0x1aa6   :  { %4154 = vmatprep.subr.mxu1 %v4570_v56 }
0x1aa7   :  { %4155 = vmatpush3.msra.mxu1 %v3328_v57 }
0x1aa8   :  { %4156 = vmatprep.subr.mxu1 %v4570_v56 }
0x1aa9   :  { %4157 = vmatpush3.msra.mxu1 %v3327_v58 }
0x1aaa   :  { %4158 = vmatprep.subr.mxu1 %v4570_v56 }
0x1aab   :  { %4159 = vmatpush3.msra.mxu1 %v3326_v59 }
0x1b15   :  { %v3286_v44 = vpop.xlane.xlu0 %3285 }
0x1b16   :  { %v3289_v45 = vmul.f32 0.0078125, %v3286_v44 }
0x1b18   :  { %v5214_v10 = vsub.f32 %v3281_v7, %v3289_v45 }
0x1b19   :  { %v3288_v46 = vpop.xlane.xlu1 %3287 }
0x1b1a   :  { %v3290_v47 = vmul.f32 0.0078125, %v3288_v46  ;;  %v3293_v48 = vmul.f32 %v5214_v10, %v5214_v10 }
0x1b1c   :  { %v5218_v49 = vsub.f32 %v3282_v36, %v3290_v47  ;;  %3295 = vadd.xlane.f32.xlu0 %v3293_v48  ;;  %v3629_v36 = vld [vmem:[%s4746_s27] ss:$0 sm:$0xff] }
0x1b1e   :  { %v3294_v3 = vmul.f32 %v5218_v49, %v5218_v49 }
0x1b20   :  { %3297 = vadd.xlane.f32.xlu1 %v3294_v3 }
0x1ba5   :  { %v3296_v8 = vpop.xlane.xlu0 %3295 }
0x1ba6   :  { %v3299_v26 = vmul.f32 0.0078125, %v3296_v8 }
0x1ba8   :  { %v3301_v9 = vadd.f32 1e-05, %v3299_v26 }
0x1ba9   :  { %v3298_v30 = vpop.xlane.xlu1 %3297 }
0x1baa   :  { %4350 = vrsqrt.f32 %v3301_v9  ;;  %v3300_v13 = vmul.f32 0.0078125, %v3298_v30 }
0x1bac   :  { %v3302_v14 = vadd.f32 1e-05, %v3300_v13 }
0x1bae   :  { %4352 = vrsqrt.f32 %v3302_v14 }
0x1bb7   :  { %v4351_v12 = vpop.eup %4350 }
0x1bb8   :  { %v3305_v22 = vmul.f32 %v4351_v12, %v5214_v10 }
0x1bba   :  { %v3313_v24 = vmul.f32 %v3626_v19, %v3305_v22 }
0x1bbb   :  { %v4353_v17 = vpop.eup %4352 }
0x1bbc   :  { %v3321_v11 = vadd.f32 %v3627_v18, %v3313_v24  ;;  %v3306_v29 = vmul.f32 %v4353_v17, %v5218_v49 }
0x1bbe   :  { %3323 = vst [vmem:[#allocation2] sm:$0xff] %v3321_v11  ;;  %v3314_v32 = vmul.f32 %v3626_v19, %v3306_v29 }
0x1bc0   :  { %v3322_v37 = vadd.f32 %v3627_v18, %v3314_v32 }
0x1bc2   :  { %3324 = vst [vmem:[#allocation2 + $0x8] sm:$0xff] %v3322_v37 }
0x1bc9   :  { %v3325_v38 = vld [vmem:[#allocation2] ss:$8 sm:$0x3] }
0x1bca   :  { %4161 = vmatmul.mubr.f32.vlgmr.msra.gmra.mxu1 %v3325_v38 }
0x1c8a   :  { %v3415_v39 = vpop.f32.mrf.mxu1 }
0x1c8b   :  { %v3416_v35 = vadd.f32 %v3628_v23, %v3415_v39 }
0x1c8c   :  { %v4162_v7 = vpop.f32.mrf.mxu1 }
0x1c8d   :  { %v3419_v15 = vmax.f32 %v3416_v35, 0.0 }
0x1c8f   :  { %4196 = vmatmul.mubr.f32.vlgmr.msra.gmra.mxu0 %v3419_v15 }
0x1d4f   :  { %v3509_v44 = vpop.f32.mrf.mxu0 }
0x1d50   :  { %v3510_v45 = vadd.f32 %v3629_v36, %v3509_v44 }
0x1d51   :  { %v4197_v10 = vpop.f32.mrf.mxu0 }
0x1d52   :  { %3513 = vst [vmem:[#allocation15] sm:$0x3] %v3510_v45 }
0x1d53   :  { %4505 = shalt.err (!%p4502_p11)
}
0x1d54   :  { %3523 = dma.vmem_to_hbm [thread:$0]  %s3521_s30, 32, %s4751_s8, [#allocation5]  }
0x1d55   :  { %4522 = dma.done.wait [#allocation5], 32  }
0x1d56   :  { %4523 = vsyncadd [#allocation5], 4294967264 }
0x1d57   :  { %3527 = vsyncpa [#allocation4], 1 }
0x1d58   :  { %3528 = vsyncpa [#allocation7], 1 }
0x1d59   :  { %3529 = vsyncpa [#allocation10], 1 }
0x1d5a   :  { %3530 = vsyncpa [#allocation13], 1 }
0x1d5b   :  { %3531 = vsyncpa [#allocation5], 1 }

</bundles_post_ra>
